<compile_context>
chip_gen: v6e
topology: v6e:2x2x1
jax: 0.10.0
libtpu: 0.0.40
codegen_flags: <defaults>
</compile_context>

<pallas_src>
import functools

import jax
import jax.numpy as jnp
import numpy as np
from jax import lax
from jax.experimental import pallas as pl
from jax.experimental.pallas import tpu as pltpu

NEG_SLOPE = 0.2


def _round_up(v, m):
    return (v + m - 1) // m * m


# ---------------------------------------------------------------------------
# Fused Pallas kernel: whole Merge_Run_dual for one block of images.
# ---------------------------------------------------------------------------
def _merge_run_dual_kernel(x_ref, m_ref, w_ref, b_ref, o_ref, p_ref,
                           *, Cp, H, W, imgs, neg_slope, mm_dtype):
    HW = H * W
    L = imgs * HW

    x = x_ref[0].astype(jnp.float32)                        # (Cp, L), lane-dense

    def lrelu(y):                                            # LeakyReLU(0.2)
        return jnp.maximum(y, neg_slope * y)

    def fill_taps(a, d, row_off, row_stride):
        # a: (Cp, L) f32.  Writes the 9 dilated taps of `a` (image borders
        # zeroed via precomputed full-height masks) into the patch scratch at
        # rows [row_off + k*row_stride, row_off + k*row_stride + Cp), k=0..8.
        for ky in range(3):
            for kx in range(3):
                k = ky * 3 + kx
                rows = pl.ds(row_off + k * row_stride, Cp)
                dy, dx = (ky - 1) * d, (kx - 1) * d
                if dy == 0 and dx == 0:                      # center tap
                    p_ref[rows, :] = a
                else:
                    shift = (-(dy * W + dx)) % L             # XLU lane rotate
                    rolled = pltpu.roll(a, shift, axis=1)
                    p_ref[rows, :] = rolled * m_ref[d - 1, k]   # (Cp, L) mask

    def conv(widx):
        # One MXU matmul over the whole (18*Cp, L) patch scratch.
        p = p_ref[...].astype(mm_dtype)
        y = jnp.dot(w_ref[widx], p, preferred_element_type=jnp.float32)
        return lrelu(y + b_ref[widx])                        # (2*Cp, L) f32

    # Stage A: body1.conv1 (d=1) and body2.conv1 (d=3), block-diagonally fused.
    fill_taps(x, 1, 0, Cp)
    fill_taps(x, 3, 9 * Cp, Cp)
    h = conv(0)                                              # [:Cp]=h1, [Cp:]=h2

    # Stage B: body1.conv2 (d=2) on h1, body2.conv2 (d=4) on h2.
    # The stacked output IS concat([o1, o2]) -> no jnp.concatenate.
    fill_taps(h[:Cp], 2, 0, Cp)
    fill_taps(h[Cp:], 4, 9 * Cp, Cp)
    cat = conv(1)                                            # (2*Cp, L)

    # Stage C: body3 conv (d=1) on the concat, then residual with x.
    fill_taps(cat[:Cp], 1, 0, 2 * Cp)
    fill_taps(cat[Cp:], 1, Cp, 2 * Cp)
    y = conv(2)[:Cp] + x                                     # (Cp, L)
    o_ref[0] = y.astype(o_ref.dtype)                         # padded, unmasked store


# ---------------------------------------------------------------------------
# Host-side packing helpers.
# ---------------------------------------------------------------------------
def _make_tap_masks(H, W, imgs, Cp):
    """(4, 9, Cp, imgs*H*W) f32 tap-validity masks for dilations 1..4,
    expanded to full channel height and tiled per image (so roll wraparound
    across image boundaries is zeroed)."""
    HW = H * W
    yy, xx = np.divmod(np.arange(HW), W)
    m = np.zeros((4, 9, 1, HW), np.float32)
    for di, d in enumerate((1, 2, 3, 4)):
        for ky in range(3):
            for kx in range(3):
                dy, dx = (ky - 1) * d, (kx - 1) * d
                ok = ((yy + dy >= 0) & (yy + dy < H) &
                      (xx + dx >= 0) & (xx + dx < W))
                m[di, ky * 3 + kx, 0] = ok
    m = np.broadcast_to(m, (4, 9, Cp, HW))
    m = np.tile(m, (1, 1, 1, imgs))                          # per-image tiling
    return jnp.asarray(np.ascontiguousarray(m))


def _pack_dual_weight(w_top, w_bot, C, Cp):
    """Two PyTorch (C, C, 3, 3) convs -> block-diagonal (2*Cp, 18*Cp).
    Patch rows: top taps at k*Cp + c, bottom taps at 9*Cp + k*Cp + c."""
    def one(w):
        wt = jnp.transpose(w, (0, 2, 3, 1))                  # (C, ky, kx, C)
        wp = jnp.zeros((Cp, 3, 3, Cp), jnp.float32).at[:C, :, :, :C].set(wt)
        return wp.reshape(Cp, 9 * Cp)
    top, bot = one(w_top), one(w_bot)
    z = jnp.zeros((Cp, 9 * Cp), jnp.float32)
    return jnp.concatenate([jnp.concatenate([top, z], axis=1),
                            jnp.concatenate([z, bot], axis=1)], axis=0)


def _pack_concat_weight(w, C, Cp):
    """PyTorch (C, 2C, 3, 3) -> (2*Cp, 18*Cp); rows >= Cp are zero.
    Patch rows: tap k, half h (0: o1, 1: o2), channel c at k*2*Cp + h*Cp + c."""
    wt = jnp.transpose(w, (0, 2, 3, 1))                      # (C, ky, kx, 2C)
    wp = jnp.zeros((Cp, 3, 3, 2 * Cp), jnp.float32)
    wp = wp.at[:C, :, :, :C].set(wt[..., :C])
    wp = wp.at[:C, :, :, Cp:Cp + C].set(wt[..., C:])
    w3 = wp.reshape(Cp, 18 * Cp)
    return jnp.concatenate([w3, jnp.zeros((Cp, 18 * Cp), jnp.float32)], axis=0)


def _pack_dual_bias(b_top, b_bot, C, Cp):
    b = jnp.zeros((2 * Cp, 1), jnp.float32)
    return b.at[:C, 0].set(b_top).at[Cp:Cp + C, 0].set(b_bot)


def _pack_single_bias(b, C, Cp):
    return jnp.zeros((2 * Cp, 1), jnp.float32).at[:C, 0].set(b)


# ---------------------------------------------------------------------------
# Wrapper.
# ---------------------------------------------------------------------------
def merge_run_dual(x, params, *, neg_slope=NEG_SLOPE, num_blocks=1,
                   matmul_dtype=jnp.float32):
    """x: (N, C, H, W) NCHW (matches the PyTorch module).

    num_blocks: grid steps the batch is split over.  Use 1 on v5e/v6e (single
    TensorCore -> fold the whole batch into lanes); use 2 on v7x so the two
    TensorCores each take half the batch.
    matmul_dtype: jnp.float32 (default) or jnp.bfloat16 (MXU-native on
    v6e/v7x; elementwise work stays f32 either way)."""
    N, C, H, W = x.shape
    HW = H * W
    Cp = _round_up(C, 8)
    assert N % num_blocks == 0
    ipb = N // num_blocks                                    # images per block
    L = ipb * HW

    # NCHW -> (num_blocks, Cp, ipb*HW): batch folded into the lane dimension.
    xr = x.reshape(num_blocks, ipb, C, HW)
    xr = jnp.pad(xr, ((0, 0), (0, 0), (0, Cp - C), (0, 0)))
    x_p = jnp.transpose(xr, (0, 2, 1, 3)).reshape(num_blocks, Cp, L)

    masks = _make_tap_masks(H, W, ipb, Cp)

    w_slab = jnp.stack([
        _pack_dual_weight(params["b1_w1"], params["b2_w1"], C, Cp),
        _pack_dual_weight(params["b1_w2"], params["b2_w2"], C, Cp),
        _pack_concat_weight(params["b3_w"], C, Cp),
    ]).astype(matmul_dtype)                                  # (3, 2Cp, 18Cp)
    b_slab = jnp.stack([
        _pack_dual_bias(params["b1_b1"], params["b2_b1"], C, Cp),
        _pack_dual_bias(params["b1_b2"], params["b2_b2"], C, Cp),
        _pack_single_bias(params["b3_b"], C, Cp),
    ])                                                       # (3, 2Cp, 1)

    kernel = functools.partial(_merge_run_dual_kernel, Cp=Cp, H=H, W=W,
                               imgs=ipb, neg_slope=neg_slope,
                               mm_dtype=matmul_dtype)

    out = pl.pallas_call(
        kernel,
        out_shape=jax.ShapeDtypeStruct((num_blocks, Cp, L), x.dtype),
        grid=(num_blocks,),
        in_specs=[
            pl.BlockSpec((1, Cp, L), lambda n: (n, 0, 0)),           # x block
            pl.BlockSpec((4, 9, Cp, L), lambda n: (0, 0, 0, 0)),     # border masks
            pl.BlockSpec((3, 2 * Cp, 18 * Cp), lambda n: (0, 0, 0)), # weight slab
            pl.BlockSpec((3, 2 * Cp, 1), lambda n: (0, 0, 0)),       # bias slab
        ],
        out_specs=pl.BlockSpec((1, Cp, L), lambda n: (n, 0, 0)),
        scratch_shapes=[pltpu.VMEM((18 * Cp, L), jnp.float32)],      # patch slab
        compiler_params=pltpu.CompilerParams(
            dimension_semantics=("parallel",)),
    )(x_p, masks, w_slab, b_slab)

    # Channel-padded, lane-dense output -> NCHW; strip the pad with plain XLA.
    out = out.reshape(num_blocks, Cp, ipb, HW).transpose(0, 2, 1, 3)
    return out.reshape(N, Cp, H, W)[:, :C]


# ---------------------------------------------------------------------------
# Pure-JAX reference (lax.conv, NCHW) for correctness check.
# ---------------------------------------------------------------------------
def _conv_ref(x, w, b, d):
    y = lax.conv_general_dilated(
        x, w, window_strides=(1, 1), padding=((d, d), (d, d)),
        rhs_dilation=(d, d), dimension_numbers=("NCHW", "OIHW", "NCHW"))
    y = y + b.reshape(1, -1, 1, 1)
    return jnp.where(y >= 0, y, NEG_SLOPE * y)


def merge_run_dual_ref(x, p):
    o1 = _conv_ref(_conv_ref(x, p["b1_w1"], p["b1_b1"], 1), p["b1_w2"], p["b1_b2"], 2)
    o2 = _conv_ref(_conv_ref(x, p["b2_w1"], p["b2_b1"], 3), p["b2_w2"], p["b2_b2"], 4)
    c = jnp.concatenate([o1, o2], axis=1)
    return _conv_ref(c, p["b3_w"], p["b3_b"], 1) + x


# ---------------------------------------------------------------------------
# Deterministic parameter init (PyTorch OIHW layout).
# ---------------------------------------------------------------------------
def init_params(key, C):
    def winit(k, cout, cin):
        scale = jnp.sqrt(1.0 / (cin * 9))
        return scale * jax.random.normal(k, (cout, cin, 3, 3), jnp.float32)

    ks = jax.random.split(key, 5)
    return {
        "b1_w1": winit(ks[0], C, C),     "b1_b1": 0.01 * jnp.arange(C, dtype=jnp.float32),
        "b1_w2": winit(ks[1], C, C),     "b1_b2": 0.02 * jnp.arange(C, dtype=jnp.float32),
        "b2_w1": winit(ks[2], C, C),     "b2_b1": 0.03 * jnp.arange(C, dtype=jnp.float32),
        "b2_w2": winit(ks[3], C, C),     "b2_b2": 0.04 * jnp.arange(C, dtype=jnp.float32),
        "b3_w":  winit(ks[4], C, 2 * C), "b3_b":  0.05 * jnp.arange(C, dtype=jnp.float32),
    }


if __name__ == "__main__":
    key = jax.random.PRNGKey(0)
    kx, kp = jax.random.split(key)

    N, C, H, W = 2, 4, 16, 16                 # NCHW, same as the PyTorch module
    x = jax.random.normal(kx, (N, C, H, W), jnp.float32)
    params = init_params(kp, C)

    ref = jax.block_until_ready(merge_run_dual_ref(x, params))

    # Default f32-MXU path (batch folded into lanes, 3 fused matmuls).
    out = jax.block_until_ready(jax.jit(merge_run_dual)(x, params))
    np.testing.assert_allclose(np.asarray(out), np.asarray(ref),
                               rtol=5e-4, atol=1e-4)

    # Optional bf16-MXU path (v6e/v7x-friendly; elementwise stays f32).
    out_bf16 = jax.block_until_ready(
        jax.jit(functools.partial(merge_run_dual,
                                  matmul_dtype=jnp.bfloat16))(x, params))
    np.testing.assert_allclose(np.asarray(out_bf16), np.asarray(ref),
                               rtol=5e-2, atol=5e-2)

    print("KERNEL_OK")
</pallas_src>

<mosaic_0001>
module attributes {stable_mosaic.version = 11 : i64} {
  func.func @_merge_run_dual_kernel(%arg0: i32, %arg1: memref<1x8x512xf32, #tpu.memory_space<vmem>>, %arg2: memref<4x9x8x512xf32, #tpu.memory_space<vmem>>, %arg3: memref<3x16x144xf32, #tpu.memory_space<vmem>>, %arg4: memref<3x16x1xf32, #tpu.memory_space<vmem>>, %arg5: memref<1x8x512xf32, #tpu.memory_space<vmem>>, %arg6: memref<144x512xf32, #tpu.memory_space<vmem>>) attributes {dimension_semantics = [#tpu.dimension_semantics<parallel>], iteration_bounds = array<i64: 1>, scalar_prefetch = 0 : i64, scratch_operands = 1 : i64, tpu.core_type = #tpu.core_type<tc>, window_params = [{transform_indices = @transform_0, window_bounds = array<i64: 1, 8, 512>}, {pipeline_mode = #tpu.pipeline_mode<synchronous>, transform_indices = @transform_1, window_bounds = array<i64: 4, 9, 8, 512>}, {pipeline_mode = #tpu.pipeline_mode<synchronous>, transform_indices = @transform_2, window_bounds = array<i64: 3, 16, 144>}, {pipeline_mode = #tpu.pipeline_mode<synchronous>, transform_indices = @transform_3, window_bounds = array<i64: 3, 16, 1>}, {transform_indices = @transform_4, window_bounds = array<i64: 1, 8, 512>}]} {
    %c0 = arith.constant 0 : index
    %c0_0 = arith.constant 0 : index
    %c0_1 = arith.constant 0 : index
    %0 = vector.load %arg1[%c0, %c0_0, %c0_1] : memref<1x8x512xf32, #tpu.memory_space<vmem>>, vector<1x8x512xf32>
    %1 = vector.shape_cast %0 : vector<1x8x512xf32> to vector<8x512xf32>
    %c17_i32 = arith.constant 17 : i32
    %2 = tpu.dynamic_rotate %1 by %c17_i32 dim 1 : vector<8x512xf32>, i32 -> vector<8x512xf32>
    %c0_2 = arith.constant 0 : index
    %c0_3 = arith.constant 0 : index
    %c0_4 = arith.constant 0 : index
    %c0_5 = arith.constant 0 : index
    %3 = vector.load %arg2[%c0_2, %c0_3, %c0_4, %c0_5] : memref<4x9x8x512xf32, #tpu.memory_space<vmem>>, vector<1x1x8x512xf32>
    %4 = vector.shape_cast %3 : vector<1x1x8x512xf32> to vector<8x512xf32>
    %5 = arith.mulf %2, %4 : vector<8x512xf32>
    %c0_6 = arith.constant 0 : index
    %c0_7 = arith.constant 0 : index
    %6 = vector.load %arg6[%c0_6, %c0_7] : memref<144x512xf32, #tpu.memory_space<vmem>>, vector<8x512xf32>
    tpu.vector_store %arg6[%c0_6, %c0_7], %5 {strides = array<i32>} : memref<144x512xf32, #tpu.memory_space<vmem>>, vector<8x512xf32>,
    %c16_i32 = arith.constant 16 : i32
    %7 = tpu.dynamic_rotate %1 by %c16_i32 dim 1 : vector<8x512xf32>, i32 -> vector<8x512xf32>
    %c0_8 = arith.constant 0 : index
    %c1 = arith.constant 1 : index
    %c0_9 = arith.constant 0 : index
    %c0_10 = arith.constant 0 : index
    %8 = vector.load %arg2[%c0_8, %c1, %c0_9, %c0_10] : memref<4x9x8x512xf32, #tpu.memory_space<vmem>>, vector<1x1x8x512xf32>
    %9 = vector.shape_cast %8 : vector<1x1x8x512xf32> to vector<8x512xf32>
    %10 = arith.mulf %7, %9 : vector<8x512xf32>
    %c8 = arith.constant 8 : index
    %c0_11 = arith.constant 0 : index
    %11 = vector.load %arg6[%c8, %c0_11] : memref<144x512xf32, #tpu.memory_space<vmem>>, vector<8x512xf32>
    tpu.vector_store %arg6[%c8, %c0_11], %10 {strides = array<i32>} : memref<144x512xf32, #tpu.memory_space<vmem>>, vector<8x512xf32>,
    %c15_i32 = arith.constant 15 : i32
    %12 = tpu.dynamic_rotate %1 by %c15_i32 dim 1 : vector<8x512xf32>, i32 -> vector<8x512xf32>
    %c0_12 = arith.constant 0 : index
    %c2 = arith.constant 2 : index
    %c0_13 = arith.constant 0 : index
    %c0_14 = arith.constant 0 : index
    %13 = vector.load %arg2[%c0_12, %c2, %c0_13, %c0_14] : memref<4x9x8x512xf32, #tpu.memory_space<vmem>>, vector<1x1x8x512xf32>
    %14 = vector.shape_cast %13 : vector<1x1x8x512xf32> to vector<8x512xf32>
    %15 = arith.mulf %12, %14 : vector<8x512xf32>
    %c16 = arith.constant 16 : index
    %c0_15 = arith.constant 0 : index
    %16 = vector.load %arg6[%c16, %c0_15] : memref<144x512xf32, #tpu.memory_space<vmem>>, vector<8x512xf32>
    tpu.vector_store %arg6[%c16, %c0_15], %15 {strides = array<i32>} : memref<144x512xf32, #tpu.memory_space<vmem>>, vector<8x512xf32>,
    %c1_i32 = arith.constant 1 : i32
    %17 = tpu.dynamic_rotate %1 by %c1_i32 dim 1 : vector<8x512xf32>, i32 -> vector<8x512xf32>
    %c0_16 = arith.constant 0 : index
    %c3 = arith.constant 3 : index
    %c0_17 = arith.constant 0 : index
    %c0_18 = arith.constant 0 : index
    %18 = vector.load %arg2[%c0_16, %c3, %c0_17, %c0_18] : memref<4x9x8x512xf32, #tpu.memory_space<vmem>>, vector<1x1x8x512xf32>
    %19 = vector.shape_cast %18 : vector<1x1x8x512xf32> to vector<8x512xf32>
    %20 = arith.mulf %17, %19 : vector<8x512xf32>
    %c24 = arith.constant 24 : index
    %c0_19 = arith.constant 0 : index
    %21 = vector.load %arg6[%c24, %c0_19] : memref<144x512xf32, #tpu.memory_space<vmem>>, vector<8x512xf32>
    tpu.vector_store %arg6[%c24, %c0_19], %20 {strides = array<i32>} : memref<144x512xf32, #tpu.memory_space<vmem>>, vector<8x512xf32>,
    %c32 = arith.constant 32 : index
    %c0_20 = arith.constant 0 : index
    %22 = vector.load %arg6[%c32, %c0_20] : memref<144x512xf32, #tpu.memory_space<vmem>>, vector<8x512xf32>
    tpu.vector_store %arg6[%c32, %c0_20], %1 {strides = array<i32>} : memref<144x512xf32, #tpu.memory_space<vmem>>, vector<8x512xf32>,
    %c511_i32 = arith.constant 511 : i32
    %23 = tpu.dynamic_rotate %1 by %c511_i32 dim 1 : vector<8x512xf32>, i32 -> vector<8x512xf32>
    %c0_21 = arith.constant 0 : index
    %c5 = arith.constant 5 : index
    %c0_22 = arith.constant 0 : index
    %c0_23 = arith.constant 0 : index
    %24 = vector.load %arg2[%c0_21, %c5, %c0_22, %c0_23] : memref<4x9x8x512xf32, #tpu.memory_space<vmem>>, vector<1x1x8x512xf32>
    %25 = vector.shape_cast %24 : vector<1x1x8x512xf32> to vector<8x512xf32>
    %26 = arith.mulf %23, %25 : vector<8x512xf32>
    %c40 = arith.constant 40 : index
    %c0_24 = arith.constant 0 : index
    %27 = vector.load %arg6[%c40, %c0_24] : memref<144x512xf32, #tpu.memory_space<vmem>>, vector<8x512xf32>
    tpu.vector_store %arg6[%c40, %c0_24], %26 {strides = array<i32>} : memref<144x512xf32, #tpu.memory_space<vmem>>, vector<8x512xf32>,
    %c497_i32 = arith.constant 497 : i32
    %28 = tpu.dynamic_rotate %1 by %c497_i32 dim 1 : vector<8x512xf32>, i32 -> vector<8x512xf32>
    %c0_25 = arith.constant 0 : index
    %c6 = arith.constant 6 : index
    %c0_26 = arith.constant 0 : index
    %c0_27 = arith.constant 0 : index
    %29 = vector.load %arg2[%c0_25, %c6, %c0_26, %c0_27] : memref<4x9x8x512xf32, #tpu.memory_space<vmem>>, vector<1x1x8x512xf32>
    %30 = vector.shape_cast %29 : vector<1x1x8x512xf32> to vector<8x512xf32>
    %31 = arith.mulf %28, %30 : vector<8x512xf32>
    %c48 = arith.constant 48 : index
    %c0_28 = arith.constant 0 : index
    %32 = vector.load %arg6[%c48, %c0_28] : memref<144x512xf32, #tpu.memory_space<vmem>>, vector<8x512xf32>
    tpu.vector_store %arg6[%c48, %c0_28], %31 {strides = array<i32>} : memref<144x512xf32, #tpu.memory_space<vmem>>, vector<8x512xf32>,
    %c496_i32 = arith.constant 496 : i32
    %33 = tpu.dynamic_rotate %1 by %c496_i32 dim 1 : vector<8x512xf32>, i32 -> vector<8x512xf32>
    %c0_29 = arith.constant 0 : index
    %c7 = arith.constant 7 : index
    %c0_30 = arith.constant 0 : index
    %c0_31 = arith.constant 0 : index
    %34 = vector.load %arg2[%c0_29, %c7, %c0_30, %c0_31] : memref<4x9x8x512xf32, #tpu.memory_space<vmem>>, vector<1x1x8x512xf32>
    %35 = vector.shape_cast %34 : vector<1x1x8x512xf32> to vector<8x512xf32>
    %36 = arith.mulf %33, %35 : vector<8x512xf32>
    %c56 = arith.constant 56 : index
    %c0_32 = arith.constant 0 : index
    %37 = vector.load %arg6[%c56, %c0_32] : memref<144x512xf32, #tpu.memory_space<vmem>>, vector<8x512xf32>
    tpu.vector_store %arg6[%c56, %c0_32], %36 {strides = array<i32>} : memref<144x512xf32, #tpu.memory_space<vmem>>, vector<8x512xf32>,
    %c495_i32 = arith.constant 495 : i32
    %38 = tpu.dynamic_rotate %1 by %c495_i32 dim 1 : vector<8x512xf32>, i32 -> vector<8x512xf32>
    %c0_33 = arith.constant 0 : index
    %c8_34 = arith.constant 8 : index
    %c0_35 = arith.constant 0 : index
    %c0_36 = arith.constant 0 : index
    %39 = vector.load %arg2[%c0_33, %c8_34, %c0_35, %c0_36] : memref<4x9x8x512xf32, #tpu.memory_space<vmem>>, vector<1x1x8x512xf32>
    %40 = vector.shape_cast %39 : vector<1x1x8x512xf32> to vector<8x512xf32>
    %41 = arith.mulf %38, %40 : vector<8x512xf32>
    %c64 = arith.constant 64 : index
    %c0_37 = arith.constant 0 : index
    %42 = vector.load %arg6[%c64, %c0_37] : memref<144x512xf32, #tpu.memory_space<vmem>>, vector<8x512xf32>
    tpu.vector_store %arg6[%c64, %c0_37], %41 {strides = array<i32>} : memref<144x512xf32, #tpu.memory_space<vmem>>, vector<8x512xf32>,
    %c51_i32 = arith.constant 51 : i32
    %43 = tpu.dynamic_rotate %1 by %c51_i32 dim 1 : vector<8x512xf32>, i32 -> vector<8x512xf32>
    %c2_38 = arith.constant 2 : index
    %c0_39 = arith.constant 0 : index
    %c0_40 = arith.constant 0 : index
    %c0_41 = arith.constant 0 : index
    %44 = vector.load %arg2[%c2_38, %c0_39, %c0_40, %c0_41] : memref<4x9x8x512xf32, #tpu.memory_space<vmem>>, vector<1x1x8x512xf32>
    %45 = vector.shape_cast %44 : vector<1x1x8x512xf32> to vector<8x512xf32>
    %46 = arith.mulf %43, %45 : vector<8x512xf32>
    %c72 = arith.constant 72 : index
    %c0_42 = arith.constant 0 : index
    %47 = vector.load %arg6[%c72, %c0_42] : memref<144x512xf32, #tpu.memory_space<vmem>>, vector<8x512xf32>
    tpu.vector_store %arg6[%c72, %c0_42], %46 {strides = array<i32>} : memref<144x512xf32, #tpu.memory_space<vmem>>, vector<8x512xf32>,
    %c48_i32 = arith.constant 48 : i32
    %48 = tpu.dynamic_rotate %1 by %c48_i32 dim 1 : vector<8x512xf32>, i32 -> vector<8x512xf32>
    %c2_43 = arith.constant 2 : index
    %c1_44 = arith.constant 1 : index
    %c0_45 = arith.constant 0 : index
    %c0_46 = arith.constant 0 : index
    %49 = vector.load %arg2[%c2_43, %c1_44, %c0_45, %c0_46] : memref<4x9x8x512xf32, #tpu.memory_space<vmem>>, vector<1x1x8x512xf32>
    %50 = vector.shape_cast %49 : vector<1x1x8x512xf32> to vector<8x512xf32>
    %51 = arith.mulf %48, %50 : vector<8x512xf32>
    %c80 = arith.constant 80 : index
    %c0_47 = arith.constant 0 : index
    %52 = vector.load %arg6[%c80, %c0_47] : memref<144x512xf32, #tpu.memory_space<vmem>>, vector<8x512xf32>
    tpu.vector_store %arg6[%c80, %c0_47], %51 {strides = array<i32>} : memref<144x512xf32, #tpu.memory_space<vmem>>, vector<8x512xf32>,
    %c45_i32 = arith.constant 45 : i32
    %53 = tpu.dynamic_rotate %1 by %c45_i32 dim 1 : vector<8x512xf32>, i32 -> vector<8x512xf32>
    %c2_48 = arith.constant 2 : index
    %c2_49 = arith.constant 2 : index
    %c0_50 = arith.constant 0 : index
    %c0_51 = arith.constant 0 : index
    %54 = vector.load %arg2[%c2_48, %c2_49, %c0_50, %c0_51] : memref<4x9x8x512xf32, #tpu.memory_space<vmem>>, vector<1x1x8x512xf32>
    %55 = vector.shape_cast %54 : vector<1x1x8x512xf32> to vector<8x512xf32>
    %56 = arith.mulf %53, %55 : vector<8x512xf32>
    %c88 = arith.constant 88 : index
    %c0_52 = arith.constant 0 : index
    %57 = vector.load %arg6[%c88, %c0_52] : memref<144x512xf32, #tpu.memory_space<vmem>>, vector<8x512xf32>
    tpu.vector_store %arg6[%c88, %c0_52], %56 {strides = array<i32>} : memref<144x512xf32, #tpu.memory_space<vmem>>, vector<8x512xf32>,
    %c3_i32 = arith.constant 3 : i32
    %58 = tpu.dynamic_rotate %1 by %c3_i32 dim 1 : vector<8x512xf32>, i32 -> vector<8x512xf32>
    %c2_53 = arith.constant 2 : index
    %c3_54 = arith.constant 3 : index
    %c0_55 = arith.constant 0 : index
    %c0_56 = arith.constant 0 : index
    %59 = vector.load %arg2[%c2_53, %c3_54, %c0_55, %c0_56] : memref<4x9x8x512xf32, #tpu.memory_space<vmem>>, vector<1x1x8x512xf32>
    %60 = vector.shape_cast %59 : vector<1x1x8x512xf32> to vector<8x512xf32>
    %61 = arith.mulf %58, %60 : vector<8x512xf32>
    %c96 = arith.constant 96 : index
    %c0_57 = arith.constant 0 : index
    %62 = vector.load %arg6[%c96, %c0_57] : memref<144x512xf32, #tpu.memory_space<vmem>>, vector<8x512xf32>
    tpu.vector_store %arg6[%c96, %c0_57], %61 {strides = array<i32>} : memref<144x512xf32, #tpu.memory_space<vmem>>, vector<8x512xf32>,
    %c104 = arith.constant 104 : index
    %c0_58 = arith.constant 0 : index
    %63 = vector.load %arg6[%c104, %c0_58] : memref<144x512xf32, #tpu.memory_space<vmem>>, vector<8x512xf32>
    tpu.vector_store %arg6[%c104, %c0_58], %1 {strides = array<i32>} : memref<144x512xf32, #tpu.memory_space<vmem>>, vector<8x512xf32>,
    %c509_i32 = arith.constant 509 : i32
    %64 = tpu.dynamic_rotate %1 by %c509_i32 dim 1 : vector<8x512xf32>, i32 -> vector<8x512xf32>
    %c2_59 = arith.constant 2 : index
    %c5_60 = arith.constant 5 : index
    %c0_61 = arith.constant 0 : index
    %c0_62 = arith.constant 0 : index
    %65 = vector.load %arg2[%c2_59, %c5_60, %c0_61, %c0_62] : memref<4x9x8x512xf32, #tpu.memory_space<vmem>>, vector<1x1x8x512xf32>
    %66 = vector.shape_cast %65 : vector<1x1x8x512xf32> to vector<8x512xf32>
    %67 = arith.mulf %64, %66 : vector<8x512xf32>
    %c112 = arith.constant 112 : index
    %c0_63 = arith.constant 0 : index
    %68 = vector.load %arg6[%c112, %c0_63] : memref<144x512xf32, #tpu.memory_space<vmem>>, vector<8x512xf32>
    tpu.vector_store %arg6[%c112, %c0_63], %67 {strides = array<i32>} : memref<144x512xf32, #tpu.memory_space<vmem>>, vector<8x512xf32>,
    %c467_i32 = arith.constant 467 : i32
    %69 = tpu.dynamic_rotate %1 by %c467_i32 dim 1 : vector<8x512xf32>, i32 -> vector<8x512xf32>
    %c2_64 = arith.constant 2 : index
    %c6_65 = arith.constant 6 : index
    %c0_66 = arith.constant 0 : index
    %c0_67 = arith.constant 0 : index
    %70 = vector.load %arg2[%c2_64, %c6_65, %c0_66, %c0_67] : memref<4x9x8x512xf32, #tpu.memory_space<vmem>>, vector<1x1x8x512xf32>
    %71 = vector.shape_cast %70 : vector<1x1x8x512xf32> to vector<8x512xf32>
    %72 = arith.mulf %69, %71 : vector<8x512xf32>
    %c120 = arith.constant 120 : index
    %c0_68 = arith.constant 0 : index
    %73 = vector.load %arg6[%c120, %c0_68] : memref<144x512xf32, #tpu.memory_space<vmem>>, vector<8x512xf32>
    tpu.vector_store %arg6[%c120, %c0_68], %72 {strides = array<i32>} : memref<144x512xf32, #tpu.memory_space<vmem>>, vector<8x512xf32>,
    %c464_i32 = arith.constant 464 : i32
    %74 = tpu.dynamic_rotate %1 by %c464_i32 dim 1 : vector<8x512xf32>, i32 -> vector<8x512xf32>
    %c2_69 = arith.constant 2 : index
    %c7_70 = arith.constant 7 : index
    %c0_71 = arith.constant 0 : index
    %c0_72 = arith.constant 0 : index
    %75 = vector.load %arg2[%c2_69, %c7_70, %c0_71, %c0_72] : memref<4x9x8x512xf32, #tpu.memory_space<vmem>>, vector<1x1x8x512xf32>
    %76 = vector.shape_cast %75 : vector<1x1x8x512xf32> to vector<8x512xf32>
    %77 = arith.mulf %74, %76 : vector<8x512xf32>
    %c128 = arith.constant 128 : index
    %c0_73 = arith.constant 0 : index
    %78 = vector.load %arg6[%c128, %c0_73] : memref<144x512xf32, #tpu.memory_space<vmem>>, vector<8x512xf32>
    tpu.vector_store %arg6[%c128, %c0_73], %77 {strides = array<i32>} : memref<144x512xf32, #tpu.memory_space<vmem>>, vector<8x512xf32>,
    %c461_i32 = arith.constant 461 : i32
    %79 = tpu.dynamic_rotate %1 by %c461_i32 dim 1 : vector<8x512xf32>, i32 -> vector<8x512xf32>
    %c2_74 = arith.constant 2 : index
    %c8_75 = arith.constant 8 : index
    %c0_76 = arith.constant 0 : index
    %c0_77 = arith.constant 0 : index
    %80 = vector.load %arg2[%c2_74, %c8_75, %c0_76, %c0_77] : memref<4x9x8x512xf32, #tpu.memory_space<vmem>>, vector<1x1x8x512xf32>
    %81 = vector.shape_cast %80 : vector<1x1x8x512xf32> to vector<8x512xf32>
    %82 = arith.mulf %79, %81 : vector<8x512xf32>
    %c136 = arith.constant 136 : index
    %c0_78 = arith.constant 0 : index
    %83 = vector.load %arg6[%c136, %c0_78] : memref<144x512xf32, #tpu.memory_space<vmem>>, vector<8x512xf32>
    tpu.vector_store %arg6[%c136, %c0_78], %82 {strides = array<i32>} : memref<144x512xf32, #tpu.memory_space<vmem>>, vector<8x512xf32>,
    %c0_79 = arith.constant 0 : index
    %c0_80 = arith.constant 0 : index
    %84 = vector.load %arg6[%c0_79, %c0_80] : memref<144x512xf32, #tpu.memory_space<vmem>>, vector<144x512xf32>
    %c0_81 = arith.constant 0 : index
    %c0_82 = arith.constant 0 : index
    %c0_83 = arith.constant 0 : index
    %85 = vector.load %arg3[%c0_81, %c0_82, %c0_83] : memref<3x16x144xf32, #tpu.memory_space<vmem>>, vector<1x16x144xf32>
    %86 = vector.shape_cast %85 : vector<1x16x144xf32> to vector<16x144xf32>
    %cst = arith.constant dense<0.000000e+00> : vector<16x512xf32>
    %87 = tpu.matmul %86, %84, %cst {dimension_numbers = #tpu.dot_dimension_numbers<[1], [0], [0], [1], [0, 0, 1, 1], [], []>} : vector<16x144xf32>, vector<144x512xf32>, vector<16x512xf32> -> vector<16x512xf32>
    %c0_84 = arith.constant 0 : index
    %c0_85 = arith.constant 0 : index
    %c0_86 = arith.constant 0 : index
    %88 = vector.load %arg4[%c0_84, %c0_85, %c0_86] : memref<3x16x1xf32, #tpu.memory_space<vmem>>, vector<1x16x1xf32>
    %89 = vector.shape_cast %88 : vector<1x16x1xf32> to vector<16x1xf32>
    %90 = vector.broadcast %89 : vector<16x1xf32> to vector<16x512xf32>
    %91 = arith.addf %87, %90 : vector<16x512xf32>
    %cst_87 = arith.constant 2.000000e-01 : f32
    %92 = vector.broadcast %cst_87 : f32 to vector<16x512xf32>
    %93 = arith.mulf %92, %91 : vector<16x512xf32>
    %94 = arith.maximumf %91, %93 : vector<16x512xf32>
    %95 = vector.extract_strided_slice %94 {offsets = [0, 0], sizes = [8, 512], strides = [1, 1]} : vector<16x512xf32> to vector<8x512xf32>
    %c34_i32 = arith.constant 34 : i32
    %96 = tpu.dynamic_rotate %95 by %c34_i32 dim 1 : vector<8x512xf32>, i32 -> vector<8x512xf32>
    %c1_88 = arith.constant 1 : index
    %c0_89 = arith.constant 0 : index
    %c0_90 = arith.constant 0 : index
    %c0_91 = arith.constant 0 : index
    %97 = vector.load %arg2[%c1_88, %c0_89, %c0_90, %c0_91] : memref<4x9x8x512xf32, #tpu.memory_space<vmem>>, vector<1x1x8x512xf32>
    %98 = vector.shape_cast %97 : vector<1x1x8x512xf32> to vector<8x512xf32>
    %99 = arith.mulf %96, %98 : vector<8x512xf32>
    %c0_92 = arith.constant 0 : index
    %c0_93 = arith.constant 0 : index
    %100 = vector.load %arg6[%c0_92, %c0_93] : memref<144x512xf32, #tpu.memory_space<vmem>>, vector<8x512xf32>
    tpu.vector_store %arg6[%c0_92, %c0_93], %99 {strides = array<i32>} : memref<144x512xf32, #tpu.memory_space<vmem>>, vector<8x512xf32>,
    %c32_i32 = arith.constant 32 : i32
    %101 = tpu.dynamic_rotate %95 by %c32_i32 dim 1 : vector<8x512xf32>, i32 -> vector<8x512xf32>
    %c1_94 = arith.constant 1 : index
    %c1_95 = arith.constant 1 : index
    %c0_96 = arith.constant 0 : index
    %c0_97 = arith.constant 0 : index
    %102 = vector.load %arg2[%c1_94, %c1_95, %c0_96, %c0_97] : memref<4x9x8x512xf32, #tpu.memory_space<vmem>>, vector<1x1x8x512xf32>
    %103 = vector.shape_cast %102 : vector<1x1x8x512xf32> to vector<8x512xf32>
    %104 = arith.mulf %101, %103 : vector<8x512xf32>
    %c8_98 = arith.constant 8 : index
    %c0_99 = arith.constant 0 : index
    %105 = vector.load %arg6[%c8_98, %c0_99] : memref<144x512xf32, #tpu.memory_space<vmem>>, vector<8x512xf32>
    tpu.vector_store %arg6[%c8_98, %c0_99], %104 {strides = array<i32>} : memref<144x512xf32, #tpu.memory_space<vmem>>, vector<8x512xf32>,
    %c30_i32 = arith.constant 30 : i32
    %106 = tpu.dynamic_rotate %95 by %c30_i32 dim 1 : vector<8x512xf32>, i32 -> vector<8x512xf32>
    %c1_100 = arith.constant 1 : index
    %c2_101 = arith.constant 2 : index
    %c0_102 = arith.constant 0 : index
    %c0_103 = arith.constant 0 : index
    %107 = vector.load %arg2[%c1_100, %c2_101, %c0_102, %c0_103] : memref<4x9x8x512xf32, #tpu.memory_space<vmem>>, vector<1x1x8x512xf32>
    %108 = vector.shape_cast %107 : vector<1x1x8x512xf32> to vector<8x512xf32>
    %109 = arith.mulf %106, %108 : vector<8x512xf32>
    %c16_104 = arith.constant 16 : index
    %c0_105 = arith.constant 0 : index
    %110 = vector.load %arg6[%c16_104, %c0_105] : memref<144x512xf32, #tpu.memory_space<vmem>>, vector<8x512xf32>
    tpu.vector_store %arg6[%c16_104, %c0_105], %109 {strides = array<i32>} : memref<144x512xf32, #tpu.memory_space<vmem>>, vector<8x512xf32>,
    %c2_i32 = arith.constant 2 : i32
    %111 = tpu.dynamic_rotate %95 by %c2_i32 dim 1 : vector<8x512xf32>, i32 -> vector<8x512xf32>
    %c1_106 = arith.constant 1 : index
    %c3_107 = arith.constant 3 : index
    %c0_108 = arith.constant 0 : index
    %c0_109 = arith.constant 0 : index
    %112 = vector.load %arg2[%c1_106, %c3_107, %c0_108, %c0_109] : memref<4x9x8x512xf32, #tpu.memory_space<vmem>>, vector<1x1x8x512xf32>
    %113 = vector.shape_cast %112 : vector<1x1x8x512xf32> to vector<8x512xf32>
    %114 = arith.mulf %111, %113 : vector<8x512xf32>
    %c24_110 = arith.constant 24 : index
    %c0_111 = arith.constant 0 : index
    %115 = vector.load %arg6[%c24_110, %c0_111] : memref<144x512xf32, #tpu.memory_space<vmem>>, vector<8x512xf32>
    tpu.vector_store %arg6[%c24_110, %c0_111], %114 {strides = array<i32>} : memref<144x512xf32, #tpu.memory_space<vmem>>, vector<8x512xf32>,
    %c32_112 = arith.constant 32 : index
    %c0_113 = arith.constant 0 : index
    %116 = vector.load %arg6[%c32_112, %c0_113] : memref<144x512xf32, #tpu.memory_space<vmem>>, vector<8x512xf32>
    tpu.vector_store %arg6[%c32_112, %c0_113], %95 {strides = array<i32>} : memref<144x512xf32, #tpu.memory_space<vmem>>, vector<8x512xf32>,
    %c510_i32 = arith.constant 510 : i32
    %117 = tpu.dynamic_rotate %95 by %c510_i32 dim 1 : vector<8x512xf32>, i32 -> vector<8x512xf32>
    %c1_114 = arith.constant 1 : index
    %c5_115 = arith.constant 5 : index
    %c0_116 = arith.constant 0 : index
    %c0_117 = arith.constant 0 : index
    %118 = vector.load %arg2[%c1_114, %c5_115, %c0_116, %c0_117] : memref<4x9x8x512xf32, #tpu.memory_space<vmem>>, vector<1x1x8x512xf32>
    %119 = vector.shape_cast %118 : vector<1x1x8x512xf32> to vector<8x512xf32>
    %120 = arith.mulf %117, %119 : vector<8x512xf32>
    %c40_118 = arith.constant 40 : index
    %c0_119 = arith.constant 0 : index
    %121 = vector.load %arg6[%c40_118, %c0_119] : memref<144x512xf32, #tpu.memory_space<vmem>>, vector<8x512xf32>
    tpu.vector_store %arg6[%c40_118, %c0_119], %120 {strides = array<i32>} : memref<144x512xf32, #tpu.memory_space<vmem>>, vector<8x512xf32>,
    %c482_i32 = arith.constant 482 : i32
    %122 = tpu.dynamic_rotate %95 by %c482_i32 dim 1 : vector<8x512xf32>, i32 -> vector<8x512xf32>
    %c1_120 = arith.constant 1 : index
    %c6_121 = arith.constant 6 : index
    %c0_122 = arith.constant 0 : index
    %c0_123 = arith.constant 0 : index
    %123 = vector.load %arg2[%c1_120, %c6_121, %c0_122, %c0_123] : memref<4x9x8x512xf32, #tpu.memory_space<vmem>>, vector<1x1x8x512xf32>
    %124 = vector.shape_cast %123 : vector<1x1x8x512xf32> to vector<8x512xf32>
    %125 = arith.mulf %122, %124 : vector<8x512xf32>
    %c48_124 = arith.constant 48 : index
    %c0_125 = arith.constant 0 : index
    %126 = vector.load %arg6[%c48_124, %c0_125] : memref<144x512xf32, #tpu.memory_space<vmem>>, vector<8x512xf32>
    tpu.vector_store %arg6[%c48_124, %c0_125], %125 {strides = array<i32>} : memref<144x512xf32, #tpu.memory_space<vmem>>, vector<8x512xf32>,
    %c480_i32 = arith.constant 480 : i32
    %127 = tpu.dynamic_rotate %95 by %c480_i32 dim 1 : vector<8x512xf32>, i32 -> vector<8x512xf32>
    %c1_126 = arith.constant 1 : index
    %c7_127 = arith.constant 7 : index
    %c0_128 = arith.constant 0 : index
    %c0_129 = arith.constant 0 : index
    %128 = vector.load %arg2[%c1_126, %c7_127, %c0_128, %c0_129] : memref<4x9x8x512xf32, #tpu.memory_space<vmem>>, vector<1x1x8x512xf32>
    %129 = vector.shape_cast %128 : vector<1x1x8x512xf32> to vector<8x512xf32>
    %130 = arith.mulf %127, %129 : vector<8x512xf32>
    %c56_130 = arith.constant 56 : index
    %c0_131 = arith.constant 0 : index
    %131 = vector.load %arg6[%c56_130, %c0_131] : memref<144x512xf32, #tpu.memory_space<vmem>>, vector<8x512xf32>
    tpu.vector_store %arg6[%c56_130, %c0_131], %130 {strides = array<i32>} : memref<144x512xf32, #tpu.memory_space<vmem>>, vector<8x512xf32>,
    %c478_i32 = arith.constant 478 : i32
    %132 = tpu.dynamic_rotate %95 by %c478_i32 dim 1 : vector<8x512xf32>, i32 -> vector<8x512xf32>
    %c1_132 = arith.constant 1 : index
    %c8_133 = arith.constant 8 : index
    %c0_134 = arith.constant 0 : index
    %c0_135 = arith.constant 0 : index
    %133 = vector.load %arg2[%c1_132, %c8_133, %c0_134, %c0_135] : memref<4x9x8x512xf32, #tpu.memory_space<vmem>>, vector<1x1x8x512xf32>
    %134 = vector.shape_cast %133 : vector<1x1x8x512xf32> to vector<8x512xf32>
    %135 = arith.mulf %132, %134 : vector<8x512xf32>
    %c64_136 = arith.constant 64 : index
    %c0_137 = arith.constant 0 : index
    %136 = vector.load %arg6[%c64_136, %c0_137] : memref<144x512xf32, #tpu.memory_space<vmem>>, vector<8x512xf32>
    tpu.vector_store %arg6[%c64_136, %c0_137], %135 {strides = array<i32>} : memref<144x512xf32, #tpu.memory_space<vmem>>, vector<8x512xf32>,
    %137 = vector.extract_strided_slice %94 {offsets = [8, 0], sizes = [8, 512], strides = [1, 1]} : vector<16x512xf32> to vector<8x512xf32>
    %c68_i32 = arith.constant 68 : i32
    %138 = tpu.dynamic_rotate %137 by %c68_i32 dim 1 : vector<8x512xf32>, i32 -> vector<8x512xf32>
    %c3_138 = arith.constant 3 : index
    %c0_139 = arith.constant 0 : index
    %c0_140 = arith.constant 0 : index
    %c0_141 = arith.constant 0 : index
    %139 = vector.load %arg2[%c3_138, %c0_139, %c0_140, %c0_141] : memref<4x9x8x512xf32, #tpu.memory_space<vmem>>, vector<1x1x8x512xf32>
    %140 = vector.shape_cast %139 : vector<1x1x8x512xf32> to vector<8x512xf32>
    %141 = arith.mulf %138, %140 : vector<8x512xf32>
    %c72_142 = arith.constant 72 : index
    %c0_143 = arith.constant 0 : index
    %142 = vector.load %arg6[%c72_142, %c0_143] : memref<144x512xf32, #tpu.memory_space<vmem>>, vector<8x512xf32>
    tpu.vector_store %arg6[%c72_142, %c0_143], %141 {strides = array<i32>} : memref<144x512xf32, #tpu.memory_space<vmem>>, vector<8x512xf32>,
    %c64_i32 = arith.constant 64 : i32
    %143 = tpu.dynamic_rotate %137 by %c64_i32 dim 1 : vector<8x512xf32>, i32 -> vector<8x512xf32>
    %c3_144 = arith.constant 3 : index
    %c1_145 = arith.constant 1 : index
    %c0_146 = arith.constant 0 : index
    %c0_147 = arith.constant 0 : index
    %144 = vector.load %arg2[%c3_144, %c1_145, %c0_146, %c0_147] : memref<4x9x8x512xf32, #tpu.memory_space<vmem>>, vector<1x1x8x512xf32>
    %145 = vector.shape_cast %144 : vector<1x1x8x512xf32> to vector<8x512xf32>
    %146 = arith.mulf %143, %145 : vector<8x512xf32>
    %c80_148 = arith.constant 80 : index
    %c0_149 = arith.constant 0 : index
    %147 = vector.load %arg6[%c80_148, %c0_149] : memref<144x512xf32, #tpu.memory_space<vmem>>, vector<8x512xf32>
    tpu.vector_store %arg6[%c80_148, %c0_149], %146 {strides = array<i32>} : memref<144x512xf32, #tpu.memory_space<vmem>>, vector<8x512xf32>,
    %c60_i32 = arith.constant 60 : i32
    %148 = tpu.dynamic_rotate %137 by %c60_i32 dim 1 : vector<8x512xf32>, i32 -> vector<8x512xf32>
    %c3_150 = arith.constant 3 : index
    %c2_151 = arith.constant 2 : index
    %c0_152 = arith.constant 0 : index
    %c0_153 = arith.constant 0 : index
    %149 = vector.load %arg2[%c3_150, %c2_151, %c0_152, %c0_153] : memref<4x9x8x512xf32, #tpu.memory_space<vmem>>, vector<1x1x8x512xf32>
    %150 = vector.shape_cast %149 : vector<1x1x8x512xf32> to vector<8x512xf32>
    %151 = arith.mulf %148, %150 : vector<8x512xf32>
    %c88_154 = arith.constant 88 : index
    %c0_155 = arith.constant 0 : index
    %152 = vector.load %arg6[%c88_154, %c0_155] : memref<144x512xf32, #tpu.memory_space<vmem>>, vector<8x512xf32>
    tpu.vector_store %arg6[%c88_154, %c0_155], %151 {strides = array<i32>} : memref<144x512xf32, #tpu.memory_space<vmem>>, vector<8x512xf32>,
    %c4_i32 = arith.constant 4 : i32
    %153 = tpu.dynamic_rotate %137 by %c4_i32 dim 1 : vector<8x512xf32>, i32 -> vector<8x512xf32>
    %c3_156 = arith.constant 3 : index
    %c3_157 = arith.constant 3 : index
    %c0_158 = arith.constant 0 : index
    %c0_159 = arith.constant 0 : index
    %154 = vector.load %arg2[%c3_156, %c3_157, %c0_158, %c0_159] : memref<4x9x8x512xf32, #tpu.memory_space<vmem>>, vector<1x1x8x512xf32>
    %155 = vector.shape_cast %154 : vector<1x1x8x512xf32> to vector<8x512xf32>
    %156 = arith.mulf %153, %155 : vector<8x512xf32>
    %c96_160 = arith.constant 96 : index
    %c0_161 = arith.constant 0 : index
    %157 = vector.load %arg6[%c96_160, %c0_161] : memref<144x512xf32, #tpu.memory_space<vmem>>, vector<8x512xf32>
    tpu.vector_store %arg6[%c96_160, %c0_161], %156 {strides = array<i32>} : memref<144x512xf32, #tpu.memory_space<vmem>>, vector<8x512xf32>,
    %c104_162 = arith.constant 104 : index
    %c0_163 = arith.constant 0 : index
    %158 = vector.load %arg6[%c104_162, %c0_163] : memref<144x512xf32, #tpu.memory_space<vmem>>, vector<8x512xf32>
    tpu.vector_store %arg6[%c104_162, %c0_163], %137 {strides = array<i32>} : memref<144x512xf32, #tpu.memory_space<vmem>>, vector<8x512xf32>,
    %c508_i32 = arith.constant 508 : i32
    %159 = tpu.dynamic_rotate %137 by %c508_i32 dim 1 : vector<8x512xf32>, i32 -> vector<8x512xf32>
    %c3_164 = arith.constant 3 : index
    %c5_165 = arith.constant 5 : index
    %c0_166 = arith.constant 0 : index
    %c0_167 = arith.constant 0 : index
    %160 = vector.load %arg2[%c3_164, %c5_165, %c0_166, %c0_167] : memref<4x9x8x512xf32, #tpu.memory_space<vmem>>, vector<1x1x8x512xf32>
    %161 = vector.shape_cast %160 : vector<1x1x8x512xf32> to vector<8x512xf32>
    %162 = arith.mulf %159, %161 : vector<8x512xf32>
    %c112_168 = arith.constant 112 : index
    %c0_169 = arith.constant 0 : index
    %163 = vector.load %arg6[%c112_168, %c0_169] : memref<144x512xf32, #tpu.memory_space<vmem>>, vector<8x512xf32>
    tpu.vector_store %arg6[%c112_168, %c0_169], %162 {strides = array<i32>} : memref<144x512xf32, #tpu.memory_space<vmem>>, vector<8x512xf32>,
    %c452_i32 = arith.constant 452 : i32
    %164 = tpu.dynamic_rotate %137 by %c452_i32 dim 1 : vector<8x512xf32>, i32 -> vector<8x512xf32>
    %c3_170 = arith.constant 3 : index
    %c6_171 = arith.constant 6 : index
    %c0_172 = arith.constant 0 : index
    %c0_173 = arith.constant 0 : index
    %165 = vector.load %arg2[%c3_170, %c6_171, %c0_172, %c0_173] : memref<4x9x8x512xf32, #tpu.memory_space<vmem>>, vector<1x1x8x512xf32>
    %166 = vector.shape_cast %165 : vector<1x1x8x512xf32> to vector<8x512xf32>
    %167 = arith.mulf %164, %166 : vector<8x512xf32>
    %c120_174 = arith.constant 120 : index
    %c0_175 = arith.constant 0 : index
    %168 = vector.load %arg6[%c120_174, %c0_175] : memref<144x512xf32, #tpu.memory_space<vmem>>, vector<8x512xf32>
    tpu.vector_store %arg6[%c120_174, %c0_175], %167 {strides = array<i32>} : memref<144x512xf32, #tpu.memory_space<vmem>>, vector<8x512xf32>,
    %c448_i32 = arith.constant 448 : i32
    %169 = tpu.dynamic_rotate %137 by %c448_i32 dim 1 : vector<8x512xf32>, i32 -> vector<8x512xf32>
    %c3_176 = arith.constant 3 : index
    %c7_177 = arith.constant 7 : index
    %c0_178 = arith.constant 0 : index
    %c0_179 = arith.constant 0 : index
    %170 = vector.load %arg2[%c3_176, %c7_177, %c0_178, %c0_179] : memref<4x9x8x512xf32, #tpu.memory_space<vmem>>, vector<1x1x8x512xf32>
    %171 = vector.shape_cast %170 : vector<1x1x8x512xf32> to vector<8x512xf32>
    %172 = arith.mulf %169, %171 : vector<8x512xf32>
    %c128_180 = arith.constant 128 : index
    %c0_181 = arith.constant 0 : index
    %173 = vector.load %arg6[%c128_180, %c0_181] : memref<144x512xf32, #tpu.memory_space<vmem>>, vector<8x512xf32>
    tpu.vector_store %arg6[%c128_180, %c0_181], %172 {strides = array<i32>} : memref<144x512xf32, #tpu.memory_space<vmem>>, vector<8x512xf32>,
    %c444_i32 = arith.constant 444 : i32
    %174 = tpu.dynamic_rotate %137 by %c444_i32 dim 1 : vector<8x512xf32>, i32 -> vector<8x512xf32>
    %c3_182 = arith.constant 3 : index
    %c8_183 = arith.constant 8 : index
    %c0_184 = arith.constant 0 : index
    %c0_185 = arith.constant 0 : index
    %175 = vector.load %arg2[%c3_182, %c8_183, %c0_184, %c0_185] : memref<4x9x8x512xf32, #tpu.memory_space<vmem>>, vector<1x1x8x512xf32>
    %176 = vector.shape_cast %175 : vector<1x1x8x512xf32> to vector<8x512xf32>
    %177 = arith.mulf %174, %176 : vector<8x512xf32>
    %c136_186 = arith.constant 136 : index
    %c0_187 = arith.constant 0 : index
    %178 = vector.load %arg6[%c136_186, %c0_187] : memref<144x512xf32, #tpu.memory_space<vmem>>, vector<8x512xf32>
    tpu.vector_store %arg6[%c136_186, %c0_187], %177 {strides = array<i32>} : memref<144x512xf32, #tpu.memory_space<vmem>>, vector<8x512xf32>,
    %c0_188 = arith.constant 0 : index
    %c0_189 = arith.constant 0 : index
    %179 = vector.load %arg6[%c0_188, %c0_189] : memref<144x512xf32, #tpu.memory_space<vmem>>, vector<144x512xf32>
    %c1_190 = arith.constant 1 : index
    %c0_191 = arith.constant 0 : index
    %c0_192 = arith.constant 0 : index
    %180 = vector.load %arg3[%c1_190, %c0_191, %c0_192] : memref<3x16x144xf32, #tpu.memory_space<vmem>>, vector<1x16x144xf32>
    %181 = vector.shape_cast %180 : vector<1x16x144xf32> to vector<16x144xf32>
    %cst_193 = arith.constant dense<0.000000e+00> : vector<16x512xf32>
    %182 = tpu.matmul %181, %179, %cst_193 {dimension_numbers = #tpu.dot_dimension_numbers<[1], [0], [0], [1], [0, 0, 1, 1], [], []>} : vector<16x144xf32>, vector<144x512xf32>, vector<16x512xf32> -> vector<16x512xf32>
    %c1_194 = arith.constant 1 : index
    %c0_195 = arith.constant 0 : index
    %c0_196 = arith.constant 0 : index
    %183 = vector.load %arg4[%c1_194, %c0_195, %c0_196] : memref<3x16x1xf32, #tpu.memory_space<vmem>>, vector<1x16x1xf32>
    %184 = vector.shape_cast %183 : vector<1x16x1xf32> to vector<16x1xf32>
    %185 = vector.broadcast %184 : vector<16x1xf32> to vector<16x512xf32>
    %186 = arith.addf %182, %185 : vector<16x512xf32>
    %cst_197 = arith.constant 2.000000e-01 : f32
    %187 = vector.broadcast %cst_197 : f32 to vector<16x512xf32>
    %188 = arith.mulf %187, %186 : vector<16x512xf32>
    %189 = arith.maximumf %186, %188 : vector<16x512xf32>
    %190 = vector.extract_strided_slice %189 {offsets = [0, 0], sizes = [8, 512], strides = [1, 1]} : vector<16x512xf32> to vector<8x512xf32>
    %c17_i32_198 = arith.constant 17 : i32
    %191 = tpu.dynamic_rotate %190 by %c17_i32_198 dim 1 : vector<8x512xf32>, i32 -> vector<8x512xf32>
    %c0_199 = arith.constant 0 : index
    %c0_200 = arith.constant 0 : index
    %c0_201 = arith.constant 0 : index
    %c0_202 = arith.constant 0 : index
    %192 = vector.load %arg2[%c0_199, %c0_200, %c0_201, %c0_202] : memref<4x9x8x512xf32, #tpu.memory_space<vmem>>, vector<1x1x8x512xf32>
    %193 = vector.shape_cast %192 : vector<1x1x8x512xf32> to vector<8x512xf32>
    %194 = arith.mulf %191, %193 : vector<8x512xf32>
    %c0_203 = arith.constant 0 : index
    %c0_204 = arith.constant 0 : index
    %195 = vector.load %arg6[%c0_203, %c0_204] : memref<144x512xf32, #tpu.memory_space<vmem>>, vector<8x512xf32>
    tpu.vector_store %arg6[%c0_203, %c0_204], %194 {strides = array<i32>} : memref<144x512xf32, #tpu.memory_space<vmem>>, vector<8x512xf32>,
    %c16_i32_205 = arith.constant 16 : i32
    %196 = tpu.dynamic_rotate %190 by %c16_i32_205 dim 1 : vector<8x512xf32>, i32 -> vector<8x512xf32>
    %c0_206 = arith.constant 0 : index
    %c1_207 = arith.constant 1 : index
    %c0_208 = arith.constant 0 : index
    %c0_209 = arith.constant 0 : index
    %197 = vector.load %arg2[%c0_206, %c1_207, %c0_208, %c0_209] : memref<4x9x8x512xf32, #tpu.memory_space<vmem>>, vector<1x1x8x512xf32>
    %198 = vector.shape_cast %197 : vector<1x1x8x512xf32> to vector<8x512xf32>
    %199 = arith.mulf %196, %198 : vector<8x512xf32>
    %c16_210 = arith.constant 16 : index
    %c0_211 = arith.constant 0 : index
    %200 = vector.load %arg6[%c16_210, %c0_211] : memref<144x512xf32, #tpu.memory_space<vmem>>, vector<8x512xf32>
    tpu.vector_store %arg6[%c16_210, %c0_211], %199 {strides = array<i32>} : memref<144x512xf32, #tpu.memory_space<vmem>>, vector<8x512xf32>,
    %c15_i32_212 = arith.constant 15 : i32
    %201 = tpu.dynamic_rotate %190 by %c15_i32_212 dim 1 : vector<8x512xf32>, i32 -> vector<8x512xf32>
    %c0_213 = arith.constant 0 : index
    %c2_214 = arith.constant 2 : index
    %c0_215 = arith.constant 0 : index
    %c0_216 = arith.constant 0 : index
    %202 = vector.load %arg2[%c0_213, %c2_214, %c0_215, %c0_216] : memref<4x9x8x512xf32, #tpu.memory_space<vmem>>, vector<1x1x8x512xf32>
    %203 = vector.shape_cast %202 : vector<1x1x8x512xf32> to vector<8x512xf32>
    %204 = arith.mulf %201, %203 : vector<8x512xf32>
    %c32_217 = arith.constant 32 : index
    %c0_218 = arith.constant 0 : index
    %205 = vector.load %arg6[%c32_217, %c0_218] : memref<144x512xf32, #tpu.memory_space<vmem>>, vector<8x512xf32>
    tpu.vector_store %arg6[%c32_217, %c0_218], %204 {strides = array<i32>} : memref<144x512xf32, #tpu.memory_space<vmem>>, vector<8x512xf32>,
    %c1_i32_219 = arith.constant 1 : i32
    %206 = tpu.dynamic_rotate %190 by %c1_i32_219 dim 1 : vector<8x512xf32>, i32 -> vector<8x512xf32>
    %c0_220 = arith.constant 0 : index
    %c3_221 = arith.constant 3 : index
    %c0_222 = arith.constant 0 : index
    %c0_223 = arith.constant 0 : index
    %207 = vector.load %arg2[%c0_220, %c3_221, %c0_222, %c0_223] : memref<4x9x8x512xf32, #tpu.memory_space<vmem>>, vector<1x1x8x512xf32>
    %208 = vector.shape_cast %207 : vector<1x1x8x512xf32> to vector<8x512xf32>
    %209 = arith.mulf %206, %208 : vector<8x512xf32>
    %c48_224 = arith.constant 48 : index
    %c0_225 = arith.constant 0 : index
    %210 = vector.load %arg6[%c48_224, %c0_225] : memref<144x512xf32, #tpu.memory_space<vmem>>, vector<8x512xf32>
    tpu.vector_store %arg6[%c48_224, %c0_225], %209 {strides = array<i32>} : memref<144x512xf32, #tpu.memory_space<vmem>>, vector<8x512xf32>,
    %c64_226 = arith.constant 64 : index
    %c0_227 = arith.constant 0 : index
    %211 = vector.load %arg6[%c64_226, %c0_227] : memref<144x512xf32, #tpu.memory_space<vmem>>, vector<8x512xf32>
    tpu.vector_store %arg6[%c64_226, %c0_227], %190 {strides = array<i32>} : memref<144x512xf32, #tpu.memory_space<vmem>>, vector<8x512xf32>,
    %c511_i32_228 = arith.constant 511 : i32
    %212 = tpu.dynamic_rotate %190 by %c511_i32_228 dim 1 : vector<8x512xf32>, i32 -> vector<8x512xf32>
    %c0_229 = arith.constant 0 : index
    %c5_230 = arith.constant 5 : index
    %c0_231 = arith.constant 0 : index
    %c0_232 = arith.constant 0 : index
    %213 = vector.load %arg2[%c0_229, %c5_230, %c0_231, %c0_232] : memref<4x9x8x512xf32, #tpu.memory_space<vmem>>, vector<1x1x8x512xf32>
    %214 = vector.shape_cast %213 : vector<1x1x8x512xf32> to vector<8x512xf32>
    %215 = arith.mulf %212, %214 : vector<8x512xf32>
    %c80_233 = arith.constant 80 : index
    %c0_234 = arith.constant 0 : index
    %216 = vector.load %arg6[%c80_233, %c0_234] : memref<144x512xf32, #tpu.memory_space<vmem>>, vector<8x512xf32>
    tpu.vector_store %arg6[%c80_233, %c0_234], %215 {strides = array<i32>} : memref<144x512xf32, #tpu.memory_space<vmem>>, vector<8x512xf32>,
    %c497_i32_235 = arith.constant 497 : i32
    %217 = tpu.dynamic_rotate %190 by %c497_i32_235 dim 1 : vector<8x512xf32>, i32 -> vector<8x512xf32>
    %c0_236 = arith.constant 0 : index
    %c6_237 = arith.constant 6 : index
    %c0_238 = arith.constant 0 : index
    %c0_239 = arith.constant 0 : index
    %218 = vector.load %arg2[%c0_236, %c6_237, %c0_238, %c0_239] : memref<4x9x8x512xf32, #tpu.memory_space<vmem>>, vector<1x1x8x512xf32>
    %219 = vector.shape_cast %218 : vector<1x1x8x512xf32> to vector<8x512xf32>
    %220 = arith.mulf %217, %219 : vector<8x512xf32>
    %c96_240 = arith.constant 96 : index
    %c0_241 = arith.constant 0 : index
    %221 = vector.load %arg6[%c96_240, %c0_241] : memref<144x512xf32, #tpu.memory_space<vmem>>, vector<8x512xf32>
    tpu.vector_store %arg6[%c96_240, %c0_241], %220 {strides = array<i32>} : memref<144x512xf32, #tpu.memory_space<vmem>>, vector<8x512xf32>,
    %c496_i32_242 = arith.constant 496 : i32
    %222 = tpu.dynamic_rotate %190 by %c496_i32_242 dim 1 : vector<8x512xf32>, i32 -> vector<8x512xf32>
    %c0_243 = arith.constant 0 : index
    %c7_244 = arith.constant 7 : index
    %c0_245 = arith.constant 0 : index
    %c0_246 = arith.constant 0 : index
    %223 = vector.load %arg2[%c0_243, %c7_244, %c0_245, %c0_246] : memref<4x9x8x512xf32, #tpu.memory_space<vmem>>, vector<1x1x8x512xf32>
    %224 = vector.shape_cast %223 : vector<1x1x8x512xf32> to vector<8x512xf32>
    %225 = arith.mulf %222, %224 : vector<8x512xf32>
    %c112_247 = arith.constant 112 : index
    %c0_248 = arith.constant 0 : index
    %226 = vector.load %arg6[%c112_247, %c0_248] : memref<144x512xf32, #tpu.memory_space<vmem>>, vector<8x512xf32>
    tpu.vector_store %arg6[%c112_247, %c0_248], %225 {strides = array<i32>} : memref<144x512xf32, #tpu.memory_space<vmem>>, vector<8x512xf32>,
    %c495_i32_249 = arith.constant 495 : i32
    %227 = tpu.dynamic_rotate %190 by %c495_i32_249 dim 1 : vector<8x512xf32>, i32 -> vector<8x512xf32>
    %c0_250 = arith.constant 0 : index
    %c8_251 = arith.constant 8 : index
    %c0_252 = arith.constant 0 : index
    %c0_253 = arith.constant 0 : index
    %228 = vector.load %arg2[%c0_250, %c8_251, %c0_252, %c0_253] : memref<4x9x8x512xf32, #tpu.memory_space<vmem>>, vector<1x1x8x512xf32>
    %229 = vector.shape_cast %228 : vector<1x1x8x512xf32> to vector<8x512xf32>
    %230 = arith.mulf %227, %229 : vector<8x512xf32>
    %c128_254 = arith.constant 128 : index
    %c0_255 = arith.constant 0 : index
    %231 = vector.load %arg6[%c128_254, %c0_255] : memref<144x512xf32, #tpu.memory_space<vmem>>, vector<8x512xf32>
    tpu.vector_store %arg6[%c128_254, %c0_255], %230 {strides = array<i32>} : memref<144x512xf32, #tpu.memory_space<vmem>>, vector<8x512xf32>,
    %232 = vector.extract_strided_slice %189 {offsets = [8, 0], sizes = [8, 512], strides = [1, 1]} : vector<16x512xf32> to vector<8x512xf32>
    %c17_i32_256 = arith.constant 17 : i32
    %233 = tpu.dynamic_rotate %232 by %c17_i32_256 dim 1 : vector<8x512xf32>, i32 -> vector<8x512xf32>
    %c0_257 = arith.constant 0 : index
    %c0_258 = arith.constant 0 : index
    %c0_259 = arith.constant 0 : index
    %c0_260 = arith.constant 0 : index
    %234 = vector.load %arg2[%c0_257, %c0_258, %c0_259, %c0_260] : memref<4x9x8x512xf32, #tpu.memory_space<vmem>>, vector<1x1x8x512xf32>
    %235 = vector.shape_cast %234 : vector<1x1x8x512xf32> to vector<8x512xf32>
    %236 = arith.mulf %233, %235 : vector<8x512xf32>
    %c8_261 = arith.constant 8 : index
    %c0_262 = arith.constant 0 : index
    %237 = vector.load %arg6[%c8_261, %c0_262] : memref<144x512xf32, #tpu.memory_space<vmem>>, vector<8x512xf32>
    tpu.vector_store %arg6[%c8_261, %c0_262], %236 {strides = array<i32>} : memref<144x512xf32, #tpu.memory_space<vmem>>, vector<8x512xf32>,
    %c16_i32_263 = arith.constant 16 : i32
    %238 = tpu.dynamic_rotate %232 by %c16_i32_263 dim 1 : vector<8x512xf32>, i32 -> vector<8x512xf32>
    %c0_264 = arith.constant 0 : index
    %c1_265 = arith.constant 1 : index
    %c0_266 = arith.constant 0 : index
    %c0_267 = arith.constant 0 : index
    %239 = vector.load %arg2[%c0_264, %c1_265, %c0_266, %c0_267] : memref<4x9x8x512xf32, #tpu.memory_space<vmem>>, vector<1x1x8x512xf32>
    %240 = vector.shape_cast %239 : vector<1x1x8x512xf32> to vector<8x512xf32>
    %241 = arith.mulf %238, %240 : vector<8x512xf32>
    %c24_268 = arith.constant 24 : index
    %c0_269 = arith.constant 0 : index
    %242 = vector.load %arg6[%c24_268, %c0_269] : memref<144x512xf32, #tpu.memory_space<vmem>>, vector<8x512xf32>
    tpu.vector_store %arg6[%c24_268, %c0_269], %241 {strides = array<i32>} : memref<144x512xf32, #tpu.memory_space<vmem>>, vector<8x512xf32>,
    %c15_i32_270 = arith.constant 15 : i32
    %243 = tpu.dynamic_rotate %232 by %c15_i32_270 dim 1 : vector<8x512xf32>, i32 -> vector<8x512xf32>
    %c0_271 = arith.constant 0 : index
    %c2_272 = arith.constant 2 : index
    %c0_273 = arith.constant 0 : index
    %c0_274 = arith.constant 0 : index
    %244 = vector.load %arg2[%c0_271, %c2_272, %c0_273, %c0_274] : memref<4x9x8x512xf32, #tpu.memory_space<vmem>>, vector<1x1x8x512xf32>
    %245 = vector.shape_cast %244 : vector<1x1x8x512xf32> to vector<8x512xf32>
    %246 = arith.mulf %243, %245 : vector<8x512xf32>
    %c40_275 = arith.constant 40 : index
    %c0_276 = arith.constant 0 : index
    %247 = vector.load %arg6[%c40_275, %c0_276] : memref<144x512xf32, #tpu.memory_space<vmem>>, vector<8x512xf32>
    tpu.vector_store %arg6[%c40_275, %c0_276], %246 {strides = array<i32>} : memref<144x512xf32, #tpu.memory_space<vmem>>, vector<8x512xf32>,
    %c1_i32_277 = arith.constant 1 : i32
    %248 = tpu.dynamic_rotate %232 by %c1_i32_277 dim 1 : vector<8x512xf32>, i32 -> vector<8x512xf32>
    %c0_278 = arith.constant 0 : index
    %c3_279 = arith.constant 3 : index
    %c0_280 = arith.constant 0 : index
    %c0_281 = arith.constant 0 : index
    %249 = vector.load %arg2[%c0_278, %c3_279, %c0_280, %c0_281] : memref<4x9x8x512xf32, #tpu.memory_space<vmem>>, vector<1x1x8x512xf32>
    %250 = vector.shape_cast %249 : vector<1x1x8x512xf32> to vector<8x512xf32>
    %251 = arith.mulf %248, %250 : vector<8x512xf32>
    %c56_282 = arith.constant 56 : index
    %c0_283 = arith.constant 0 : index
    %252 = vector.load %arg6[%c56_282, %c0_283] : memref<144x512xf32, #tpu.memory_space<vmem>>, vector<8x512xf32>
    tpu.vector_store %arg6[%c56_282, %c0_283], %251 {strides = array<i32>} : memref<144x512xf32, #tpu.memory_space<vmem>>, vector<8x512xf32>,
    %c72_284 = arith.constant 72 : index
    %c0_285 = arith.constant 0 : index
    %253 = vector.load %arg6[%c72_284, %c0_285] : memref<144x512xf32, #tpu.memory_space<vmem>>, vector<8x512xf32>
    tpu.vector_store %arg6[%c72_284, %c0_285], %232 {strides = array<i32>} : memref<144x512xf32, #tpu.memory_space<vmem>>, vector<8x512xf32>,
    %c511_i32_286 = arith.constant 511 : i32
    %254 = tpu.dynamic_rotate %232 by %c511_i32_286 dim 1 : vector<8x512xf32>, i32 -> vector<8x512xf32>
    %c0_287 = arith.constant 0 : index
    %c5_288 = arith.constant 5 : index
    %c0_289 = arith.constant 0 : index
    %c0_290 = arith.constant 0 : index
    %255 = vector.load %arg2[%c0_287, %c5_288, %c0_289, %c0_290] : memref<4x9x8x512xf32, #tpu.memory_space<vmem>>, vector<1x1x8x512xf32>
    %256 = vector.shape_cast %255 : vector<1x1x8x512xf32> to vector<8x512xf32>
    %257 = arith.mulf %254, %256 : vector<8x512xf32>
    %c88_291 = arith.constant 88 : index
    %c0_292 = arith.constant 0 : index
    %258 = vector.load %arg6[%c88_291, %c0_292] : memref<144x512xf32, #tpu.memory_space<vmem>>, vector<8x512xf32>
    tpu.vector_store %arg6[%c88_291, %c0_292], %257 {strides = array<i32>} : memref<144x512xf32, #tpu.memory_space<vmem>>, vector<8x512xf32>,
    %c497_i32_293 = arith.constant 497 : i32
    %259 = tpu.dynamic_rotate %232 by %c497_i32_293 dim 1 : vector<8x512xf32>, i32 -> vector<8x512xf32>
    %c0_294 = arith.constant 0 : index
    %c6_295 = arith.constant 6 : index
    %c0_296 = arith.constant 0 : index
    %c0_297 = arith.constant 0 : index
    %260 = vector.load %arg2[%c0_294, %c6_295, %c0_296, %c0_297] : memref<4x9x8x512xf32, #tpu.memory_space<vmem>>, vector<1x1x8x512xf32>
    %261 = vector.shape_cast %260 : vector<1x1x8x512xf32> to vector<8x512xf32>
    %262 = arith.mulf %259, %261 : vector<8x512xf32>
    %c104_298 = arith.constant 104 : index
    %c0_299 = arith.constant 0 : index
    %263 = vector.load %arg6[%c104_298, %c0_299] : memref<144x512xf32, #tpu.memory_space<vmem>>, vector<8x512xf32>
    tpu.vector_store %arg6[%c104_298, %c0_299], %262 {strides = array<i32>} : memref<144x512xf32, #tpu.memory_space<vmem>>, vector<8x512xf32>,
    %c496_i32_300 = arith.constant 496 : i32
    %264 = tpu.dynamic_rotate %232 by %c496_i32_300 dim 1 : vector<8x512xf32>, i32 -> vector<8x512xf32>
    %c0_301 = arith.constant 0 : index
    %c7_302 = arith.constant 7 : index
    %c0_303 = arith.constant 0 : index
    %c0_304 = arith.constant 0 : index
    %265 = vector.load %arg2[%c0_301, %c7_302, %c0_303, %c0_304] : memref<4x9x8x512xf32, #tpu.memory_space<vmem>>, vector<1x1x8x512xf32>
    %266 = vector.shape_cast %265 : vector<1x1x8x512xf32> to vector<8x512xf32>
    %267 = arith.mulf %264, %266 : vector<8x512xf32>
    %c120_305 = arith.constant 120 : index
    %c0_306 = arith.constant 0 : index
    %268 = vector.load %arg6[%c120_305, %c0_306] : memref<144x512xf32, #tpu.memory_space<vmem>>, vector<8x512xf32>
    tpu.vector_store %arg6[%c120_305, %c0_306], %267 {strides = array<i32>} : memref<144x512xf32, #tpu.memory_space<vmem>>, vector<8x512xf32>,
    %c495_i32_307 = arith.constant 495 : i32
    %269 = tpu.dynamic_rotate %232 by %c495_i32_307 dim 1 : vector<8x512xf32>, i32 -> vector<8x512xf32>
    %c0_308 = arith.constant 0 : index
    %c8_309 = arith.constant 8 : index
    %c0_310 = arith.constant 0 : index
    %c0_311 = arith.constant 0 : index
    %270 = vector.load %arg2[%c0_308, %c8_309, %c0_310, %c0_311] : memref<4x9x8x512xf32, #tpu.memory_space<vmem>>, vector<1x1x8x512xf32>
    %271 = vector.shape_cast %270 : vector<1x1x8x512xf32> to vector<8x512xf32>
    %272 = arith.mulf %269, %271 : vector<8x512xf32>
    %c136_312 = arith.constant 136 : index
    %c0_313 = arith.constant 0 : index
    %273 = vector.load %arg6[%c136_312, %c0_313] : memref<144x512xf32, #tpu.memory_space<vmem>>, vector<8x512xf32>
    tpu.vector_store %arg6[%c136_312, %c0_313], %272 {strides = array<i32>} : memref<144x512xf32, #tpu.memory_space<vmem>>, vector<8x512xf32>,
    %c0_314 = arith.constant 0 : index
    %c0_315 = arith.constant 0 : index
    %274 = vector.load %arg6[%c0_314, %c0_315] : memref<144x512xf32, #tpu.memory_space<vmem>>, vector<144x512xf32>
    %c2_316 = arith.constant 2 : index
    %c0_317 = arith.constant 0 : index
    %c0_318 = arith.constant 0 : index
    %275 = vector.load %arg3[%c2_316, %c0_317, %c0_318] : memref<3x16x144xf32, #tpu.memory_space<vmem>>, vector<1x16x144xf32>
    %276 = vector.shape_cast %275 : vector<1x16x144xf32> to vector<16x144xf32>
    %cst_319 = arith.constant dense<0.000000e+00> : vector<16x512xf32>
    %277 = tpu.matmul %276, %274, %cst_319 {dimension_numbers = #tpu.dot_dimension_numbers<[1], [0], [0], [1], [0, 0, 1, 1], [], []>} : vector<16x144xf32>, vector<144x512xf32>, vector<16x512xf32> -> vector<16x512xf32>
    %c2_320 = arith.constant 2 : index
    %c0_321 = arith.constant 0 : index
    %c0_322 = arith.constant 0 : index
    %278 = vector.load %arg4[%c2_320, %c0_321, %c0_322] : memref<3x16x1xf32, #tpu.memory_space<vmem>>, vector<1x16x1xf32>
    %279 = vector.shape_cast %278 : vector<1x16x1xf32> to vector<16x1xf32>
    %280 = vector.broadcast %279 : vector<16x1xf32> to vector<16x512xf32>
    %281 = arith.addf %277, %280 : vector<16x512xf32>
    %cst_323 = arith.constant 2.000000e-01 : f32
    %282 = vector.broadcast %cst_323 : f32 to vector<16x512xf32>
    %283 = arith.mulf %282, %281 : vector<16x512xf32>
    %284 = arith.maximumf %281, %283 : vector<16x512xf32>
    %285 = vector.extract_strided_slice %284 {offsets = [0, 0], sizes = [8, 512], strides = [1, 1]} : vector<16x512xf32> to vector<8x512xf32>
    %286 = arith.addf %285, %1 : vector<8x512xf32>
    %c0_324 = arith.constant 0 : index
    %c0_325 = arith.constant 0 : index
    %c0_326 = arith.constant 0 : index
    %287 = vector.load %arg5[%c0_324, %c0_325, %c0_326] : memref<1x8x512xf32, #tpu.memory_space<vmem>>, vector<1x8x512xf32>
    %288 = vector.shape_cast %287 : vector<1x8x512xf32> to vector<8x512xf32>
    %289 = vector.shape_cast %286 : vector<8x512xf32> to vector<1x8x512xf32>
    tpu.vector_store %arg5[%c0_324, %c0_325, %c0_326], %289 {strides = array<i32>} : memref<1x8x512xf32, #tpu.memory_space<vmem>>, vector<1x8x512xf32>,
    return
  }
  func.func @transform_0(%arg0: i32) -> (i32, i32, i32) {
    %c0_i32 = arith.constant 0 : i32
    %c0_i32_0 = arith.constant 0 : i32
    %c0_i32_1 = arith.constant 0 : i32
    return %arg0, %c0_i32, %c0_i32_0 : i32, i32, i32
  }
  func.func @transform_1(%arg0: i32) -> (i32, i32, i32, i32) {
    %c0_i32 = arith.constant 0 : i32
    %c0_i32_0 = arith.constant 0 : i32
    %c0_i32_1 = arith.constant 0 : i32
    %c0_i32_2 = arith.constant 0 : i32
    %c0_i32_3 = arith.constant 0 : i32
    return %c0_i32, %c0_i32_0, %c0_i32_1, %c0_i32_2 : i32, i32, i32, i32
  }
  func.func @transform_2(%arg0: i32) -> (i32, i32, i32) {
    %c0_i32 = arith.constant 0 : i32
    %c0_i32_0 = arith.constant 0 : i32
    %c0_i32_1 = arith.constant 0 : i32
    %c0_i32_2 = arith.constant 0 : i32
    return %c0_i32, %c0_i32_0, %c0_i32_1 : i32, i32, i32
  }
  func.func @transform_3(%arg0: i32) -> (i32, i32, i32) {
    %c0_i32 = arith.constant 0 : i32
    %c0_i32_0 = arith.constant 0 : i32
    %c0_i32_1 = arith.constant 0 : i32
    %c0_i32_2 = arith.constant 0 : i32
    return %c0_i32, %c0_i32_0, %c0_i32_1 : i32, i32, i32
  }
  func.func @transform_4(%arg0: i32) -> (i32, i32, i32) {
    %c0_i32 = arith.constant 0 : i32
    %c0_i32_0 = arith.constant 0 : i32
    %c0_i32_1 = arith.constant 0 : i32
    return %arg0, %c0_i32, %c0_i32_0 : i32, i32, i32
  }
}

</mosaic_0001>

<bundles_post_ra>
// kernel: merge_run_dual.1
= control target key start
LH: loop header
LB: loop body
LE: loop exit
PB: predicated region body
PF: predicated region fallthrough
CT: control target
= control target key end

     0   :  { %s2259_s19 = smov 83   ;;  %s2260_s24 = smov 125   ;;  %v29_v4 = vlaneseq  ;;  %vm534_vm0 = vcmask 130048   ;;  %v2275_v23 = vmov 0   ;;  %s3861_s0 = inlined_call_operand.vmem [shape: f32[1,8,512], index: 0, kind: input, shape index: {}]   ;;  %s3862_s1 = inlined_call_operand.vmem [shape: f32[4,9,8,512], index: 1, kind: input, shape index: {}]   ;;  %s3863_s2 = inlined_call_operand.vmem [shape: f32[3,16,144], index: 2, kind: input, shape index: {}]   ;;  %s3864_s3 = inlined_call_operand.vmem [shape: f32[3,16,1], index: 3, kind: input, shape index: {}]   ;;  %s3865_s4 = inlined_call_operand.vmem [shape: f32[1,8,512], index: 4, kind: output, shape index: {}]  }
   0x1   :  { %v2317_v0 = vld [vmem:[%s3861_s0 + $0x10] sm:$0xff]  ;;  %v2322_v1 = vld [vmem:[%s3861_s0] sm:$0xff]  ;;  %v2329_v2 = vld [vmem:[%s3861_s0 + $0x18] sm:$0xff]  ;;  %s2261_s25 = smov 3   ;;  %s2262_s26 = smov 45   ;;  %2254 = vset.pattern.permute.xlu1 %v2275_v23  ;;  %2253 = vset.pattern.permute.xlu0 %v2275_v23 }
   0x2   :  { %372 = vrot.lane.b32.xlu1 %v2317_v0, %s2259_s19  ;;  %368 = vrot.lane.b32.xlu0 %v2322_v1, %s2259_s19  ;;  %v2334_v3 = vld [vmem:[%s3861_s0 + $0x8] sm:$0xff]  ;;  %s2263_s27 = smov 48   ;;  %s2264_s28 = smov 51   ;;  %v2424_v5 = vand.u32 127, %v29_v4  ;;  %v2070_v10 = vld [vmem:[%s3862_s1 + $0x318] sm:$0xff] }
   0x3   :  { %s2265_s29 = smov 111   ;;  %s2266_s30 = smov 112   ;;  %v519_v8 = vld [vmem:[%s3863_s2 + $0x8] sm:$0xff]  ;;  %v2067_v11 = vld [vmem:[%s3862_s1 + $0x300] sm:$0xff]  ;;  %v2069_v14 = vld [vmem:[%s3862_s1 + $0x310] sm:$0xff] }
   0x4   :  { %s2267_s5 = smov 113   ;;  %s2268_s6 = smov 127   ;;  %vm376_vm1 = vcmp.lt.s32.totalorder %v2424_v5, 83  ;;  %v2068_v9 = vld [vmem:[%s3862_s1 + $0x308] sm:$0xff]  ;;  %2079 = vmatprep.mubr.msk.f32.mxu0 %vm534_vm0, %v519_v8  ;;  %2081 = vmatprep.mubr.msk.f32.mxu1 %vm534_vm0, %v519_v8  ;;  %vm350_vm2 = vcmp.lt.s32.totalorder %v2424_v5, 125  ;;  %v2066_v27 = vld [vmem:[%s3862_s1 + $0x2f8] sm:$0xff] }
   0x5   :  { %s2269_s7 = smov 1   ;;  %s2270_s8 = smov 15   ;;  %v2064_v26 = vld [vmem:[%s3862_s1 + $0x2e8] sm:$0xff]  ;;  %v2065_v28 = vld [vmem:[%s3862_s1 + $0x2f0] sm:$0xff]  ;;  %v522_v29 = vld [vmem:[%s3864_s3] sm:$0xff]  ;;  %vm320_vm3 = vcmp.lt.s32.totalorder %v2424_v5, 3 }
   0x6   :  { %374 = vrot.lane.b32.xlu1 %v2329_v2, %s2259_s19  ;;  %370 = vrot.lane.b32.xlu0 %v2334_v3, %s2259_s19  ;;  %s2271_s9 = smov 16   ;;  %s2272_s10 = smov 17   ;;  %v523_v30 = vld [vmem:[%s3864_s3 + $0x8] sm:$0xff]  ;;  %v2063_v34 = vld [vmem:[%s3862_s1 + $0x2e0] sm:$0xff]  ;;  %vm294_vm4 = vcmp.lt.s32.totalorder %v2424_v5, 45  ;;  %vm268_vm5 = vcmp.lt.s32.totalorder %v2424_v5, 48 }
   0x7   :  { %s2273_s11 = smov 77   ;;  %s2274_s22 = smov 80   ;;  %v2060_v42 = vld [vmem:[%s3862_s1 + $0x2a8] sm:$0xff]  ;;  %v2059_v47 = vld [vmem:[%s3862_s1 + $0x2a0] sm:$0xff]  ;;  %v2062_v48 = vld [vmem:[%s3862_s1 + $0x2b8] sm:$0xff]  ;;  %vm242_vm6 = vcmp.lt.s32.totalorder %v2424_v5, 51 }
   0x8   :  { %v2061_v49 = vld [vmem:[%s3862_s1 + $0x2b0] sm:$0xff]  ;;  %v2056_v58 = vld [vmem:[%s3862_s1 + $0x288] sm:$0xff]  ;;  %v2055_v63 = vld [vmem:[%s3862_s1 + $0x280] sm:$0xff]  ;;  %vm216_vm7 = vcmp.lt.s32.totalorder %v2424_v5, 111  ;;  %vm190_vm8 = vcmp.lt.s32.totalorder %v2424_v5, 112  ;;  %vm164_vm9 = vcmp.lt.s32.totalorder %v2424_v5, 113 }
   0x9   :  { %v2058_v4 = vld [vmem:[%s3862_s1 + $0x298] sm:$0xff]  ;;  %vm138_vm10 = vcmp.lt.s32.totalorder %v2424_v5, 127  ;;  %vm108_vm11 = vcmp.lt.s32.totalorder %v2424_v5, 1  ;;  %vm82_vm12 = vcmp.lt.s32.totalorder %v2424_v5, 15  ;;  %vm56_vm13 = vcmp.lt.s32.totalorder %v2424_v5, 16  ;;  %s2279_s12 = smov 126  }
   0xa   :  { %344 = vrot.lane.b32.xlu1 %v2334_v3, %s2260_s24  ;;  %342 = vrot.lane.b32.xlu0 %v2322_v1, %s2260_s24  ;;  %vm31_vm14 = vcmp.lt.s32.totalorder %v2424_v5, 17  ;;  %vm428_vm15 = vcmp.lt.s32.totalorder %v2424_v5, 77  ;;  %s2280_s13 = smov 2   ;;  %s2281_s14 = smov 30  }
   0xb   :  { %s2282_s15 = smov 68   ;;  %s2283_s16 = smov 124  }
   0xc   :  { %s2284_s17 = smov 4   ;;  %s2285_s18 = smov 60  }
   0xd   :  { %s2286_s19 = smov 64   ;;  %s2287_s20 = smov 32  }
   0xe   :  { %348 = vrot.lane.b32.xlu1 %v2329_v2, %s2260_s24  ;;  %346 = vrot.lane.b32.xlu0 %v2317_v0, %s2260_s24  ;;  %s2288_s21 = smov 34  }
  0x12   :  { %314 = vrot.lane.b32.xlu1 %v2334_v3, %s2261_s25  ;;  %312 = vrot.lane.b32.xlu0 %v2322_v1, %s2261_s25 }
  0x16   :  { %318 = vrot.lane.b32.xlu1 %v2329_v2, %s2261_s25  ;;  %316 = vrot.lane.b32.xlu0 %v2317_v0, %s2261_s25 }
  0x1a   :  { %288 = vrot.lane.b32.xlu1 %v2334_v3, %s2262_s26  ;;  %286 = vrot.lane.b32.xlu0 %v2322_v1, %s2262_s26 }
  0x1e   :  { %292 = vrot.lane.b32.xlu1 %v2329_v2, %s2262_s26  ;;  %290 = vrot.lane.b32.xlu0 %v2317_v0, %s2262_s26 }
  0x22   :  { %262 = vrot.lane.b32.xlu1 %v2334_v3, %s2263_s27  ;;  %260 = vrot.lane.b32.xlu0 %v2322_v1, %s2263_s27 }
  0x26   :  { %266 = vrot.lane.b32.xlu1 %v2329_v2, %s2263_s27  ;;  %264 = vrot.lane.b32.xlu0 %v2317_v0, %s2263_s27  ;;  %s2276_s27 = smov 94  }
  0x2a   :  { %236 = vrot.lane.b32.xlu1 %v2334_v3, %s2264_s28  ;;  %234 = vrot.lane.b32.xlu0 %v2322_v1, %s2264_s28 }
  0x2e   :  { %240 = vrot.lane.b32.xlu1 %v2329_v2, %s2264_s28  ;;  %238 = vrot.lane.b32.xlu0 %v2317_v0, %s2264_s28  ;;  %s2277_s28 = smov 96  }
  0x32   :  { %210 = vrot.lane.b32.xlu1 %v2334_v3, %s2265_s29  ;;  %208 = vrot.lane.b32.xlu0 %v2322_v1, %s2265_s29 }
  0x36   :  { %214 = vrot.lane.b32.xlu1 %v2329_v2, %s2265_s29  ;;  %212 = vrot.lane.b32.xlu0 %v2317_v0, %s2265_s29 }
  0x3a   :  { %184 = vrot.lane.b32.xlu1 %v2334_v3, %s2266_s30  ;;  %182 = vrot.lane.b32.xlu0 %v2322_v1, %s2266_s30 }
  0x3e   :  { %188 = vrot.lane.b32.xlu1 %v2329_v2, %s2266_s30  ;;  %186 = vrot.lane.b32.xlu0 %v2317_v0, %s2266_s30 }
  0x42   :  { %158 = vrot.lane.b32.xlu1 %v2334_v3, %s2267_s5  ;;  %156 = vrot.lane.b32.xlu0 %v2322_v1, %s2267_s5 }
  0x46   :  { %162 = vrot.lane.b32.xlu1 %v2329_v2, %s2267_s5  ;;  %160 = vrot.lane.b32.xlu0 %v2317_v0, %s2267_s5 }
  0x4a   :  { %132 = vrot.lane.b32.xlu1 %v2334_v3, %s2268_s6  ;;  %130 = vrot.lane.b32.xlu0 %v2322_v1, %s2268_s6 }
  0x4e   :  { %136 = vrot.lane.b32.xlu1 %v2329_v2, %s2268_s6  ;;  %134 = vrot.lane.b32.xlu0 %v2317_v0, %s2268_s6 }
  0x52   :  { %102 = vrot.lane.b32.xlu1 %v2334_v3, %s2269_s7  ;;  %100 = vrot.lane.b32.xlu0 %v2322_v1, %s2269_s7 }
  0x56   :  { %106 = vrot.lane.b32.xlu1 %v2329_v2, %s2269_s7  ;;  %104 = vrot.lane.b32.xlu0 %v2317_v0, %s2269_s7 }
  0x5a   :  { %76 = vrot.lane.b32.xlu1 %v2334_v3, %s2270_s8  ;;  %74 = vrot.lane.b32.xlu0 %v2322_v1, %s2270_s8 }
  0x5e   :  { %80 = vrot.lane.b32.xlu1 %v2329_v2, %s2270_s8  ;;  %78 = vrot.lane.b32.xlu0 %v2317_v0, %s2270_s8 }
  0x62   :  { %50 = vrot.lane.b32.xlu1 %v2334_v3, %s2271_s9  ;;  %48 = vrot.lane.b32.xlu0 %v2322_v1, %s2271_s9 }
  0x66   :  { %54 = vrot.lane.b32.xlu1 %v2329_v2, %s2271_s9  ;;  %52 = vrot.lane.b32.xlu0 %v2317_v0, %s2271_s9 }
  0x6a   :  { %23 = vrot.lane.b32.xlu1 %v2334_v3, %s2272_s10  ;;  %21 = vrot.lane.b32.xlu0 %v2322_v1, %s2272_s10 }
  0x6e   :  { %27 = vrot.lane.b32.xlu1 %v2329_v2, %s2272_s10  ;;  %25 = vrot.lane.b32.xlu0 %v2317_v0, %s2272_s10 }
  0x72   :  { %422 = vrot.lane.b32.xlu1 %v2334_v3, %s2273_s11  ;;  %420 = vrot.lane.b32.xlu0 %v2322_v1, %s2273_s11 }
  0x74   :  { %v373_v6 = vpop.permute.xlu1 %372  ;;  %v369_v7 = vpop.permute.xlu0 %368 }
  0x76   :  { %426 = vrot.lane.b32.xlu1 %v2329_v2, %s2273_s11  ;;  %424 = vrot.lane.b32.xlu0 %v2317_v0, %s2273_s11  ;;  %s2278_s11 = smov 98  }
  0x78   :  { %v375_v12 = vpop.permute.xlu1 %374  ;;  %v371_v13 = vpop.permute.xlu0 %370 }
  0x79   :  { %v378_v15 = vsel %vm376_vm1, %v371_v13, %v373_v6  ;;  %v380_v16 = vsel %vm376_vm1, %v375_v12, %v369_v7  ;;  %v379_v17 = vsel %vm376_vm1, %v369_v7, %v371_v13  ;;  %v377_v18 = vsel %vm376_vm1, %v373_v6, %v375_v12  ;;  %v2057_v6 = vld [vmem:[%s3862_s1 + $0x290] sm:$0xff] }
  0x7a   :  { %396 = vrot.lane.b32.xlu1 %v2334_v3, %s2274_s22  ;;  %394 = vrot.lane.b32.xlu0 %v2322_v1, %s2274_s22  ;;  %v387_v19 = vmul.f32 %v2068_v9, %v378_v15  ;;  %v389_v20 = vmul.f32 %v2070_v10, %v380_v16  ;;  %v386_v21 = vmul.f32 %v2067_v11, %v379_v17  ;;  %v2052_v15 = vld [vmem:[%s3862_s1 + $0x268] sm:$0xff]  ;;  %vm402_vm1 = vcmp.lt.s32.totalorder %v2424_v5, 80 }
  0x7b   :  { %v388_v22 = vmul.f32 %v2069_v14, %v377_v18 }
  0x7c   :  { %v345_v24 = vpop.permute.xlu1 %344  ;;  %541 = vmatprep.subr.mxu0 %v387_v19  ;;  %618 = vmatprep.subr.mxu1 %v389_v20  ;;  %v343_v25 = vpop.permute.xlu0 %342  ;;  %v2051_v20 = vld [vmem:[%s3862_s1 + $0x260] sm:$0xff] }
  0x7d   :  { %542 = vmatpush1.msra.mxu0 %v386_v21  ;;  %619 = vmatpush1.msra.mxu1 %v388_v22  ;;  %v353_v31 = vsel %vm350_vm2, %v343_v25, %v345_v24  ;;  %v2054_v21 = vld [vmem:[%s3862_s1 + $0x278] sm:$0xff]  ;;  %v2053_v22 = vld [vmem:[%s3862_s1 + $0x270] sm:$0xff] }
  0x7e   :  { %400 = vrot.lane.b32.xlu1 %v2329_v2, %s2274_s22  ;;  %398 = vrot.lane.b32.xlu0 %v2317_v0, %s2274_s22  ;;  %v360_v41 = vmul.f32 %v2063_v34, %v353_v31  ;;  %v2048_v31 = vld [vmem:[%s3862_s1 + $0x248] sm:$0xff] }
  0x80   :  { %v349_v32 = vpop.permute.xlu1 %348  ;;  %v347_v33 = vpop.permute.xlu0 %346 }
  0x81   :  { %v354_v35 = vsel %vm350_vm2, %v349_v32, %v343_v25  ;;  %v351_v36 = vsel %vm350_vm2, %v347_v33, %v349_v32  ;;  %v352_v37 = vsel %vm350_vm2, %v345_v24, %v347_v33  ;;  %vm931_vm2 = vcmp.lt.s32.totalorder %v2424_v5, 68 }
  0x82   :  { %v361_v38 = vmul.f32 %v2064_v26, %v352_v37  ;;  %v363_v39 = vmul.f32 %v2066_v27, %v354_v35  ;;  %v362_v40 = vmul.f32 %v2065_v28, %v351_v36  ;;  %526 = vperm.xlu1 %2254, %v522_v29   ;;  %531 = vperm.xlu0 %2253, %v523_v30   ;;  %v2047_v36 = vld [vmem:[%s3862_s1 + $0x240] sm:$0xff]  ;;  %v2050_v37 = vld [vmem:[%s3862_s1 + $0x258] sm:$0xff] }
  0x84   :  { %v315_v43 = vpop.permute.xlu1 %314  ;;  %543 = vmatprep.subr.mxu0 %v361_v38  ;;  %620 = vmatprep.subr.mxu1 %v363_v39  ;;  %v313_v44 = vpop.permute.xlu0 %312  ;;  %v2049_v38 = vld [vmem:[%s3862_s1 + $0x250] sm:$0xff] }
  0x85   :  { %v323_v45 = vsel %vm320_vm3, %v313_v44, %v315_v43  ;;  %544 = vmatpush1.msra.mxu0 %v360_v41  ;;  %621 = vmatpush1.msra.mxu1 %v362_v40 }
  0x86   :  { %545 = vmatprep.subr.mxu0 %v2334_v3  ;;  %v331_v46 = vmul.f32 %v2060_v42, %v323_v45  ;;  %622 = vmatprep.subr.mxu1 %v2329_v2 }
  0x87   :  { %546 = vmatpush1.msra.mxu0 %v2322_v1  ;;  %623 = vmatpush1.msra.mxu1 %v2317_v0 }
  0x88   :  { %v319_v50 = vpop.permute.xlu1 %318  ;;  %547 = vmatprep.subr.mxu0 %v331_v46  ;;  %v317_v51 = vpop.permute.xlu0 %316 }
  0x89   :  { %v324_v52 = vsel %vm320_vm3, %v319_v50, %v313_v44  ;;  %v321_v53 = vsel %vm320_vm3, %v317_v51, %v319_v50  ;;  %v322_v54 = vsel %vm320_vm3, %v315_v43, %v317_v51  ;;  %v2046_v50 = vld [vmem:[%s3862_s1 + $0x118] sm:$0xff]  ;;  %v2045_v51 = vld [vmem:[%s3862_s1 + $0x110] sm:$0xff]  ;;  %vm1039_vm3 = vcmp.lt.s32.totalorder %v2424_v5, 124 }
  0x8a   :  { %v330_v55 = vmul.f32 %v2059_v47, %v324_v52  ;;  %v333_v56 = vmul.f32 %v2062_v48, %v321_v53  ;;  %v332_v57 = vmul.f32 %v2061_v49, %v322_v54  ;;  %v2044_v49 = vld [vmem:[%s3862_s1 + $0x108] sm:$0xff] }
  0x8c   :  { %v289_v59 = vpop.permute.xlu1 %288  ;;  %548 = vmatpush1.msra.mxu0 %v330_v55  ;;  %624 = vmatprep.subr.mxu1 %v333_v56  ;;  %v287_v60 = vpop.permute.xlu0 %286  ;;  %v2043_v55 = vld [vmem:[%s3862_s1 + $0x100] sm:$0xff] }
  0x8d   :  { %v297_v61 = vsel %vm294_vm4, %v287_v60, %v289_v59  ;;  %625 = vmatpush1.msra.mxu1 %v332_v57 }
  0x8e   :  { %v305_v62 = vmul.f32 %v2056_v58, %v297_v61 }
  0x90   :  { %v293_v7 = vpop.permute.xlu1 %292  ;;  %549 = vmatprep.subr.mxu0 %v305_v62  ;;  %v291_v8 = vpop.permute.xlu0 %290 }
  0x91   :  { %v298_v9 = vsel %vm294_vm4, %v293_v7, %v287_v60  ;;  %v295_v10 = vsel %vm294_vm4, %v291_v8, %v293_v7  ;;  %v296_v11 = vsel %vm294_vm4, %v289_v59, %v291_v8  ;;  %v2042_v7 = vld [vmem:[%s3862_s1 + $0xf8] sm:$0xff]  ;;  %v2041_v8 = vld [vmem:[%s3862_s1 + $0xf0] sm:$0xff]  ;;  %vm1009_vm4 = vcmp.lt.s32.totalorder %v2424_v5, 4 }
  0x92   :  { %v304_v12 = vmul.f32 %v2055_v63, %v298_v9  ;;  %v307_v13 = vmul.f32 %v2058_v4, %v295_v10  ;;  %v306_v14 = vmul.f32 %v2057_v6, %v296_v11  ;;  %v2040_v6 = vld [vmem:[%s3862_s1 + $0xe8] sm:$0xff] }
  0x94   :  { %v263_v16 = vpop.permute.xlu1 %262  ;;  %550 = vmatpush1.msra.mxu0 %v304_v12  ;;  %626 = vmatprep.subr.mxu1 %v307_v13  ;;  %v261_v17 = vpop.permute.xlu0 %260  ;;  %v2039_v12 = vld [vmem:[%s3862_s1 + $0xe0] sm:$0xff] }
  0x95   :  { %v271_v18 = vsel %vm268_vm5, %v261_v17, %v263_v16  ;;  %627 = vmatpush1.msra.mxu1 %v306_v14 }
  0x96   :  { %v279_v19 = vmul.f32 %v2052_v15, %v271_v18 }
  0x98   :  { %v267_v23 = vpop.permute.xlu1 %266  ;;  %551 = vmatprep.subr.mxu0 %v279_v19  ;;  %v265_v24 = vpop.permute.xlu0 %264 }
  0x99   :  { %v272_v25 = vsel %vm268_vm5, %v267_v23, %v261_v17  ;;  %v269_v26 = vsel %vm268_vm5, %v265_v24, %v267_v23  ;;  %v270_v27 = vsel %vm268_vm5, %v263_v16, %v265_v24  ;;  %v2038_v23 = vld [vmem:[%s3862_s1 + $0xd8] sm:$0xff]  ;;  %v2037_v24 = vld [vmem:[%s3862_s1 + $0xd0] sm:$0xff]  ;;  %vm983_vm5 = vcmp.lt.s32.totalorder %v2424_v5, 60 }
  0x9a   :  { %v278_v28 = vmul.f32 %v2051_v20, %v272_v25  ;;  %v281_v29 = vmul.f32 %v2054_v21, %v269_v26  ;;  %v280_v30 = vmul.f32 %v2053_v22, %v270_v27  ;;  %v2036_v22 = vld [vmem:[%s3862_s1 + $0xc8] sm:$0xff] }
  0x9c   :  { %v237_v32 = vpop.permute.xlu1 %236  ;;  %552 = vmatpush1.msra.mxu0 %v278_v28  ;;  %628 = vmatprep.subr.mxu1 %v281_v29  ;;  %v235_v33 = vpop.permute.xlu0 %234  ;;  %v2035_v28 = vld [vmem:[%s3862_s1 + $0xc0] sm:$0xff] }
  0x9d   :  { %v245_v34 = vsel %vm242_vm6, %v235_v33, %v237_v32  ;;  %629 = vmatpush1.msra.mxu1 %v280_v30 }
  0x9e   :  { %v253_v35 = vmul.f32 %v2048_v31, %v245_v34 }
  0xa0   :  { %v241_v39 = vpop.permute.xlu1 %240  ;;  %553 = vmatprep.subr.mxu0 %v253_v35  ;;  %v239_v40 = vpop.permute.xlu0 %238 }
  0xa1   :  { %v246_v41 = vsel %vm242_vm6, %v241_v39, %v235_v33  ;;  %v243_v42 = vsel %vm242_vm6, %v239_v40, %v241_v39  ;;  %v244_v43 = vsel %vm242_vm6, %v237_v32, %v239_v40  ;;  %v2034_v39 = vld [vmem:[%s3862_s1 + $0xb8] sm:$0xff]  ;;  %v2033_v40 = vld [vmem:[%s3862_s1 + $0xb0] sm:$0xff]  ;;  %vm905_vm6 = vcmp.lt.s32.totalorder %v2424_v5, 94 }
  0xa2   :  { %v252_v44 = vmul.f32 %v2047_v36, %v246_v41  ;;  %v255_v45 = vmul.f32 %v2050_v37, %v243_v42  ;;  %v254_v46 = vmul.f32 %v2049_v38, %v244_v43  ;;  %v2032_v38 = vld [vmem:[%s3862_s1 + $0xa8] sm:$0xff] }
  0xa4   :  { %v211_v47 = vpop.permute.xlu1 %210  ;;  %554 = vmatpush1.msra.mxu0 %v252_v44  ;;  %630 = vmatprep.subr.mxu1 %v255_v45  ;;  %v209_v48 = vpop.permute.xlu0 %208  ;;  %v2031_v44 = vld [vmem:[%s3862_s1 + $0xa0] sm:$0xff] }
  0xa5   :  { %631 = vmatpush1.msra.mxu1 %v254_v46  ;;  %v219_v52 = vsel %vm216_vm7, %v209_v48, %v211_v47 }
  0xa6   :  { %v226_v62 = vmul.f32 %v2043_v55, %v219_v52  ;;  %v2028_v52 = vld [vmem:[%s3862_s1 + $0x68] sm:$0xff] }
  0xa8   :  { %v215_v53 = vpop.permute.xlu1 %214  ;;  %v213_v54 = vpop.permute.xlu0 %212 }
  0xa9   :  { %v220_v56 = vsel %vm216_vm7, %v215_v53, %v209_v48  ;;  %v217_v57 = vsel %vm216_vm7, %v213_v54, %v215_v53  ;;  %v218_v58 = vsel %vm216_vm7, %v211_v47, %v213_v54 }
  0xaa   :  { %v227_v59 = vmul.f32 %v2044_v49, %v218_v58  ;;  %v229_v60 = vmul.f32 %v2046_v50, %v220_v56  ;;  %v228_v61 = vmul.f32 %v2045_v51, %v217_v57  ;;  %v2027_v57 = vld [vmem:[%s3862_s1 + $0x60] sm:$0xff]  ;;  %v2030_v58 = vld [vmem:[%s3862_s1 + $0x78] sm:$0xff] }
  0xac   :  { %v185_v63 = vpop.permute.xlu1 %184  ;;  %555 = vmatprep.subr.mxu0 %v227_v59  ;;  %632 = vmatprep.subr.mxu1 %v229_v60  ;;  %v183_v4 = vpop.permute.xlu0 %182  ;;  %v2029_v59 = vld [vmem:[%s3862_s1 + $0x70] sm:$0xff] }
  0xad   :  { %556 = vmatpush1.msra.mxu0 %v226_v62  ;;  %633 = vmatpush1.msra.mxu1 %v228_v61  ;;  %v193_v9 = vsel %vm190_vm8, %v183_v4, %v185_v63 }
  0xae   :  { %v200_v19 = vmul.f32 %v2039_v12, %v193_v9  ;;  %v2025_v12 = vld [vmem:[%s3862_s1 + $0x50] sm:$0xff] }
  0xb0   :  { %v189_v10 = vpop.permute.xlu1 %188  ;;  %v187_v11 = vpop.permute.xlu0 %186 }
  0xb1   :  { %v194_v13 = vsel %vm190_vm8, %v189_v10, %v183_v4  ;;  %v191_v14 = vsel %vm190_vm8, %v187_v11, %v189_v10  ;;  %v192_v15 = vsel %vm190_vm8, %v185_v63, %v187_v11  ;;  %v2024_v4 = vld [vmem:[%s3862_s1 + $0x48] sm:$0xff]  ;;  %v2023_v10 = vld [vmem:[%s3862_s1 + $0x40] sm:$0xff]  ;;  %v2026_v11 = vld [vmem:[%s3862_s1 + $0x58] sm:$0xff] }
  0xb2   :  { %v201_v16 = vmul.f32 %v2040_v6, %v192_v15  ;;  %v203_v17 = vmul.f32 %v2042_v7, %v194_v13  ;;  %v202_v18 = vmul.f32 %v2041_v8, %v191_v14 }
  0xb4   :  { %v159_v20 = vpop.permute.xlu1 %158  ;;  %557 = vmatprep.subr.mxu0 %v201_v16  ;;  %634 = vmatprep.subr.mxu1 %v203_v17  ;;  %v157_v21 = vpop.permute.xlu0 %156 }
  0xb5   :  { %558 = vmatpush1.msra.mxu0 %v200_v19  ;;  %635 = vmatpush1.msra.mxu1 %v202_v18  ;;  %v167_v25 = vsel %vm164_vm9, %v157_v21, %v159_v20 }
  0xb6   :  { %v174_v35 = vmul.f32 %v2035_v28, %v167_v25  ;;  %v2021_v28 = vld [vmem:[%s3862_s1 + $0x30] sm:$0xff] }
  0xb8   :  { %v163_v26 = vpop.permute.xlu1 %162  ;;  %v161_v27 = vpop.permute.xlu0 %160 }
  0xb9   :  { %v168_v29 = vsel %vm164_vm9, %v163_v26, %v157_v21  ;;  %v165_v30 = vsel %vm164_vm9, %v161_v27, %v163_v26  ;;  %v166_v31 = vsel %vm164_vm9, %v159_v20, %v161_v27  ;;  %v2020_v21 = vld [vmem:[%s3862_s1 + $0x28] sm:$0xff]  ;;  %v2019_v26 = vld [vmem:[%s3862_s1 + $0x20] sm:$0xff]  ;;  %v2022_v27 = vld [vmem:[%s3862_s1 + $0x38] sm:$0xff] }
  0xba   :  { %v175_v32 = vmul.f32 %v2036_v22, %v166_v31  ;;  %v177_v33 = vmul.f32 %v2038_v23, %v168_v29  ;;  %v176_v34 = vmul.f32 %v2037_v24, %v165_v30 }
  0xbc   :  { %v133_v36 = vpop.permute.xlu1 %132  ;;  %559 = vmatprep.subr.mxu0 %v175_v32  ;;  %636 = vmatprep.subr.mxu1 %v177_v33  ;;  %v131_v37 = vpop.permute.xlu0 %130 }
  0xbd   :  { %560 = vmatpush1.msra.mxu0 %v174_v35  ;;  %637 = vmatpush1.msra.mxu1 %v176_v34  ;;  %v141_v41 = vsel %vm138_vm10, %v131_v37, %v133_v36 }
  0xbe   :  { %v148_v51 = vmul.f32 %v2031_v44, %v141_v41  ;;  %v38_v44 = vld [vmem:[%s3862_s1 + $0x10] sm:$0xff] }
  0xc0   :  { %v137_v42 = vpop.permute.xlu1 %136  ;;  %v135_v43 = vpop.permute.xlu0 %134 }
  0xc1   :  { %v142_v45 = vsel %vm138_vm10, %v137_v42, %v131_v37  ;;  %v139_v46 = vsel %vm138_vm10, %v135_v43, %v137_v42  ;;  %v140_v47 = vsel %vm138_vm10, %v133_v36, %v135_v43  ;;  %v37_v37 = vld [vmem:[%s3862_s1 + $0x8] sm:$0xff]  ;;  %v36_v42 = vld [vmem:[%s3862_s1] sm:$0xff]  ;;  %v39_v43 = vld [vmem:[%s3862_s1 + $0x18] sm:$0xff] }
  0xc2   :  { %v149_v48 = vmul.f32 %v2032_v38, %v140_v47  ;;  %v151_v49 = vmul.f32 %v2034_v39, %v142_v45  ;;  %v150_v50 = vmul.f32 %v2033_v40, %v139_v46 }
  0xc4   :  { %v103_v53 = vpop.permute.xlu1 %102  ;;  %561 = vmatprep.subr.mxu0 %v149_v48  ;;  %638 = vmatprep.subr.mxu1 %v151_v49  ;;  %v101_v54 = vpop.permute.xlu0 %100 }
  0xc5   :  { %v111_v55 = vsel %vm108_vm11, %v101_v54, %v103_v53  ;;  %562 = vmatpush1.msra.mxu0 %v148_v51  ;;  %639 = vmatpush1.msra.mxu1 %v150_v50 }
  0xc6   :  { %563 = vmatprep.subr.mxu0 %v2334_v3  ;;  %v119_v56 = vmul.f32 %v2028_v52, %v111_v55  ;;  %640 = vmatprep.subr.mxu1 %v2329_v2  ;;  %v2076_v55 = vld [vmem:[%s3862_s1 + $0x348] sm:$0xff] }
  0xc7   :  { %564 = vmatpush1.msra.mxu0 %v2322_v1  ;;  %641 = vmatpush1.msra.mxu1 %v2317_v0 }
  0xc8   :  { %v107_v3 = vpop.permute.xlu1 %106  ;;  %565 = vmatprep.subr.mxu0 %v119_v56  ;;  %v105_v60 = vpop.permute.xlu0 %104  ;;  %v2078_v56 = vld [vmem:[%s3862_s1 + $0x358] sm:$0xff] }
  0xc9   :  { %v112_v1 = vsel %vm108_vm11, %v107_v3, %v101_v54  ;;  %v109_v0 = vsel %vm108_vm11, %v105_v60, %v107_v3  ;;  %v110_v2 = vsel %vm108_vm11, %v103_v53, %v105_v60  ;;  %v2075_v60 = vld [vmem:[%s3862_s1 + $0x340] sm:$0xff] }
  0xca   :  { %v118_v61 = vmul.f32 %v2027_v57, %v112_v1  ;;  %v121_v62 = vmul.f32 %v2030_v58, %v109_v0  ;;  %v120_v63 = vmul.f32 %v2029_v59, %v110_v2  ;;  %v2077_v57 = vld [vmem:[%s3862_s1 + $0x350] sm:$0xff] }
  0xcc   :  { %v77_v6 = vpop.permute.xlu1 %76  ;;  %566 = vmatpush1.msra.mxu0 %v118_v61  ;;  %642 = vmatprep.subr.mxu1 %v121_v62  ;;  %v75_v7 = vpop.permute.xlu0 %74 }
  0xcd   :  { %v85_v8 = vsel %vm82_vm12, %v75_v7, %v77_v6  ;;  %643 = vmatpush1.msra.mxu1 %v120_v63 }
  0xce   :  { %v93_v9 = vmul.f32 %v2024_v4, %v85_v8  ;;  %v2072_v8 = vld [vmem:[%s3862_s1 + $0x328] sm:$0xff] }
  0xd0   :  { %v81_v13 = vpop.permute.xlu1 %80  ;;  %567 = vmatprep.subr.mxu0 %v93_v9  ;;  %v79_v14 = vpop.permute.xlu0 %78  ;;  %v2074_v9 = vld [vmem:[%s3862_s1 + $0x338] sm:$0xff] }
  0xd1   :  { %v86_v15 = vsel %vm82_vm12, %v81_v13, %v75_v7  ;;  %v83_v16 = vsel %vm82_vm12, %v79_v14, %v81_v13  ;;  %v84_v17 = vsel %vm82_vm12, %v77_v6, %v79_v14  ;;  %v2071_v14 = vld [vmem:[%s3862_s1 + $0x320] sm:$0xff] }
  0xd2   :  { %v92_v18 = vmul.f32 %v2023_v10, %v86_v15  ;;  %v95_v19 = vmul.f32 %v2026_v11, %v83_v16  ;;  %v94_v20 = vmul.f32 %v2025_v12, %v84_v17  ;;  %v2073_v10 = vld [vmem:[%s3862_s1 + $0x330] sm:$0xff] }
  0xd4   :  { %v51_v22 = vpop.permute.xlu1 %50  ;;  %568 = vmatpush1.msra.mxu0 %v92_v18  ;;  %644 = vmatprep.subr.mxu1 %v95_v19  ;;  %v49_v23 = vpop.permute.xlu0 %48 }
  0xd5   :  { %v59_v24 = vsel %vm56_vm13, %v49_v23, %v51_v22  ;;  %645 = vmatpush1.msra.mxu1 %v94_v20 }
  0xd6   :  { %v67_v25 = vmul.f32 %v2020_v21, %v59_v24  ;;  %v520_v24 = vld [vmem:[%s3863_s2 + $0x10] sm:$0xff] }
  0xd8   :  { %v55_v29 = vpop.permute.xlu1 %54  ;;  %569 = vmatprep.subr.mxu0 %v67_v25  ;;  %v53_v30 = vpop.permute.xlu0 %52 }
  0xd9   :  { %v60_v31 = vsel %vm56_vm13, %v55_v29, %v49_v23  ;;  %v57_v32 = vsel %vm56_vm13, %v53_v30, %v55_v29  ;;  %v58_v33 = vsel %vm56_vm13, %v51_v22, %v53_v30  ;;  %v518_v22 = vld [vmem:[%s3863_s2] sm:$0xff]  ;;  %v521_v23 = vld [vmem:[%s3863_s2 + $0x18] sm:$0xff] }
  0xda   :  { %v66_v34 = vmul.f32 %v2019_v26, %v60_v31  ;;  %v69_v35 = vmul.f32 %v2022_v27, %v57_v32  ;;  %v68_v36 = vmul.f32 %v2021_v28, %v58_v33 }
  0xdc   :  { %v24_v38 = vpop.permute.xlu1 %23  ;;  %570 = vmatpush1.msra.mxu0 %v66_v34  ;;  %646 = vmatprep.subr.mxu1 %v69_v35  ;;  %v22_v39 = vpop.permute.xlu0 %21 }
  0xdd   :  { %v34_v40 = vsel %vm31_vm14, %v22_v39, %v24_v38  ;;  %647 = vmatpush1.msra.mxu1 %v68_v36 }
  0xde   :  { %v41_v41 = vmul.f32 %v37_v37, %v34_v40 }
  0xe0   :  { %v28_v45 = vpop.permute.xlu1 %27  ;;  %571 = vmatprep.subr.mxu0 %v41_v41  ;;  %v26_v46 = vpop.permute.xlu0 %25 }
  0xe1   :  { %v35_v47 = vsel %vm31_vm14, %v28_v45, %v22_v39  ;;  %v32_v48 = vsel %vm31_vm14, %v26_v46, %v28_v45  ;;  %v33_v49 = vsel %vm31_vm14, %v24_v38, %v26_v46 }
  0xe2   :  { %v40_v50 = vmul.f32 %v36_v42, %v35_v47  ;;  %v43_v51 = vmul.f32 %v39_v43, %v32_v48  ;;  %v42_v52 = vmul.f32 %v38_v44, %v33_v49 }
  0xe4   :  { %v423_v53 = vpop.permute.xlu1 %422  ;;  %572 = vmatpush1.msra.mxu0 %v40_v50  ;;  %648 = vmatprep.subr.mxu1 %v43_v51  ;;  %v421_v54 = vpop.permute.xlu0 %420 }
  0xe5   :  { %649 = vmatpush1.msra.mxu1 %v42_v52  ;;  %v431_v58 = vsel %vm428_vm15, %v421_v54, %v423_v53 }
  0xe6   :  { %v438_v4 = vmul.f32 %v2075_v60, %v431_v58  ;;  %v2151_v60 = vld [vmem:[%s3864_s3 + $0x10] sm:$0xff] }
  0xe8   :  { %v427_v59 = vpop.permute.xlu1 %426  ;;  %v425_v3 = vpop.permute.xlu0 %424 }
  0xe9   :  { %v432_v1 = vsel %vm428_vm15, %v427_v59, %v421_v54  ;;  %v429_v0 = vsel %vm428_vm15, %v425_v3, %v427_v59  ;;  %v430_v2 = vsel %vm428_vm15, %v423_v53, %v425_v3  ;;  %v2148_v59 = vld [vmem:[%s3863_s2 + $0x28] sm:$0xff]  ;;  %v2152_v3 = vld [vmem:[%s3864_s3 + $0x18] sm:$0xff]  ;;  %vm957_vm15 = vcmp.lt.s32.totalorder %v2424_v5, 64 }
  0xea   :  { %v439_v61 = vmul.f32 %v2076_v55, %v430_v2  ;;  %v441_v62 = vmul.f32 %v2078_v56, %v432_v1  ;;  %v440_v63 = vmul.f32 %v2077_v57, %v429_v0 }
  0xec   :  { %v397_v6 = vpop.permute.xlu1 %396  ;;  %601 = vmatprep.subr.mxu0 %v439_v61  ;;  %678 = vmatprep.subr.mxu1 %v441_v62  ;;  %v395_v7 = vpop.permute.xlu0 %394 }
  0xed   :  { %602 = vmatpush2.msra.mxu0 %v438_v4  ;;  %679 = vmatpush2.msra.mxu1 %v440_v63  ;;  %v405_v11 = vsel %vm402_vm1, %v395_v7, %v397_v6 }
  0xee   :  { %v412_v21 = vmul.f32 %v2071_v14, %v405_v11 }
  0xf0   :  { %v401_v12 = vpop.permute.xlu1 %400  ;;  %v399_v13 = vpop.permute.xlu0 %398 }
  0xf1   :  { %v406_v15 = vsel %vm402_vm1, %v401_v12, %v395_v7  ;;  %v403_v16 = vsel %vm402_vm1, %v399_v13, %v401_v12  ;;  %v404_v17 = vsel %vm402_vm1, %v397_v6, %v399_v13  ;;  %vm879_vm1 = vcmp.lt.s32.totalorder %v2424_v5, 96 }
  0xf2   :  { %v413_v18 = vmul.f32 %v2072_v8, %v404_v17  ;;  %v415_v19 = vmul.f32 %v2074_v9, %v406_v15  ;;  %v414_v20 = vmul.f32 %v2073_v10, %v403_v16 }
  0xf4   :  { %603 = vmatprep.subr.mxu0 %v413_v18  ;;  %680 = vmatprep.subr.mxu1 %v415_v19 }
  0xf5   :  { %604 = vmatpush2.msra.mxu0 %v412_v21  ;;  %681 = vmatpush2.msra.mxu1 %v414_v20 }
  0xf6   :  { %606 = vmatmul.mubr.f32.vlgmr.msra.gmra.mxu0 %v518_v22  ;;  %683 = vmatmul.mubr.f32.vlgmr.msra.gmra.mxu1 %v518_v22 }
  0xf7   :  { %2080 = vmatprep.mubr.msk.f32.mxu0 %vm534_vm0, %v521_v23  ;;  %2082 = vmatprep.mubr.msk.f32.mxu1 %vm534_vm0, %v521_v23  ;;  %v2136_v23 = vld [vmem:[%s3862_s1 + $0x428] sm:$0xff] }
  0xfa   :  { %612 = vmatmul.mubr.f32.gmra.mxu0 %v520_v24  ;;  %689 = vmatmul.mubr.f32.gmra.mxu1 %v520_v24  ;;  %v2135_v24 = vld [vmem:[%s3862_s1 + $0x420] sm:$0xff] }
  0xfb   :  { %2153 = vmatprep.mubr.msk.f32.mxu0 %vm534_vm0, %v2148_v59  ;;  %2155 = vmatprep.mubr.msk.f32.mxu1 %vm534_vm0, %v2148_v59 }
  0xfd   :  { %v527_v25 = vpop.permute.xlu1 %526  ;;  %v532_v43 = vpop.permute.xlu0 %531 }
 0x1b6   :  { %v607_v26 = vpop.f32.mrf.mxu0  ;;  %v684_v27 = vpop.f32.mrf.mxu1 }
 0x1b7   :  { %v608_v28 = vadd.f32 %v607_v26, %v527_v25  ;;  %v685_v29 = vadd.f32 %v684_v27, %v527_v25 }
 0x1b8   :  { %v609_v30 = vpop.f32.mrf.mxu0  ;;  %v686_v31 = vpop.f32.mrf.mxu1 }
 0x1b9   :  { %v695_v32 = vmul.f32 0.2, %v608_v28  ;;  %v610_v33 = vadd.f32 %v609_v30, %v527_v25  ;;  %v687_v34 = vadd.f32 %v686_v31, %v527_v25  ;;  %v697_v36 = vmul.f32 0.2, %v685_v29 }
 0x1ba   :  { %v613_v42 = vpop.f32.mrf.mxu0  ;;  %v690_v45 = vpop.f32.mrf.mxu1 }
 0x1bb   :  { %v2774_v35 = vmax.f32 %v608_v28, %v695_v32  ;;  %v696_v37 = vmul.f32 0.2, %v610_v33  ;;  %v698_v39 = vmul.f32 0.2, %v687_v34  ;;  %v2779_v40 = vmax.f32 %v685_v29, %v697_v36  ;;  %v2137_v28 = vld [vmem:[%s3862_s1 + $0x430] sm:$0xff]  ;;  %v2138_v29 = vld [vmem:[%s3862_s1 + $0x438] sm:$0xff] }
 0x1bc   :  { %v615_v44 = vpop.f32.mrf.mxu0  ;;  %v614_v46 = vadd.f32 %v613_v42, %v532_v43  ;;  %v692_v48 = vpop.f32.mrf.mxu1  ;;  %v691_v49 = vadd.f32 %v690_v45, %v532_v43 }
 0x1bd   :  { %v2776_v38 = vmax.f32 %v610_v33, %v696_v37  ;;  %897 = vrot.lane.b32.xlu1 %v2774_v35, %s2276_s27  ;;  %v2782_v41 = vmax.f32 %v687_v34, %v698_v39  ;;  %v616_v47 = vadd.f32 %v615_v44, %v532_v43  ;;  %v693_v52 = vadd.f32 %v692_v48, %v532_v43  ;;  %v2132_v43 = vld [vmem:[%s3862_s1 + $0x408] sm:$0xff]  ;;  %v2131_v44 = vld [vmem:[%s3862_s1 + $0x400] sm:$0xff]  ;;  %v2133_v48 = vld [vmem:[%s3862_s1 + $0x410] sm:$0xff] }
 0x1be   :  { %v699_v50 = vmul.f32 0.2, %v614_v46  ;;  %v701_v53 = vmul.f32 0.2, %v691_v49 }
 0x1bf   :  { %899 = vrot.lane.b32.xlu0 %v2776_v38, %s2276_s27  ;;  %v700_v51 = vmul.f32 0.2, %v616_v47  ;;  %v702_v56 = vmul.f32 0.2, %v693_v52 }
 0x1c0   :  { %v2804_v54 = vmax.f32 %v614_v46, %v699_v50  ;;  %v2811_v57 = vmax.f32 %v691_v49, %v701_v53  ;;  %v2134_v49 = vld [vmem:[%s3862_s1 + $0x418] sm:$0xff] }
 0x1c1   :  { %901 = vrot.lane.b32.xlu1 %v2779_v40, %s2276_s27  ;;  %v2808_v55 = vmax.f32 %v616_v47, %v700_v51  ;;  %v2814_v58 = vmax.f32 %v693_v52, %v702_v56 }
 0x1c3   :  { %903 = vrot.lane.b32.xlu0 %v2782_v41, %s2276_s27 }
 0x1c5   :  { %871 = vrot.lane.b32.xlu1 %v2774_v35, %s2277_s28 }
 0x1c7   :  { %873 = vrot.lane.b32.xlu0 %v2776_v38, %s2277_s28 }
 0x1c9   :  { %875 = vrot.lane.b32.xlu1 %v2779_v40, %s2277_s28 }
 0x1cb   :  { %877 = vrot.lane.b32.xlu0 %v2782_v41, %s2277_s28 }
 0x1cd   :  { %845 = vrot.lane.b32.xlu1 %v2774_v35, %s2278_s11 }
 0x1cf   :  { %847 = vrot.lane.b32.xlu0 %v2776_v38, %s2278_s11 }
 0x1d1   :  { %849 = vrot.lane.b32.xlu1 %v2779_v40, %s2278_s11 }
 0x1d3   :  { %851 = vrot.lane.b32.xlu0 %v2782_v41, %s2278_s11 }
 0x1d5   :  { %819 = vrot.lane.b32.xlu1 %v2774_v35, %s2279_s12 }
 0x1d7   :  { %821 = vrot.lane.b32.xlu0 %v2776_v38, %s2279_s12 }
 0x1d9   :  { %823 = vrot.lane.b32.xlu1 %v2779_v40, %s2279_s12 }
 0x1db   :  { %825 = vrot.lane.b32.xlu0 %v2782_v41, %s2279_s12 }
 0x1dd   :  { %789 = vrot.lane.b32.xlu1 %v2774_v35, %s2280_s13 }
 0x1df   :  { %791 = vrot.lane.b32.xlu0 %v2776_v38, %s2280_s13 }
 0x1e1   :  { %793 = vrot.lane.b32.xlu1 %v2779_v40, %s2280_s13 }
 0x1e3   :  { %795 = vrot.lane.b32.xlu0 %v2782_v41, %s2280_s13 }
 0x1e5   :  { %763 = vrot.lane.b32.xlu1 %v2774_v35, %s2281_s14 }
 0x1e7   :  { %765 = vrot.lane.b32.xlu0 %v2776_v38, %s2281_s14 }
 0x1e9   :  { %923 = vrot.lane.b32.xlu1 %v2804_v54, %s2282_s15 }
 0x1eb   :  { %925 = vrot.lane.b32.xlu0 %v2808_v55, %s2282_s15 }
 0x1ed   :  { %927 = vrot.lane.b32.xlu1 %v2811_v57, %s2282_s15 }
 0x1ef   :  { %929 = vrot.lane.b32.xlu0 %v2814_v58, %s2282_s15 }
 0x1f1   :  { %1031 = vrot.lane.b32.xlu1 %v2804_v54, %s2283_s16 }
 0x1f3   :  { %1033 = vrot.lane.b32.xlu0 %v2808_v55, %s2283_s16 }
 0x1f5   :  { %1035 = vrot.lane.b32.xlu1 %v2811_v57, %s2283_s16 }
 0x1f7   :  { %1037 = vrot.lane.b32.xlu0 %v2814_v58, %s2283_s16 }
 0x1f9   :  { %1001 = vrot.lane.b32.xlu1 %v2804_v54, %s2284_s17 }
 0x1fb   :  { %1003 = vrot.lane.b32.xlu0 %v2808_v55, %s2284_s17 }
 0x1fd   :  { %1005 = vrot.lane.b32.xlu1 %v2811_v57, %s2284_s17 }
 0x1ff   :  { %1007 = vrot.lane.b32.xlu0 %v2814_v58, %s2284_s17 }
 0x201   :  { %975 = vrot.lane.b32.xlu1 %v2804_v54, %s2285_s18 }
 0x203   :  { %977 = vrot.lane.b32.xlu0 %v2808_v55, %s2285_s18 }
 0x205   :  { %979 = vrot.lane.b32.xlu1 %v2811_v57, %s2285_s18 }
 0x207   :  { %981 = vrot.lane.b32.xlu0 %v2814_v58, %s2285_s18 }
 0x209   :  { %949 = vrot.lane.b32.xlu1 %v2804_v54, %s2286_s19 }
 0x20b   :  { %951 = vrot.lane.b32.xlu0 %v2808_v55, %s2286_s19 }
 0x20d   :  { %953 = vrot.lane.b32.xlu1 %v2811_v57, %s2286_s19 }
 0x20f   :  { %955 = vrot.lane.b32.xlu0 %v2814_v58, %s2286_s19 }
 0x211   :  { %767 = vrot.lane.b32.xlu1 %v2779_v40, %s2281_s14 }
 0x213   :  { %769 = vrot.lane.b32.xlu0 %v2782_v41, %s2281_s14 }
 0x215   :  { %737 = vrot.lane.b32.xlu1 %v2774_v35, %s2287_s20 }
 0x217   :  { %739 = vrot.lane.b32.xlu0 %v2776_v38, %s2287_s20 }
 0x219   :  { %741 = vrot.lane.b32.xlu1 %v2779_v40, %s2287_s20 }
 0x21b   :  { %743 = vrot.lane.b32.xlu0 %v2782_v41, %s2287_s20 }
 0x21d   :  { %711 = vrot.lane.b32.xlu1 %v2774_v35, %s2288_s21 }
 0x21f   :  { %713 = vrot.lane.b32.xlu0 %v2776_v38, %s2288_s21 }
 0x221   :  { %715 = vrot.lane.b32.xlu1 %v2779_v40, %s2288_s21 }
 0x223   :  { %717 = vrot.lane.b32.xlu0 %v2782_v41, %s2288_s21 }
 0x225   :  { %1183 = vperm.xlu1 %2254, %v2152_v3  }
 0x227   :  { %1178 = vperm.xlu0 %2253, %v2151_v60  }
 0x22f   :  { %v2857_v1 = vpop.permute.xlu1 %897 }
 0x231   :  { %v2859_v0 = vpop.permute.xlu0 %899 }
 0x233   :  { %v2861_v2 = vpop.permute.xlu1 %901 }
 0x235   :  { %v2863_v61 = vpop.permute.xlu0 %903 }
 0x237   :  { %v2865_v62 = vpop.permute.xlu1 %871 }
 0x239   :  { %v2867_v63 = vpop.permute.xlu0 %873 }
 0x23b   :  { %v2869_v4 = vpop.permute.xlu1 %875 }
 0x23d   :  { %v2871_v6 = vpop.permute.xlu0 %877 }
 0x23f   :  { %v2873_v7 = vpop.permute.xlu1 %845 }
 0x241   :  { %v2875_v8 = vpop.permute.xlu0 %847 }
 0x243   :  { %v2877_v9 = vpop.permute.xlu1 %849 }
 0x245   :  { %v2879_v10 = vpop.permute.xlu0 %851 }
 0x247   :  { %v2881_v11 = vpop.permute.xlu1 %819 }
 0x249   :  { %v2883_v12 = vpop.permute.xlu0 %821 }
 0x24b   :  { %v2885_v13 = vpop.permute.xlu1 %823 }
 0x24d   :  { %v2887_v14 = vpop.permute.xlu0 %825 }
 0x24f   :  { %v2889_v15 = vpop.permute.xlu1 %789 }
 0x251   :  { %v2891_v16 = vpop.permute.xlu0 %791 }
 0x253   :  { %v2893_v17 = vpop.permute.xlu1 %793 }
 0x255   :  { %v2895_v18 = vpop.permute.xlu0 %795 }
 0x257   :  { %v2897_v19 = vpop.permute.xlu1 %763 }
 0x259   :  { %v2899_v20 = vpop.permute.xlu0 %765 }
 0x25b   :  { %v924_v21 = vpop.permute.xlu1 %923 }
 0x25d   :  { %v926_v22 = vpop.permute.xlu0 %925 }
 0x25e   :  { %v2908_v25 = vsel %vm931_vm2, %v924_v21, %v926_v22 }
 0x25f   :  { %v928_v26 = vpop.permute.xlu1 %927  ;;  %v1062_v32 = vmul.f32 %v2135_v24, %v2908_v25 }
 0x260   :  { %v2910_v27 = vsel %vm931_vm2, %v926_v22, %v928_v26 }
 0x261   :  { %v1063_v30 = vmul.f32 %v2136_v23, %v2910_v27  ;;  %v930_v31 = vpop.permute.xlu0 %929 }
 0x262   :  { %v2920_v33 = vsel %vm931_vm2, %v928_v26, %v930_v31  ;;  %v2922_v34 = vsel %vm931_vm2, %v930_v31, %v924_v21  ;;  %v2128_v21 = vld [vmem:[%s3862_s1 + $0x3c8] sm:$0xff]  ;;  %vm853_vm2 = vcmp.lt.s32.totalorder %v2424_v5, 98 }
 0x263   :  { %v1064_v36 = vmul.f32 %v2137_v28, %v2920_v33  ;;  %v1065_v37 = vmul.f32 %v2138_v29, %v2922_v34  ;;  %v1032_v39 = vpop.permute.xlu1 %1031  ;;  %1192 = vmatprep.subr.mxu0 %v1063_v30  ;;  %v2127_v28 = vld [vmem:[%s3862_s1 + $0x3c0] sm:$0xff]  ;;  %v2129_v29 = vld [vmem:[%s3862_s1 + $0x3d0] sm:$0xff] }
 0x264   :  { %1193 = vmatpush1.msra.mxu0 %v1062_v32 }
 0x265   :  { %1269 = vmatprep.subr.mxu1 %v1065_v37  ;;  %v1034_v42 = vpop.permute.xlu0 %1033 }
 0x266   :  { %1270 = vmatpush1.msra.mxu1 %v1064_v36  ;;  %v1042_v45 = vsel %vm1039_vm3, %v1032_v39, %v1034_v42 }
 0x267   :  { %v1036_v46 = vpop.permute.xlu1 %1035  ;;  %v1049_v52 = vmul.f32 %v2131_v44, %v1042_v45 }
 0x268   :  { %v1041_v47 = vsel %vm1039_vm3, %v1034_v42, %v1036_v46 }
 0x269   :  { %v1050_v50 = vmul.f32 %v2132_v43, %v1041_v47  ;;  %v1038_v51 = vpop.permute.xlu0 %1037  ;;  %v2126_v47 = vld [vmem:[%s3862_s1 + $0x3b8] sm:$0xff] }
 0x26a   :  { %v1040_v53 = vsel %vm1039_vm3, %v1036_v46, %v1038_v51  ;;  %v1043_v56 = vsel %vm1039_vm3, %v1038_v51, %v1032_v39  ;;  %v2124_v39 = vld [vmem:[%s3862_s1 + $0x3a8] sm:$0xff]  ;;  %v2123_v46 = vld [vmem:[%s3862_s1 + $0x3a0] sm:$0xff]  ;;  %vm827_vm3 = vcmp.lt.s32.totalorder %v2424_v5, 126 }
 0x26b   :  { %v1051_v59 = vmul.f32 %v2133_v48, %v1040_v53  ;;  %v1052_v3 = vmul.f32 %v2134_v49, %v1043_v56  ;;  %v1002_v60 = vpop.permute.xlu1 %1001  ;;  %1194 = vmatprep.subr.mxu0 %v1050_v50  ;;  %v2125_v48 = vld [vmem:[%s3862_s1 + $0x3b0] sm:$0xff] }
 0x26c   :  { %1195 = vmatpush1.msra.mxu0 %v1049_v52 }
 0x26d   :  { %1196 = vmatprep.subr.mxu0 %v2808_v55  ;;  %1271 = vmatprep.subr.mxu1 %v1052_v3  ;;  %v1004_v22 = vpop.permute.xlu0 %1003  ;;  %v2130_v55 = vld [vmem:[%s3862_s1 + $0x3d8] sm:$0xff] }
 0x26e   :  { %v1012_v23 = vsel %vm1009_vm4, %v1002_v60, %v1004_v22  ;;  %1197 = vmatpush1.msra.mxu0 %v2804_v54  ;;  %1272 = vmatpush1.msra.mxu1 %v1051_v59 }
 0x26f   :  { %v1020_v24 = vmul.f32 %v2128_v21, %v1012_v23  ;;  %v1006_v26 = vpop.permute.xlu1 %1005  ;;  %1273 = vmatprep.subr.mxu1 %v2814_v58  ;;  %v908_v23 = vsel %vm905_vm6, %v2857_v1, %v2859_v0 }
 0x270   :  { %1274 = vmatpush1.msra.mxu1 %v2811_v57  ;;  %v1011_v54 = vsel %vm1009_vm4, %v1004_v22, %v1006_v26  ;;  %v2111_v22 = vld [vmem:[%s3862_s1 + $0x220] sm:$0xff] }
 0x271   :  { %1198 = vmatprep.subr.mxu0 %v1020_v24  ;;  %v1008_v30 = vpop.permute.xlu0 %1007  ;;  %v1021_v37 = vmul.f32 %v2129_v29, %v1011_v54 }
 0x272   :  { %v1010_v57 = vsel %vm1009_vm4, %v1006_v26, %v1008_v30  ;;  %v1013_v58 = vsel %vm1009_vm4, %v1008_v30, %v1002_v60  ;;  %v2120_v60 = vld [vmem:[%s3862_s1 + $0x388] sm:$0xff]  ;;  %v907_v26 = vsel %vm905_vm6, %v2859_v0, %v2861_v2  ;;  %v909_v0 = vsel %vm905_vm6, %v2863_v61, %v2857_v1 }
 0x273   :  { %v1019_v31 = vmul.f32 %v2127_v28, %v1013_v58  ;;  %v1022_v32 = vmul.f32 %v2130_v55, %v1010_v57  ;;  %v976_v36 = vpop.permute.xlu1 %975  ;;  %v2113_v28 = vld [vmem:[%s3862_s1 + $0x230] sm:$0xff]  ;;  %v906_v55 = vsel %vm905_vm6, %v2861_v2, %v2863_v61  ;;  %v2112_v30 = vld [vmem:[%s3862_s1 + $0x228] sm:$0xff]  ;;  %v2119_v57 = vld [vmem:[%s3862_s1 + $0x380] sm:$0xff]  ;;  %vm797_vm4 = vcmp.lt.s32.totalorder %v2424_v5, 2 }
 0x274   :  { %v2122_v2 = vld [vmem:[%s3862_s1 + $0x398] sm:$0xff]  ;;  %v2116_v1 = vld [vmem:[%s3862_s1 + $0x368] sm:$0xff]  ;;  %v2121_v61 = vld [vmem:[%s3862_s1 + $0x390] sm:$0xff]  ;;  %vm745_vm6 = vcmp.lt.s32.totalorder %v2424_v5, 32 }
 0x275   :  { %1199 = vmatpush1.msra.mxu0 %v1019_v31  ;;  %1275 = vmatprep.subr.mxu1 %v1022_v32  ;;  %v978_v42 = vpop.permute.xlu0 %977  ;;  %v2114_v58 = vld [vmem:[%s3862_s1 + $0x238] sm:$0xff]  ;;  %v915_v31 = vmul.f32 %v2111_v22, %v908_v23  ;;  %v942_v22 = vmul.f32 %v2116_v1, %v2908_v25 }
 0x276   :  { %v2970_v43 = vsel %vm983_vm5, %v976_v36, %v978_v42  ;;  %1276 = vmatpush1.msra.mxu1 %v1021_v37  ;;  %v917_v37 = vmul.f32 %v2113_v28, %v906_v55  ;;  %v2109_v28 = vld [vmem:[%s3862_s1 + $0x210] sm:$0xff] }
 0x277   :  { %v994_v44 = vmul.f32 %v2124_v39, %v2970_v43  ;;  %v980_v45 = vpop.permute.xlu1 %979  ;;  %v2115_v39 = vld [vmem:[%s3862_s1 + $0x360] sm:$0xff] }
 0x278   :  { %v2984_v49 = vsel %vm983_vm5, %v978_v42, %v980_v45  ;;  %v2118_v42 = vld [vmem:[%s3862_s1 + $0x378] sm:$0xff]  ;;  %v941_v55 = vmul.f32 %v2115_v39, %v2922_v34  ;;  %v2104_v34 = vld [vmem:[%s3862_s1 + $0x1e8] sm:$0xff] }
 0x279   :  { %1200 = vmatprep.subr.mxu0 %v994_v44  ;;  %v982_v50 = vpop.permute.xlu0 %981  ;;  %v995_v3 = vmul.f32 %v2125_v48, %v2984_v49  ;;  %v2117_v48 = vld [vmem:[%s3862_s1 + $0x370] sm:$0xff] }
 0x27a   :  { %v2988_v51 = vsel %vm983_vm5, %v980_v45, %v982_v50  ;;  %v2992_v52 = vsel %vm983_vm5, %v982_v50, %v976_v36  ;;  %vm771_vm5 = vcmp.lt.s32.totalorder %v2424_v5, 30 }
 0x27b   :  { %v993_v53 = vmul.f32 %v2123_v46, %v2992_v52  ;;  %v996_v56 = vmul.f32 %v2126_v47, %v2988_v51  ;;  %v950_v59 = vpop.permute.xlu1 %949  ;;  %v916_v46 = vmul.f32 %v2112_v30, %v907_v26  ;;  %v882_v47 = vsel %vm879_vm1, %v2865_v62, %v2867_v63  ;;  %v2108_v26 = vld [vmem:[%s3862_s1 + $0x208] sm:$0xff] }
 0x27d   :  { %1201 = vmatpush1.msra.mxu0 %v993_v53  ;;  %1277 = vmatprep.subr.mxu1 %v996_v56  ;;  %v952_v21 = vpop.permute.xlu0 %951 }
 0x27e   :  { %v3011_v24 = vsel %vm957_vm15, %v950_v59, %v952_v21  ;;  %1278 = vmatpush1.msra.mxu1 %v995_v3  ;;  %v918_v3 = vmul.f32 %v2114_v58, %v909_v0  ;;  %v2105_v0 = vld [vmem:[%s3862_s1 + $0x1f0] sm:$0xff]  ;;  %v857_v58 = vsel %vm853_vm2, %v2879_v10, %v2873_v7 }
 0x27f   :  { %v968_v29 = vmul.f32 %v2120_v60, %v3011_v24  ;;  %v954_v54 = vpop.permute.xlu1 %953  ;;  %v881_v60 = vsel %vm879_vm1, %v2867_v63, %v2869_v4  ;;  %v883_v63 = vsel %vm879_vm1, %v2871_v6, %v2865_v62  ;;  %v856_v62 = vsel %vm853_vm2, %v2873_v7, %v2875_v8  ;;  %v2100_v7 = vld [vmem:[%s3862_s1 + $0x1c8] sm:$0xff] }
 0x280   :  { %v3051_v32 = vsel %vm957_vm15, %v952_v21, %v954_v54  ;;  %v880_v21 = vsel %vm879_vm1, %v2869_v4, %v2871_v6  ;;  %v944_v4 = vmul.f32 %v2118_v42, %v2920_v33  ;;  %v855_v6 = vsel %vm853_vm2, %v2875_v8, %v2877_v9 }
 0x281   :  { %1202 = vmatprep.subr.mxu0 %v968_v29  ;;  %v956_v36 = vpop.permute.xlu0 %955  ;;  %v969_v23 = vmul.f32 %v2121_v61, %v3051_v32  ;;  %v2110_v29 = vld [vmem:[%s3862_s1 + $0x218] sm:$0xff]  ;;  %v943_v33 = vmul.f32 %v2117_v48, %v2910_v27  ;;  %v890_v27 = vmul.f32 %v2108_v26, %v881_v60  ;;  %v864_v42 = vmul.f32 %v2104_v34, %v855_v6 }
 0x282   :  { %v3061_v44 = vsel %vm957_vm15, %v954_v54, %v956_v36  ;;  %v3065_v45 = vsel %vm957_vm15, %v956_v36, %v950_v59  ;;  %v2107_v59 = vld [vmem:[%s3862_s1 + $0x200] sm:$0xff]  ;;  %v892_v1 = vmul.f32 %v2110_v29, %v883_v63  ;;  %v829_v36 = vsel %vm827_vm3, %v2883_v12, %v2885_v13  ;;  %v2102_v48 = vld [vmem:[%s3862_s1 + $0x1d8] sm:$0xff] }
 0x283   :  { %v967_v50 = vmul.f32 %v2119_v57, %v3065_v45  ;;  %v970_v53 = vmul.f32 %v2122_v2, %v3061_v44  ;;  %v3076_v56 = vpop.permute.xlu1 %767  ;;  %v2103_v54 = vld [vmem:[%s3862_s1 + $0x1e0] sm:$0xff]  ;;  %v889_v30 = vmul.f32 %v2107_v59, %v882_v47  ;;  %v854_v57 = vsel %vm853_vm2, %v2877_v9, %v2879_v10  ;;  %v2106_v9 = vld [vmem:[%s3862_s1 + $0x1f8] sm:$0xff]  ;;  %v2097_v59 = vld [vmem:[%s3862_s1 + $0x190] sm:$0xff] }
 0x284   :  { %v891_v2 = vmul.f32 %v2109_v28, %v880_v21  ;;  %v863_v61 = vmul.f32 %v2103_v54, %v856_v62  ;;  %v865_v10 = vmul.f32 %v2105_v0, %v854_v57  ;;  %v830_v47 = vsel %vm827_vm3, %v2881_v11, %v2883_v12  ;;  %v2098_v28 = vld [vmem:[%s3862_s1 + $0x198] sm:$0xff]  ;;  %v2091_v54 = vld [vmem:[%s3862_s1 + $0x160] sm:$0xff]  ;;  %v2088_v57 = vld [vmem:[%s3862_s1 + $0x148] sm:$0xff] }
 0x285   :  { %1203 = vmatpush1.msra.mxu0 %v967_v50  ;;  %1279 = vmatprep.subr.mxu1 %v970_v53  ;;  %v3103_v25 = vpop.permute.xlu0 %769  ;;  %v2101_v50 = vld [vmem:[%s3862_s1 + $0x1d0] sm:$0xff]  ;;  %v828_v12 = vsel %vm827_vm3, %v2885_v13, %v2887_v14  ;;  %v799_v13 = vsel %vm797_vm4, %v2891_v16, %v2893_v17  ;;  %v801_v60 = vsel %vm797_vm4, %v2895_v18, %v2889_v15  ;;  %v2094_v62 = vld [vmem:[%s3862_s1 + $0x178] sm:$0xff]  ;;  %vm719_vm15 = vcmp.lt.s32.totalorder %v2424_v5, 34 }
 0x286   :  { %1204 = vmatprep.subr.mxu0 %v942_v22  ;;  %1280 = vmatpush1.msra.mxu1 %v969_v23  ;;  %v838_v21 = vmul.f32 %v2100_v7, %v829_v36  ;;  %v772_v6 = vsel %vm771_vm5, %v3076_v56, %v3103_v25  ;;  %v773_v0 = vsel %vm771_vm5, %v2899_v20, %v3076_v56  ;;  %v2215_v5 = vld [vmem:[%s3863_s2 + $0x50] sm:$0xff] }
 0x287   :  { %v3131_v8 = vpop.permute.xlu1 %737  ;;  %1205 = vmatpush1.msra.mxu0 %v941_v55  ;;  %1281 = vmatprep.subr.mxu1 %v944_v4  ;;  %v809_v55 = vmul.f32 %v2097_v59, %v799_v13  ;;  %v2145_v59 = vld [vmem:[%s3862_s1 + $0x470] sm:$0xff]  ;;  %v2140_v13 = vld [vmem:[%s3862_s1 + $0x448] sm:$0xff] }
 0x288   :  { %1206 = vmatprep.subr.mxu0 %v916_v46  ;;  %1282 = vmatpush1.msra.mxu1 %v943_v33  ;;  %v2099_v46 = vld [vmem:[%s3862_s1 + $0x1c0] sm:$0xff]  ;;  %v775_v33 = vsel %vm771_vm5, %v3103_v25, %v2897_v19 }
 0x289   :  { %1207 = vmatpush1.msra.mxu0 %v915_v31  ;;  %1283 = vmatprep.subr.mxu1 %v918_v3  ;;  %v740_v39 = vpop.permute.xlu0 %739  ;;  %v831_v31 = vsel %vm827_vm3, %v2887_v14, %v2881_v11  ;;  %v800_v11 = vsel %vm797_vm4, %v2889_v15, %v2891_v16  ;;  %v2096_v3 = vld [vmem:[%s3862_s1 + $0x188] sm:$0xff]  ;;  %v2095_v14 = vld [vmem:[%s3862_s1 + $0x180] sm:$0xff]  ;;  %v837_v22 = vmul.f32 %v2099_v46, %v830_v47 }
 0x28a   :  { %1208 = vmatprep.subr.mxu0 %v890_v27  ;;  %1284 = vmatpush1.msra.mxu1 %v917_v37  ;;  %v866_v37 = vmul.f32 %v2106_v9, %v857_v58  ;;  %v798_v16 = vsel %vm797_vm4, %v2893_v17, %v2895_v18  ;;  %v840_v26 = vmul.f32 %v2102_v48, %v831_v31  ;;  %v2092_v17 = vld [vmem:[%s3862_s1 + $0x168] sm:$0xff]  ;;  %v2087_v27 = vld [vmem:[%s3862_s1 + $0x140] sm:$0xff]  ;;  %v2085_v31 = vld [vmem:[%s3862_s1 + $0x130] sm:$0xff] }
 0x28b   :  { %v742_v53 = vpop.permute.xlu1 %741  ;;  %1209 = vmatpush1.msra.mxu0 %v889_v30  ;;  %1285 = vmatprep.subr.mxu1 %v892_v1  ;;  %v839_v15 = vmul.f32 %v2101_v50, %v828_v12  ;;  %v808_v63 = vmul.f32 %v2096_v3, %v800_v11  ;;  %v807_v4 = vmul.f32 %v2095_v14, %v801_v60  ;;  %v2093_v30 = vld [vmem:[%s3862_s1 + $0x170] sm:$0xff]  ;;  %v2084_v9 = vld [vmem:[%s3862_s1 + $0x128] sm:$0xff]  ;;  %v2143_v12 = vld [vmem:[%s3862_s1 + $0x460] sm:$0xff] }
 0x28c   :  { %1210 = vmatprep.subr.mxu0 %v864_v42  ;;  %1286 = vmatpush1.msra.mxu1 %v891_v2  ;;  %v774_v18 = vsel %vm771_vm5, %v2897_v19, %v2899_v20  ;;  %v810_v34 = vmul.f32 %v2098_v28, %v798_v16  ;;  %v2089_v19 = vld [vmem:[%s3862_s1 + $0x150] sm:$0xff]  ;;  %v747_v25 = vsel %vm745_vm6, %v740_v39, %v742_v53  ;;  %v2090_v2 = vld [vmem:[%s3862_s1 + $0x158] sm:$0xff] }
 0x28d   :  { %1211 = vmatpush1.msra.mxu0 %v863_v61  ;;  %1287 = vmatprep.subr.mxu1 %v866_v37  ;;  %v744_v23 = vpop.permute.xlu0 %743  ;;  %v782_v56 = vmul.f32 %v2092_v17, %v774_v18  ;;  %v757_v7 = vmul.f32 %v2089_v19, %v747_v25  ;;  %v2146_v11 = vld [vmem:[%s3862_s1 + $0x478] sm:$0xff] }
 0x28e   :  { %1212 = vmatprep.subr.mxu0 %v838_v21  ;;  %1288 = vmatpush1.msra.mxu1 %v865_v10  ;;  %v746_v58 = vsel %vm745_vm6, %v742_v53, %v744_v23  ;;  %v749_v1 = vsel %vm745_vm6, %v744_v23, %v3131_v8  ;;  %v2144_v10 = vld [vmem:[%s3862_s1 + $0x468] sm:$0xff]  ;;  %v2142_v16 = vld [vmem:[%s3862_s1 + $0x458] sm:$0xff]  ;;  %v1091_v28 = vmul.f32 %v2146_v11, %v2992_v52 }
 0x28f   :  { %v712_v29 = vpop.permute.xlu1 %711  ;;  %1213 = vmatpush1.msra.mxu0 %v837_v22  ;;  %1289 = vmatprep.subr.mxu1 %v840_v26  ;;  %v755_v46 = vmul.f32 %v2087_v27, %v749_v1  ;;  %v758_v47 = vmul.f32 %v2090_v2, %v746_v58  ;;  %v1089_v21 = vmul.f32 %v2144_v10, %v2984_v49  ;;  %v2139_v22 = vld [vmem:[%s3862_s1 + $0x440] sm:$0xff] }
 0x290   :  { %1214 = vmatprep.subr.mxu0 %v2776_v38  ;;  %1290 = vmatpush1.msra.mxu1 %v839_v15  ;;  %v748_v38 = vsel %vm745_vm6, %v3131_v8, %v740_v39  ;;  %v783_v39 = vmul.f32 %v2093_v30, %v773_v0  ;;  %v2086_v8 = vld [vmem:[%s3862_s1 + $0x138] sm:$0xff]  ;;  %v1088_v26 = vmul.f32 %v2143_v12, %v2970_v43  ;;  %v2141_v15 = vld [vmem:[%s3862_s1 + $0x450] sm:$0xff]  ;;  %v2147_v43 = vld [vmem:[%s3863_s2 + $0x20] sm:$0xff] }
 0x291   :  { %1215 = vmatpush1.msra.mxu0 %v2774_v35  ;;  %1291 = vmatprep.subr.mxu1 %v2782_v41  ;;  %v714_v20 = vpop.permute.xlu0 %713  ;;  %v781_v35 = vmul.f32 %v2091_v54, %v775_v33  ;;  %v784_v41 = vmul.f32 %v2094_v62, %v772_v6  ;;  %v756_v42 = vmul.f32 %v2088_v57, %v748_v38 }
 0x292   :  { %1216 = vmatprep.subr.mxu0 %v808_v63  ;;  %1292 = vmatpush1.msra.mxu1 %v2779_v40  ;;  %v722_v61 = vsel %vm719_vm15, %v712_v29, %v714_v20  ;;  %v2083_v40 = vld [vmem:[%s3862_s1 + $0x120] sm:$0xff]  ;;  %v1090_v49 = vmul.f32 %v2145_v59, %v2988_v51  ;;  %v1076_v63 = vmul.f32 %v2140_v13, %v3051_v32  ;;  %v2150_v51 = vld [vmem:[%s3863_s2 + $0x38] sm:$0xff] }
 0x293   :  { %v716_v36 = vpop.permute.xlu1 %715  ;;  %1217 = vmatpush1.msra.mxu0 %v807_v4  ;;  %1293 = vmatprep.subr.mxu1 %v810_v34  ;;  %v730_v53 = vmul.f32 %v2084_v9, %v722_v61  ;;  %v1078_v4 = vmul.f32 %v2142_v16, %v3065_v45  ;;  %v1077_v52 = vmul.f32 %v2141_v15, %v3061_v44 }
 0x294   :  { %1218 = vmatprep.subr.mxu0 %v782_v56  ;;  %1294 = vmatpush1.msra.mxu1 %v809_v55  ;;  %v721_v48 = vsel %vm719_vm15, %v714_v20, %v716_v36  ;;  %v1075_v55 = vmul.f32 %v2139_v22, %v3011_v24  ;;  %v2149_v24 = vld [vmem:[%s3863_s2 + $0x30] sm:$0xff] }
 0x295   :  { %1219 = vmatpush1.msra.mxu0 %v781_v35  ;;  %1295 = vmatprep.subr.mxu1 %v784_v41  ;;  %v718_v50 = vpop.permute.xlu0 %717  ;;  %v731_v23 = vmul.f32 %v2085_v31, %v721_v48 }
 0x296   :  { %v720_v37 = vsel %vm719_vm15, %v716_v36, %v718_v50  ;;  %v723_v3 = vsel %vm719_vm15, %v718_v50, %v712_v29  ;;  %1220 = vmatprep.subr.mxu0 %v756_v42  ;;  %1296 = vmatpush1.msra.mxu1 %v783_v39 }
 0x297   :  { %v729_v14 = vmul.f32 %v2083_v40, %v723_v3  ;;  %v732_v60 = vmul.f32 %v2086_v8, %v720_v37  ;;  %1221 = vmatpush1.msra.mxu0 %v755_v46  ;;  %1297 = vmatprep.subr.mxu1 %v758_v47  ;;  %v2214_v47 = vld [vmem:[%s3863_s2 + $0x48] sm:$0xff]  ;;  %v2217_v3 = vld [vmem:[%s3864_s3 + $0x20] sm:$0xff] }
 0x298   :  { %1222 = vmatprep.subr.mxu0 %v730_v53  ;;  %1298 = vmatpush1.msra.mxu1 %v757_v7 }
 0x299   :  { %1223 = vmatpush1.msra.mxu0 %v729_v14  ;;  %1299 = vmatprep.subr.mxu1 %v732_v60 }
 0x29a   :  { %1252 = vmatprep.subr.mxu0 %v1089_v21  ;;  %1300 = vmatpush1.msra.mxu1 %v731_v23 }
 0x29b   :  { %1253 = vmatpush2.msra.mxu0 %v1088_v26  ;;  %1329 = vmatprep.subr.mxu1 %v1091_v28 }
 0x29c   :  { %1254 = vmatprep.subr.mxu0 %v1076_v63  ;;  %1330 = vmatpush2.msra.mxu1 %v1090_v49 }
 0x29d   :  { %1255 = vmatpush2.msra.mxu0 %v1075_v55  ;;  %1331 = vmatprep.subr.mxu1 %v1078_v4 }
 0x29e   :  { %1257 = vmatmul.mubr.f32.vlgmr.msra.gmra.mxu0 %v2147_v43  ;;  %1332 = vmatpush2.msra.mxu1 %v1077_v52 }
 0x29f   :  { %1334 = vmatmul.mubr.f32.vlgmr.msra.gmra.mxu1 %v2147_v43  ;;  %2154 = vmatprep.mubr.msk.f32.mxu0 %vm534_vm0, %v2150_v51 }
 0x2a0   :  { %2156 = vmatprep.mubr.msk.f32.mxu1 %vm534_vm0, %v2150_v51  ;;  %v1184_v56 = vpop.permute.xlu1 %1183 }
 0x2a2   :  { %1263 = vmatmul.mubr.f32.gmra.mxu0 %v2149_v24  ;;  %v1179_v32 = vpop.permute.xlu0 %1178 }
 0x2a3   :  { %1340 = vmatmul.mubr.f32.gmra.mxu1 %v2149_v24  ;;  %2219 = vmatprep.mubr.msk.f32.mxu0 %vm534_vm0, %v2214_v47 }
 0x2a4   :  { %2221 = vmatprep.mubr.msk.f32.mxu1 %vm534_vm0, %v2214_v47 }
 0x35e   :  { %v1258_v44 = vpop.f32.mrf.mxu0 }
 0x35f   :  { %v1259_v45 = vadd.f32 %v1258_v44, %v1179_v32  ;;  %v1335_v17 = vpop.f32.mrf.mxu1 }
 0x360   :  { %v1336_v18 = vadd.f32 %v1335_v17, %v1179_v32  ;;  %v1260_v29 = vpop.f32.mrf.mxu0 }
 0x361   :  { %v1346_v54 = vmul.f32 0.2, %v1259_v45  ;;  %v1261_v62 = vadd.f32 %v1260_v29, %v1179_v32  ;;  %v1337_v6 = vpop.f32.mrf.mxu1 }
 0x362   :  { %v1338_v33 = vadd.f32 %v1337_v6, %v1179_v32  ;;  %v1348_v30 = vmul.f32 0.2, %v1336_v18  ;;  %v1264_v20 = vpop.f32.mrf.mxu0 }
 0x363   :  { %v3317_v34 = vmax.f32 %v1259_v45, %v1346_v54  ;;  %v1347_v0 = vmul.f32 0.2, %v1261_v62  ;;  %v1341_v27 = vpop.f32.mrf.mxu1  ;;  %v1265_v58 = vadd.f32 %v1264_v20, %v1184_v56 }
 0x364   :  { %v1349_v38 = vmul.f32 0.2, %v1338_v33  ;;  %v3323_v19 = vmax.f32 %v1336_v18, %v1348_v30  ;;  %v1266_v2 = vpop.f32.mrf.mxu0  ;;  %v1342_v9 = vadd.f32 %v1341_v27, %v1184_v56 }
 0x365   :  { %v3319_v57 = vmax.f32 %v1261_v62, %v1347_v0  ;;  %1510 = vrot.lane.b32.xlu1 %v3317_v34, %s2266_s30  ;;  %v1267_v1 = vadd.f32 %v1266_v2, %v1184_v56  ;;  %v1343_v35 = vpop.f32.mrf.mxu1  ;;  %v1350_v41 = vmul.f32 0.2, %v1265_v58 }
 0x366   :  { %v3327_v25 = vmax.f32 %v1338_v33, %v1349_v38  ;;  %v1344_v36 = vadd.f32 %v1343_v35, %v1184_v56  ;;  %v1352_v42 = vmul.f32 0.2, %v1342_v9 }
 0x367   :  { %1512 = vrot.lane.b32.xlu0 %v3319_v57, %s2266_s30  ;;  %v1351_v61 = vmul.f32 0.2, %v1267_v1  ;;  %v3383_v39 = vmax.f32 %v1265_v58, %v1350_v41 }
 0x368   :  { %v1353_v40 = vmul.f32 0.2, %v1344_v36  ;;  %v3391_v8 = vmax.f32 %v1342_v9, %v1352_v42  ;;  %v2177_v9 = vld [vmem:[%s3862_s1 + $0xe0] sm:$0xff]  ;;  %v2179_v42 = vld [vmem:[%s3862_s1 + $0xf0] sm:$0xff] }
 0x369   :  { %1514 = vrot.lane.b32.xlu1 %v3323_v19, %s2266_s30  ;;  %v3387_v7 = vmax.f32 %v1267_v1, %v1351_v61  ;;  %v2178_v1 = vld [vmem:[%s3862_s1 + $0xe8] sm:$0xff] }
 0x36a   :  { %v3395_v10 = vmax.f32 %v1344_v36, %v1353_v40  ;;  %v2180_v40 = vld [vmem:[%s3862_s1 + $0xf8] sm:$0xff] }
 0x36b   :  { %1516 = vrot.lane.b32.xlu0 %v3327_v25, %s2266_s30 }
 0x36d   :  { %1486 = vrot.lane.b32.xlu1 %v3317_v34, %s2267_s5 }
 0x36f   :  { %1488 = vrot.lane.b32.xlu0 %v3319_v57, %s2267_s5 }
 0x371   :  { %1490 = vrot.lane.b32.xlu1 %v3323_v19, %s2267_s5 }
 0x373   :  { %1492 = vrot.lane.b32.xlu0 %v3327_v25, %s2267_s5 }
 0x375   :  { %1462 = vrot.lane.b32.xlu1 %v3317_v34, %s2268_s6 }
 0x377   :  { %1464 = vrot.lane.b32.xlu0 %v3319_v57, %s2268_s6 }
 0x379   :  { %1466 = vrot.lane.b32.xlu1 %v3323_v19, %s2268_s6 }
 0x37b   :  { %1468 = vrot.lane.b32.xlu0 %v3327_v25, %s2268_s6 }
 0x37d   :  { %1434 = vrot.lane.b32.xlu1 %v3317_v34, %s2269_s7 }
 0x37f   :  { %1436 = vrot.lane.b32.xlu0 %v3319_v57, %s2269_s7 }
 0x381   :  { %1438 = vrot.lane.b32.xlu1 %v3323_v19, %s2269_s7 }
 0x383   :  { %1440 = vrot.lane.b32.xlu0 %v3327_v25, %s2269_s7 }
 0x385   :  { %1410 = vrot.lane.b32.xlu1 %v3317_v34, %s2270_s8 }
 0x387   :  { %1412 = vrot.lane.b32.xlu0 %v3319_v57, %s2270_s8 }
 0x389   :  { %1414 = vrot.lane.b32.xlu1 %v3323_v19, %s2270_s8 }
 0x38b   :  { %1416 = vrot.lane.b32.xlu0 %v3327_v25, %s2270_s8 }
 0x38d   :  { %1386 = vrot.lane.b32.xlu1 %v3317_v34, %s2271_s9 }
 0x38f   :  { %1388 = vrot.lane.b32.xlu0 %v3319_v57, %s2271_s9 }
 0x391   :  { %1390 = vrot.lane.b32.xlu1 %v3323_v19, %s2271_s9 }
 0x393   :  { %1392 = vrot.lane.b32.xlu0 %v3327_v25, %s2271_s9 }
 0x395   :  { %1362 = vrot.lane.b32.xlu1 %v3317_v34, %s2272_s10 }
 0x397   :  { %1364 = vrot.lane.b32.xlu0 %v3319_v57, %s2272_s10 }
 0x399   :  { %1366 = vrot.lane.b32.xlu1 %v3323_v19, %s2272_s10 }
 0x39b   :  { %1368 = vrot.lane.b32.xlu0 %v3327_v25, %s2272_s10 }
 0x39d   :  { %1534 = vrot.lane.b32.xlu1 %v3317_v34, %s2265_s29 }
 0x39f   :  { %1536 = vrot.lane.b32.xlu0 %v3319_v57, %s2265_s29 }
 0x3a1   :  { %1706 = vrot.lane.b32.xlu1 %v3383_v39, %s2266_s30 }
 0x3a3   :  { %1708 = vrot.lane.b32.xlu0 %v3387_v7, %s2266_s30 }
 0x3a5   :  { %1710 = vrot.lane.b32.xlu1 %v3391_v8, %s2266_s30 }
 0x3a7   :  { %1712 = vrot.lane.b32.xlu0 %v3395_v10, %s2266_s30 }
 0x3a9   :  { %1682 = vrot.lane.b32.xlu1 %v3383_v39, %s2267_s5 }
 0x3ab   :  { %1684 = vrot.lane.b32.xlu0 %v3387_v7, %s2267_s5 }
 0x3ad   :  { %1686 = vrot.lane.b32.xlu1 %v3391_v8, %s2267_s5 }
 0x3af   :  { %1688 = vrot.lane.b32.xlu0 %v3395_v10, %s2267_s5 }
 0x3b1   :  { %1658 = vrot.lane.b32.xlu1 %v3383_v39, %s2268_s6 }
 0x3b3   :  { %1660 = vrot.lane.b32.xlu0 %v3387_v7, %s2268_s6 }
 0x3b5   :  { %1662 = vrot.lane.b32.xlu1 %v3391_v8, %s2268_s6 }
 0x3b7   :  { %1664 = vrot.lane.b32.xlu0 %v3395_v10, %s2268_s6 }
 0x3b9   :  { %1630 = vrot.lane.b32.xlu1 %v3383_v39, %s2269_s7 }
 0x3bb   :  { %1632 = vrot.lane.b32.xlu0 %v3387_v7, %s2269_s7 }
 0x3bd   :  { %1634 = vrot.lane.b32.xlu1 %v3391_v8, %s2269_s7 }
 0x3bf   :  { %1636 = vrot.lane.b32.xlu0 %v3395_v10, %s2269_s7 }
 0x3c1   :  { %1606 = vrot.lane.b32.xlu1 %v3383_v39, %s2270_s8 }
 0x3c3   :  { %1608 = vrot.lane.b32.xlu0 %v3387_v7, %s2270_s8 }
 0x3c5   :  { %1610 = vrot.lane.b32.xlu1 %v3391_v8, %s2270_s8 }
 0x3c7   :  { %1612 = vrot.lane.b32.xlu0 %v3395_v10, %s2270_s8 }
 0x3c9   :  { %1582 = vrot.lane.b32.xlu1 %v3383_v39, %s2271_s9 }
 0x3cb   :  { %1584 = vrot.lane.b32.xlu0 %v3387_v7, %s2271_s9 }
 0x3cd   :  { %1586 = vrot.lane.b32.xlu1 %v3391_v8, %s2271_s9 }
 0x3cf   :  { %1588 = vrot.lane.b32.xlu0 %v3395_v10, %s2271_s9 }
 0x3d1   :  { %1558 = vrot.lane.b32.xlu1 %v3383_v39, %s2272_s10 }
 0x3d3   :  { %1560 = vrot.lane.b32.xlu0 %v3387_v7, %s2272_s10 }
 0x3d5   :  { %1562 = vrot.lane.b32.xlu1 %v3391_v8, %s2272_s10 }
 0x3d7   :  { %1564 = vrot.lane.b32.xlu0 %v3395_v10, %s2272_s10  ;;  %v3449_v46 = vpop.permute.xlu1 %1510 }
 0x3d9   :  { %v1513_v31 = vpop.permute.xlu0 %1512  ;;  %1730 = vrot.lane.b32.xlu1 %v3383_v39, %s2265_s29 }
 0x3da   :  { %v3460_v48 = vsel %vm190_vm8, %v3449_v46, %v1513_v31 }
 0x3db   :  { %1732 = vrot.lane.b32.xlu0 %v3387_v7, %s2265_s29  ;;  %v1515_v50 = vpop.permute.xlu1 %1514 }
 0x3dc   :  { %v1519_v35 = vsel %vm190_vm8, %v1513_v31, %v1515_v50 }
 0x3dd   :  { %v1517_v12 = vpop.permute.xlu0 %1516  ;;  %1734 = vrot.lane.b32.xlu1 %v3391_v8, %s2265_s29 }
 0x3de   :  { %v1521_v47 = vsel %vm190_vm8, %v1517_v12, %v3449_v46 }
 0x3df   :  { %1736 = vrot.lane.b32.xlu0 %v3395_v10, %s2265_s29  ;;  %v3469_v11 = vpop.permute.xlu1 %1486 }
 0x3e1   :  { %v3471_v53 = vpop.permute.xlu0 %1488  ;;  %1538 = vrot.lane.b32.xlu1 %v3323_v19, %s2265_s29 }
 0x3e2   :  { %v3479_v37 = vsel %vm164_vm9, %v3469_v11, %v3471_v53 }
 0x3e3   :  { %1540 = vrot.lane.b32.xlu0 %v3327_v25, %s2265_s29  ;;  %v3486_v59 = vpop.permute.xlu1 %1490 }
 0x3e5   :  { %v3488_v13 = vpop.permute.xlu0 %1492  ;;  %1836 = vperm.xlu1 %2254, %v2217_v3  }
 0x3e7   :  { %v3490_v14 = vpop.permute.xlu1 %1462 }
 0x3e9   :  { %v3492_v60 = vpop.permute.xlu0 %1464 }
 0x3ea   :  { %v3498_v21 = vsel %vm138_vm10, %v3490_v14, %v3492_v60 }
 0x3eb   :  { %v3500_v22 = vpop.permute.xlu1 %1466 }
 0x3ed   :  { %v3502_v16 = vpop.permute.xlu0 %1468 }
 0x3ef   :  { %v3504_v23 = vpop.permute.xlu1 %1434 }
 0x3f1   :  { %v1437_v26 = vpop.permute.xlu0 %1436 }
 0x3f2   :  { %v3509_v28 = vsel %vm108_vm11, %v3504_v23, %v1437_v26 }
 0x3f3   :  { %v3511_v15 = vpop.permute.xlu1 %1438 }
 0x3f4   :  { %v3516_v49 = vsel %vm108_vm11, %v1437_v26, %v3511_v15 }
 0x3f5   :  { %v3518_v63 = vpop.permute.xlu0 %1440 }
 0x3f7   :  { %v3520_v55 = vpop.permute.xlu1 %1410 }
 0x3f9   :  { %v1413_v4 = vpop.permute.xlu0 %1412 }
 0x3fa   :  { %v3525_v43 = vsel %vm82_vm12, %v3520_v55, %v1413_v4 }
 0x3fb   :  { %v3527_v52 = vpop.permute.xlu1 %1414 }
 0x3fc   :  { %v3532_v51 = vsel %vm82_vm12, %v1413_v4, %v3527_v52  ;;  %v1527_v4 = vmul.f32 %v2178_v1, %v1519_v35  ;;  %v2175_v35 = vld [vmem:[%s3862_s1 + $0xd0] sm:$0xff] }
 0x3fd   :  { %v3534_v24 = vpop.permute.xlu0 %1416 }
 0x3ff   :  { %v3536_v32 = vpop.permute.xlu1 %1386 }
 0x401   :  { %v1389_v44 = vpop.permute.xlu0 %1388 }
 0x402   :  { %v3541_v45 = vsel %vm56_vm13, %v3536_v32, %v1389_v44 }
 0x403   :  { %v3543_v17 = vpop.permute.xlu1 %1390 }
 0x404   :  { %v3548_v18 = vsel %vm56_vm13, %v1389_v44, %v3543_v17  ;;  %v1518_v44 = vsel %vm190_vm8, %v1515_v50, %v1517_v12  ;;  %v2174_v50 = vld [vmem:[%s3862_s1 + $0xc8] sm:$0xff] }
 0x405   :  { %v3550_v29 = vpop.permute.xlu0 %1392 }
 0x407   :  { %v3552_v54 = vpop.permute.xlu1 %1362 }
 0x409   :  { %v1365_v62 = vpop.permute.xlu0 %1364 }
 0x40a   :  { %v3557_v6 = vsel %vm31_vm14, %v3552_v54, %v1365_v62 }
 0x40b   :  { %v3559_v33 = vpop.permute.xlu1 %1366 }
 0x40c   :  { %v3564_v30 = vsel %vm31_vm14, %v1365_v62, %v3559_v33 }
 0x40d   :  { %v3566_v0 = vpop.permute.xlu0 %1368 }
 0x40f   :  { %v3568_v38 = vpop.permute.xlu1 %1534 }
 0x410   :  { %3868 = vst [vmem:[#allocation3_spill] sm:$0xff] %v3568_v38  ;;  %v1526_v38 = vmul.f32 %v2177_v9, %v3460_v48  ;;  %v1495_v48 = vsel %vm164_vm9, %v3471_v53, %v3486_v59  ;;  %v1497_v53 = vsel %vm164_vm9, %v3488_v13, %v3469_v11 }
 0x411   :  { %v3570_v20 = vpop.permute.xlu0 %1536 }
 0x412   :  { %3869 = vst [vmem:[#allocation4_spill] sm:$0xff] %v3570_v20  ;;  %v1529_v20 = vmul.f32 %v2180_v40, %v1521_v47  ;;  %v1494_v47 = vsel %vm164_vm9, %v3486_v59, %v3488_v13  ;;  %v2170_v59 = vld [vmem:[%s3862_s1 + $0xa8] sm:$0xff] }
 0x413   :  { %v1707_v56 = vpop.permute.xlu1 %1706 }
 0x415   :  { %v1709_v27 = vpop.permute.xlu0 %1708 }
 0x416   :  { %v1716_v2 = vsel %vm190_vm8, %v1707_v56, %v1709_v27 }
 0x417   :  { %v1711_v58 = vpop.permute.xlu1 %1710  ;;  %v1722_v31 = vmul.f32 %v2177_v9, %v1716_v2  ;;  %v1528_v2 = vmul.f32 %v2179_v42, %v1518_v44  ;;  %v2176_v9 = vld [vmem:[%s3862_s1 + $0xd8] sm:$0xff] }
 0x418   :  { %v1715_v41 = vsel %vm190_vm8, %v1709_v27, %v1711_v58  ;;  %v1505_v11 = vmul.f32 %v2176_v9, %v1497_v53 }
 0x419   :  { %v1723_v61 = vmul.f32 %v2178_v1, %v1715_v41  ;;  %v1713_v36 = vpop.permute.xlu0 %1712 }
 0x41a   :  { %v1714_v3 = vsel %vm190_vm8, %v1711_v58, %v1713_v36  ;;  %v1717_v26 = vsel %vm190_vm8, %v1713_v36, %v1707_v56 }
 0x41b   :  { %v1724_v62 = vmul.f32 %v2179_v42, %v1714_v3  ;;  %v1725_v27 = vmul.f32 %v2180_v40, %v1717_v26  ;;  %1849 = vmatprep.subr.mxu0 %v1723_v61  ;;  %v1683_v41 = vpop.permute.xlu1 %1682  ;;  %v1503_v40 = vmul.f32 %v2174_v50, %v1495_v48 }
 0x41c   :  { %1850 = vmatpush1.msra.mxu0 %v1722_v31 }
 0x41d   :  { %v1685_v46 = vpop.permute.xlu0 %1684  ;;  %1851 = vmatprep.subr.mxu0 %v1527_v4  ;;  %1924 = vmatprep.subr.mxu1 %v1725_v27 }
 0x41e   :  { %1852 = vmatpush1.msra.mxu0 %v1526_v38  ;;  %1925 = vmatpush1.msra.mxu1 %v1724_v62  ;;  %v1692_v56 = vsel %vm164_vm9, %v1683_v41, %v1685_v46  ;;  %v2173_v38 = vld [vmem:[%s3862_s1 + $0xc0] sm:$0xff]  ;;  %v1504_v62 = vmul.f32 %v2175_v35, %v1494_v47 }
 0x41f   :  { %1926 = vmatprep.subr.mxu1 %v1529_v20  ;;  %v1687_v58 = vpop.permute.xlu1 %1686  ;;  %v1698_v61 = vmul.f32 %v2173_v38, %v1692_v56  ;;  %v1502_v4 = vmul.f32 %v2173_v38, %v3479_v37  ;;  %v1471_v37 = vsel %vm138_vm10, %v3492_v60, %v3500_v22  ;;  %v1473_v60 = vsel %vm138_vm10, %v3502_v16, %v3490_v14 }
 0x420   :  { %v1691_v12 = vsel %vm164_vm9, %v1685_v46, %v1687_v58  ;;  %1927 = vmatpush1.msra.mxu1 %v1528_v2  ;;  %v2169_v46 = vld [vmem:[%s3862_s1 + $0xa0] sm:$0xff] }
 0x421   :  { %v1699_v1 = vmul.f32 %v2174_v50, %v1691_v12  ;;  %v1689_v20 = vpop.permute.xlu0 %1688  ;;  %v2172_v50 = vld [vmem:[%s3862_s1 + $0xb8] sm:$0xff] }
 0x422   :  { %v1690_v36 = vsel %vm164_vm9, %v1687_v58, %v1689_v20  ;;  %v1693_v42 = vsel %vm164_vm9, %v1689_v20, %v1683_v41  ;;  %v2171_v58 = vld [vmem:[%s3862_s1 + $0xb0] sm:$0xff]  ;;  %v1470_v20 = vsel %vm138_vm10, %v3500_v22, %v3502_v16  ;;  %v1481_v14 = vmul.f32 %v2172_v50, %v1473_v60  ;;  %v2166_v16 = vld [vmem:[%s3862_s1 + $0x68] sm:$0xff] }
 0x423   :  { %v1700_v31 = vmul.f32 %v2175_v35, %v1690_v36  ;;  %v1701_v3 = vmul.f32 %v2176_v9, %v1693_v42  ;;  %1853 = vmatprep.subr.mxu0 %v1699_v1  ;;  %v1659_v26 = vpop.permute.xlu1 %1658  ;;  %v1479_v1 = vmul.f32 %v2170_v59, %v1471_v37  ;;  %v1480_v42 = vmul.f32 %v2171_v58, %v1470_v20 }
 0x424   :  { %1854 = vmatpush1.msra.mxu0 %v1698_v61  ;;  %v1478_v61 = vmul.f32 %v2169_v46, %v3498_v21  ;;  %v1442_v21 = vsel %vm108_vm11, %v3511_v15, %v3518_v63  ;;  %v1445_v15 = vsel %vm108_vm11, %v3518_v63, %v3504_v23  ;;  %v1451_v63 = vmul.f32 %v2166_v16, %v3509_v28 }
 0x425   :  { %v1661_v44 = vpop.permute.xlu0 %1660  ;;  %1855 = vmatprep.subr.mxu0 %v1503_v40  ;;  %1928 = vmatprep.subr.mxu1 %v1701_v3 }
 0x426   :  { %1856 = vmatpush1.msra.mxu0 %v1502_v4  ;;  %1929 = vmatpush1.msra.mxu1 %v1700_v31  ;;  %v1668_v27 = vsel %vm138_vm10, %v1659_v26, %v1661_v44 }
 0x427   :  { %1930 = vmatprep.subr.mxu1 %v1505_v11  ;;  %v1663_v41 = vpop.permute.xlu1 %1662  ;;  %v1674_v48 = vmul.f32 %v2169_v46, %v1668_v27  ;;  %v1418_v46 = vsel %vm82_vm12, %v3527_v52, %v3534_v24 }
 0x428   :  { %v1667_v13 = vsel %vm138_vm10, %v1661_v44, %v1663_v41  ;;  %1931 = vmatpush1.msra.mxu1 %v1504_v62 }
 0x429   :  { %v1675_v2 = vmul.f32 %v2170_v59, %v1667_v13  ;;  %v1665_v56 = vpop.permute.xlu0 %1664  ;;  %v2164_v13 = vld [vmem:[%s3862_s1 + $0x58] sm:$0xff] }
 0x42a   :  { %v1666_v12 = vsel %vm138_vm10, %v1663_v41, %v1665_v56  ;;  %v1669_v38 = vsel %vm138_vm10, %v1665_v56, %v1659_v26  ;;  %v2162_v41 = vld [vmem:[%s3862_s1 + $0x48] sm:$0xff]  ;;  %v1429_v20 = vmul.f32 %v2164_v13, %v1418_v46  ;;  %v2212_v46 = vld [vmem:[%s3862_s1 + $0x118] sm:$0xff] }
 0x42b   :  { %v1676_v35 = vmul.f32 %v2171_v58, %v1666_v12  ;;  %v1677_v9 = vmul.f32 %v2172_v50, %v1669_v38  ;;  %1857 = vmatprep.subr.mxu0 %v1675_v2  ;;  %v1631_v53 = vpop.permute.xlu1 %1630  ;;  %v1421_v2 = vsel %vm82_vm12, %v3534_v24, %v3520_v55  ;;  %v2163_v50 = vld [vmem:[%s3862_s1 + $0x50] sm:$0xff]  ;;  %v1427_v52 = vmul.f32 %v2162_v41, %v3525_v43  ;;  %v2158_v24 = vld [vmem:[%s3862_s1 + $0x28] sm:$0xff] }
 0x42c   :  { %1858 = vmatpush1.msra.mxu0 %v1674_v48  ;;  %v1428_v55 = vmul.f32 %v2163_v50, %v3532_v51  ;;  %v2157_v51 = vld [vmem:[%s3862_s1 + $0x20] sm:$0xff] }
 0x42d   :  { %v1633_v36 = vpop.permute.xlu0 %1632  ;;  %1859 = vmatprep.subr.mxu0 %v1479_v1  ;;  %1932 = vmatprep.subr.mxu1 %v1677_v9 }
 0x42e   :  { %v1640_v40 = vsel %vm108_vm11, %v1631_v53, %v1633_v36  ;;  %1860 = vmatpush1.msra.mxu0 %v1478_v61  ;;  %1933 = vmatpush1.msra.mxu1 %v1676_v35 }
 0x42f   :  { %1861 = vmatprep.subr.mxu0 %v3387_v7  ;;  %1934 = vmatprep.subr.mxu1 %v1481_v14  ;;  %v1635_v22 = vpop.permute.xlu1 %1634  ;;  %v1647_v47 = vmul.f32 %v2166_v16, %v1640_v40  ;;  %v2165_v7 = vld [vmem:[%s3862_s1 + $0x60] sm:$0xff]  ;;  %v1397_v40 = vsel %vm56_vm13, %v3550_v29, %v3536_v32 }
 0x430   :  { %1862 = vmatpush1.msra.mxu0 %v3383_v39  ;;  %1935 = vmatpush1.msra.mxu1 %v1480_v42  ;;  %v1639_v31 = vsel %vm108_vm11, %v1633_v36, %v1635_v22  ;;  %v2168_v39 = vld [vmem:[%s3862_s1 + $0x78] sm:$0xff]  ;;  %v1450_v62 = vmul.f32 %v2165_v7, %v1445_v15  ;;  %v1394_v42 = vsel %vm56_vm13, %v3543_v17, %v3550_v29  ;;  %v1375_v29 = vld [vmem:[%s3862_s1 + $0x8] sm:$0xff] }
 0x431   :  { %v1637_v3 = vpop.permute.xlu0 %1636  ;;  %1863 = vmatprep.subr.mxu0 %v3319_v57  ;;  %1936 = vmatprep.subr.mxu1 %v3395_v10  ;;  %v2167_v10 = vld [vmem:[%s3862_s1 + $0x70] sm:$0xff]  ;;  %v1453_v27 = vmul.f32 %v2168_v39, %v1442_v21  ;;  %v2160_v36 = vld [vmem:[%s3862_s1 + $0x38] sm:$0xff]  ;;  %v1403_v17 = vmul.f32 %v2158_v24, %v3541_v45 }
 0x432   :  { %v1638_v26 = vsel %vm108_vm11, %v1635_v22, %v1637_v3  ;;  %v1641_v57 = vsel %vm108_vm11, %v1637_v3, %v1631_v53  ;;  %1864 = vmatpush1.msra.mxu0 %v3317_v34  ;;  %1937 = vmatpush1.msra.mxu1 %v3391_v8  ;;  %v1648_v44 = vmul.f32 %v2167_v10, %v1639_v31  ;;  %v2159_v21 = vld [vmem:[%s3862_s1 + $0x30] sm:$0xff] }
 0x433   :  { %v1646_v4 = vmul.f32 %v2165_v7, %v1641_v57  ;;  %v1649_v11 = vmul.f32 %v2168_v39, %v1638_v26  ;;  %1865 = vmatprep.subr.mxu0 %v1647_v47  ;;  %1938 = vmatprep.subr.mxu1 %v3327_v25  ;;  %v1607_v23 = vpop.permute.xlu1 %1606  ;;  %v1452_v8 = vmul.f32 %v2167_v10, %v3516_v49  ;;  %v2161_v49 = vld [vmem:[%s3862_s1 + $0x40] sm:$0xff] }
 0x434   :  { %1939 = vmatpush1.msra.mxu1 %v3323_v19  ;;  %v1426_v1 = vmul.f32 %v2161_v49, %v1421_v2  ;;  %v1402_v39 = vmul.f32 %v2157_v51, %v1397_v40  ;;  %v1405_v15 = vmul.f32 %v2160_v36, %v1394_v42  ;;  %v1404_v32 = vmul.f32 %v2159_v21, %v3548_v18  ;;  %v1374_v18 = vld [vmem:[%s3862_s1] sm:$0xff]  ;;  %v2216_v42 = vld [vmem:[%s3863_s2 + $0x58] sm:$0xff] }
 0x435   :  { %v1609_v34 = vpop.permute.xlu0 %1608  ;;  %1866 = vmatpush1.msra.mxu0 %v1646_v4  ;;  %1940 = vmatprep.subr.mxu1 %v1649_v11  ;;  %v2181_v2 = vld [vmem:[%s3862_s1 + $0x100] sm:$0xff] }
 0x436   :  { %v1616_v25 = vsel %vm82_vm12, %v1607_v23, %v1609_v34  ;;  %1867 = vmatprep.subr.mxu0 %v1451_v63  ;;  %1941 = vmatpush1.msra.mxu1 %v1648_v44  ;;  %v1370_v63 = vsel %vm31_vm14, %v3559_v33, %v3566_v0  ;;  %v1373_v44 = vsel %vm31_vm14, %v3566_v0, %v3552_v54  ;;  %v2210_v0 = vld [vmem:[%s3862_s1 + $0x108] sm:$0xff] }
 0x437   :  { %v1623_v28 = vmul.f32 %v2162_v41, %v1616_v25  ;;  %1868 = vmatpush1.msra.mxu0 %v1450_v62  ;;  %1942 = vmatprep.subr.mxu1 %v1453_v27  ;;  %v1611_v19 = vpop.permute.xlu1 %1610  ;;  %v1379_v33 = vmul.f32 %v1375_v29, %v3557_v6 }
 0x438   :  { %1943 = vmatpush1.msra.mxu1 %v1452_v8  ;;  %v1615_v59 = vsel %vm82_vm12, %v1609_v34, %v1611_v19  ;;  %v1376_v34 = vld [vmem:[%s3862_s1 + $0x10] sm:$0xff] }
 0x439   :  { %v1613_v37 = vpop.permute.xlu0 %1612  ;;  %1869 = vmatprep.subr.mxu0 %v1623_v28  ;;  %v1624_v38 = vmul.f32 %v2163_v50, %v1615_v59  ;;  %v1380_v54 = vmul.f32 %v1376_v34, %v3564_v30  ;;  %v2211_v30 = vld [vmem:[%s3862_s1 + $0x110] sm:$0xff] }
 0x43a   :  { %v1614_v56 = vsel %vm82_vm12, %v1611_v19, %v1613_v37  ;;  %v1617_v58 = vsel %vm82_vm12, %v1613_v37, %v1607_v23  ;;  %v1377_v23 = vld [vmem:[%s3862_s1 + $0x18] sm:$0xff]  ;;  %v1378_v19 = vmul.f32 %v1374_v18, %v1373_v44  ;;  %v2256_v44 = vld [vmem:[%s3861_s0 + $0x8] sm:$0xff] }
 0x43b   :  { %v1622_v60 = vmul.f32 %v2161_v49, %v1617_v58  ;;  %v1625_v48 = vmul.f32 %v2164_v13, %v1614_v56  ;;  %v1583_v12 = vpop.permute.xlu1 %1582  ;;  %v1381_v59 = vmul.f32 %v1377_v23, %v1370_v63 }
 0x43d   :  { %v1585_v35 = vpop.permute.xlu0 %1584  ;;  %1870 = vmatpush1.msra.mxu0 %v1622_v60  ;;  %1944 = vmatprep.subr.mxu1 %v1625_v48 }
 0x43e   :  { %v1592_v9 = vsel %vm56_vm13, %v1583_v12, %v1585_v35  ;;  %1871 = vmatprep.subr.mxu0 %v1427_v52  ;;  %1945 = vmatpush1.msra.mxu1 %v1624_v38  ;;  %v3871_v52 = vld [vmem:[#allocation3_spill] sm:$0xff] }
 0x43f   :  { %v1599_v53 = vmul.f32 %v2158_v24, %v1592_v9  ;;  %1872 = vmatpush1.msra.mxu0 %v1426_v1  ;;  %1946 = vmatprep.subr.mxu1 %v1429_v20  ;;  %v1587_v43 = vpop.permute.xlu1 %1586 }
 0x440   :  { %1947 = vmatpush1.msra.mxu1 %v1428_v55  ;;  %v1591_v61 = vsel %vm56_vm13, %v1585_v35, %v1587_v43 }
 0x441   :  { %v1589_v14 = vpop.permute.xlu0 %1588  ;;  %1873 = vmatprep.subr.mxu0 %v1599_v53  ;;  %v1600_v7 = vmul.f32 %v2159_v21, %v1591_v61 }
 0x442   :  { %v1590_v22 = vsel %vm56_vm13, %v1587_v43, %v1589_v14  ;;  %v1593_v16 = vsel %vm56_vm13, %v1589_v14, %v1583_v12  ;;  %v3870_v12 = vld [vmem:[#allocation4_spill] sm:$0xff]  ;;  %v2213_v14 = vld [vmem:[%s3863_s2 + $0x40] sm:$0xff] }
 0x443   :  { %v1598_v47 = vmul.f32 %v2157_v51, %v1593_v16  ;;  %v1601_v31 = vmul.f32 %v2160_v36, %v1590_v22  ;;  %v1559_v3 = vpop.permute.xlu1 %1558  ;;  %v1544_v38 = vsel %vm216_vm7, %v3871_v52, %v3870_v12 }
 0x444   :  { %v1550_v53 = vmul.f32 %v2181_v2, %v1544_v38 }
 0x445   :  { %v1561_v26 = vpop.permute.xlu0 %1560  ;;  %1874 = vmatpush1.msra.mxu0 %v1598_v47  ;;  %1948 = vmatprep.subr.mxu1 %v1601_v31 }
 0x446   :  { %v1568_v57 = vsel %vm31_vm14, %v1559_v3, %v1561_v26  ;;  %1875 = vmatprep.subr.mxu0 %v1403_v17  ;;  %1949 = vmatpush1.msra.mxu1 %v1600_v7 }
 0x447   :  { %v1575_v10 = vmul.f32 %v1568_v57, %v1375_v29  ;;  %1876 = vmatpush1.msra.mxu0 %v1402_v39  ;;  %1950 = vmatprep.subr.mxu1 %v1405_v15  ;;  %v1563_v45 = vpop.permute.xlu1 %1562 }
 0x448   :  { %1951 = vmatpush1.msra.mxu1 %v1404_v32  ;;  %v1567_v4 = vsel %vm31_vm14, %v1561_v26, %v1563_v45 }
 0x449   :  { %v1565_v11 = vpop.permute.xlu0 %1564  ;;  %1877 = vmatprep.subr.mxu0 %v1575_v10  ;;  %v1576_v28 = vmul.f32 %v1567_v4, %v1376_v34 }
 0x44a   :  { %v1566_v62 = vsel %vm31_vm14, %v1563_v45, %v1565_v11  ;;  %v1569_v27 = vsel %vm31_vm14, %v1565_v11, %v1559_v3  ;;  %v2255_v45 = vld [vmem:[%s3861_s0] sm:$0xff] }
 0x44b   :  { %v1574_v8 = vmul.f32 %v1569_v27, %v1374_v18  ;;  %v1577_v41 = vmul.f32 %v1566_v62, %v1377_v23  ;;  %v1731_v25 = vpop.permute.xlu1 %1730  ;;  %v2257_v27 = vld [vmem:[%s3861_s0 + $0x10] sm:$0xff] }
 0x44d   :  { %v1733_v37 = vpop.permute.xlu0 %1732  ;;  %1878 = vmatpush1.msra.mxu0 %v1574_v8  ;;  %1952 = vmatprep.subr.mxu1 %v1577_v41  ;;  %v2258_v41 = vld [vmem:[%s3861_s0 + $0x18] sm:$0xff] }
 0x44e   :  { %1879 = vmatprep.subr.mxu0 %v1379_v33  ;;  %1953 = vmatpush1.msra.mxu1 %v1576_v28  ;;  %v1740_v49 = vsel %vm216_vm7, %v1731_v25, %v1733_v37 }
 0x44f   :  { %1880 = vmatpush1.msra.mxu0 %v1378_v19  ;;  %1954 = vmatprep.subr.mxu1 %v1381_v59  ;;  %v1735_v6 = vpop.permute.xlu1 %1734  ;;  %v1746_v50 = vmul.f32 %v2181_v2, %v1740_v49 }
 0x450   :  { %v1739_v13 = vsel %vm216_vm7, %v1733_v37, %v1735_v6  ;;  %1955 = vmatpush1.msra.mxu1 %v1380_v54 }
 0x451   :  { %v1747_v56 = vmul.f32 %v2210_v0, %v1739_v13  ;;  %v1737_v58 = vpop.permute.xlu0 %1736 }
 0x452   :  { %v1738_v60 = vsel %vm216_vm7, %v1735_v6, %v1737_v58  ;;  %v1741_v48 = vsel %vm216_vm7, %v1737_v58, %v1731_v25 }
 0x453   :  { %v1748_v1 = vmul.f32 %v2211_v30, %v1738_v60  ;;  %v1749_v20 = vmul.f32 %v2212_v46, %v1741_v48  ;;  %1909 = vmatprep.subr.mxu0 %v1747_v56  ;;  %v1539_v35 = vpop.permute.xlu1 %1538 }
 0x454   :  { %v1543_v55 = vsel %vm216_vm7, %v3870_v12, %v1539_v35  ;;  %1910 = vmatpush2.msra.mxu0 %v1746_v50 }
 0x455   :  { %v1551_v24 = vmul.f32 %v2210_v0, %v1543_v55  ;;  %v1541_v9 = vpop.permute.xlu0 %1540  ;;  %1984 = vmatprep.subr.mxu1 %v1749_v20 }
 0x456   :  { %v1542_v43 = vsel %vm216_vm7, %v1539_v35, %v1541_v9  ;;  %v1545_v61 = vsel %vm216_vm7, %v1541_v9, %v3871_v52  ;;  %1985 = vmatpush2.msra.mxu1 %v1748_v1 }
 0x457   :  { %v1552_v51 = vmul.f32 %v2211_v30, %v1542_v43  ;;  %v1553_v36 = vmul.f32 %v2212_v46, %v1545_v61  ;;  %1911 = vmatprep.subr.mxu0 %v1551_v24 }
 0x458   :  { %1912 = vmatpush2.msra.mxu0 %v1550_v53 }
 0x459   :  { %1914 = vmatmul.mubr.f32.vlgmr.msra.gmra.mxu0 %v2213_v14  ;;  %1986 = vmatprep.subr.mxu1 %v1553_v36 }
 0x45a   :  { %1987 = vmatpush2.msra.mxu1 %v1552_v51  ;;  %2220 = vmatprep.mubr.msk.f32.mxu0 %vm534_vm0, %v2216_v42 }
 0x45b   :  { %1989 = vmatmul.mubr.f32.vlgmr.msra.gmra.mxu1 %v2213_v14 }
 0x45c   :  { %2222 = vmatprep.mubr.msk.f32.mxu1 %vm534_vm0, %v2216_v42 }
 0x45d   :  { %1920 = vmatmul.mubr.f32.gmra.mxu0 %v2215_v5 }
 0x45f   :  { %1995 = vmatmul.mubr.f32.gmra.mxu1 %v2215_v5 }
 0x460   :  { %v1837_v40 = vpop.permute.xlu1 %1836 }
 0x519   :  { %v1915_v22 = vpop.f32.mrf.mxu0 }
 0x51a   :  { %v1916_v16 = vadd.f32 %v1915_v22, %v1837_v40 }
 0x51b   :  { %v1917_v21 = vpop.f32.mrf.mxu0  ;;  %v1990_v47 = vpop.f32.mrf.mxu1 }
 0x51c   :  { %v1999_v31 = vmul.f32 0.2, %v1916_v16  ;;  %v1918_v3 = vadd.f32 %v1917_v21, %v1837_v40  ;;  %v1991_v17 = vadd.f32 %v1990_v47, %v1837_v40 }
 0x51d   :  { %v1992_v7 = vpop.f32.mrf.mxu1  ;;  %v1921_v39 = vpop.f32.mrf.mxu0 }
 0x51e   :  { %v2003_v15 = vmax.f32 %v1916_v16, %v1999_v31  ;;  %v2000_v26 = vmul.f32 0.2, %v1918_v3  ;;  %v2001_v32 = vmul.f32 0.2, %v1991_v17  ;;  %v1993_v29 = vadd.f32 %v1992_v7, %v1837_v40 }
 0x51f   :  { %v1996_v57 = vpop.f32.mrf.mxu1  ;;  %v1922_v10 = vpop.f32.mrf.mxu0 }
 0x520   :  { %v2007_v4 = vadd.f32 %v2255_v45, %v2003_v15  ;;  %v2004_v11 = vmax.f32 %v1918_v3, %v2000_v26  ;;  %v2005_v18 = vmax.f32 %v1991_v17, %v2001_v32  ;;  %v2002_v23 = vmul.f32 0.2, %v1993_v29 }
 0x521   :  { %v1997_v63 = vpop.f32.mrf.mxu1 }
 0x522   :  { %2011 = vst [vmem:[%s3865_s4] sm:$0xff] %v2007_v4  ;;  %v2008_v62 = vadd.f32 %v2256_v44, %v2004_v11  ;;  %v2009_v34 = vadd.f32 %v2257_v27, %v2005_v18  ;;  %v2006_v8 = vmax.f32 %v1993_v29, %v2002_v23 }
 0x524   :  { %2012 = vst [vmem:[%s3865_s4 + $0x8] sm:$0xff] %v2008_v62  ;;  %2013 = vst [vmem:[%s3865_s4 + $0x10] sm:$0xff] %v2009_v34  ;;  %v2010_v25 = vadd.f32 %v2258_v41, %v2006_v8 }
 0x526   :  { %2014 = vst [vmem:[%s3865_s4 + $0x18] sm:$0xff] %v2010_v25 }

</bundles_post_ra>
